<compile_context>
chip_gen: v6e
topology: v6e:2x2x1
jax: 0.10.0
libtpu: 0.0.40
codegen_flags: <defaults>
</compile_context>

<pallas_src>
import functools

import jax
import jax.numpy as jnp
from jax import lax
from jax.experimental import pallas as pl
from jax.experimental.pallas import tpu as pltpu


def _round_up(x, m):
    return (x + m - 1) // m * m


def _ngram_kernel(ids_ref, w1e_ref, b1_ref, w2_ref, b2_ref, out_ref, *,
                  vocab_size, ctx_size, compute_dtype):
    # ids_ref: (TM, C) int32
    # w1e_ref: (CVp, H)  folded embedding+linear1, row index = c*V + token
    # b1_ref:  (1, H)
    # w2_ref:  (H, Vp)   b2_ref: (1, Vp)  (padded lanes carry a -1e30 bias)
    # out_ref: (TM, Vp)
    tm = ids_ref.shape[0]
    cvp = w1e_ref.shape[0]

    ids = ids_ref[...]                                        # (TM, C)

    # Multi-hot over the folded (context, vocab) axis: column c*V + t is hot
    # iff ids[:, c] == t.  Padded columns (>= C*V) never match any id.
    # TODO(synk): for very large V, replace this compare-based multi-hot with
    # a scalar-prefetch / DMA row gather of W1_eff instead.
    cv_iota = lax.broadcasted_iota(jnp.int32, (tm, cvp), 1)
    hot = (cv_iota == ids[:, 0:1]).astype(compute_dtype)
    for c in range(1, ctx_size):                              # tiny, static -> unrolled
        hot = hot + (cv_iota == ids[:, c:c + 1] + c * vocab_size).astype(compute_dtype)

    # Fused embedding gather + linear1 in one MXU pass, then bias + ReLU (f32).
    h = jnp.dot(hot, w1e_ref[...].astype(compute_dtype),
                preferred_element_type=jnp.float32)
    h = jnp.maximum(h + b1_ref[...], 0.0)                     # (TM, H)

    # linear2; padded vocab lanes get logit exactly -1e30 via the bias pad,
    # so no explicit mask is needed before the softmax.
    # TODO(synk): for very large vocab, tile the vocab axis (w2 blocks (H, TV),
    # grid axis marked "arbitrary") with an online log-softmax carried in VMEM
    # scratch instead of keeping w2 fully resident.
    logits = jnp.dot(h.astype(compute_dtype), w2_ref[...].astype(compute_dtype),
                     preferred_element_type=jnp.float32) + b2_ref[...]

    # log_softmax over vocab, all in f32 (exp/log on EUP, max/sum on XLU).
    m = jnp.max(logits, axis=-1, keepdims=True)
    shifted = logits - m
    lse = jnp.log(jnp.sum(jnp.exp(shifted), axis=-1, keepdims=True))
    out_ref[...] = (shifted - lse).astype(out_ref.dtype)
    # TODO(synk): on writeback-bound v5e configs emit bf16 log-probs
    # (out_shape dtype bf16) to halve HBM output traffic.


def ngram_forward_batched(ids, emb_table, w1, b1, w2, b2, *, block_m=512,
                          compute_dtype=jnp.float32):
    """Batched NGramLanguageModeler forward.

    ids:       (B, context_size) int32 token ids
    emb_table: (V, E) f32
    w1:        (context_size*E, H) f32   (PyTorch linear1.weight.T)
    b1:        (H,) f32
    w2:        (H, V) f32                (PyTorch linear2.weight.T)
    b2:        (V,) f32
    returns:   (B, V) f32 log-probabilities (one row per context)
    """
    ids = ids.astype(jnp.int32)
    B, C = ids.shape
    V, E = emb_table.shape
    H = w1.shape[1]
    assert w1.shape[0] == C * E and w2.shape == (H, V)

    hi = jax.lax.Precision.HIGHEST

    # Fold the embedding table into linear1 once, outside the kernel:
    #   W1_eff[c*V + t] = emb_table[t] @ W1[c*E:(c+1)*E]
    w1eff = jnp.concatenate(
        [jnp.dot(emb_table, w1[c * E:(c + 1) * E, :], precision=hi)
         for c in range(C)], axis=0)                               # (C*V, H)
    CVp = _round_up(C * V, 128)                  # lane-dense MXU K dimension
    w1eff = jnp.pad(w1eff, ((0, CVp - C * V), (0, 0)))
    b1_2d = b1.reshape(1, H)

    # Lane-dense vocab; padded bias lanes get -1e30 (w2 pad columns are 0),
    # so padded logits are exactly -1e30 and need no in-kernel mask.
    Vp = _round_up(V, 128)
    w2p = jnp.pad(w2, ((0, 0), (0, Vp - V)))
    b2p = jnp.pad(b2, (0, Vp - V), constant_values=-1e30).reshape(1, Vp)

    # Batch tile: as large as block_m allows, but keep >= 2 grid steps so the
    # "parallel" axis can split across both TensorCores on v7x.
    tm_cap = _round_up(B, 8)
    if B >= 16:
        tm_cap = min(tm_cap, _round_up(pl.cdiv(B, 2), 8))
    tm = max(8, min(block_m, tm_cap))
    Bp = _round_up(B, tm)
    ids_p = jnp.pad(ids, ((0, Bp - B), (0, 0)))   # token-0 rows, sliced off below

    kernel = functools.partial(
        _ngram_kernel, vocab_size=V, ctx_size=C, compute_dtype=compute_dtype)

    # Explicit VMEM budget: resident weights (x2 for the worst case of
    # double-buffering) + double-buffered streamed ids/out tiles + margin.
    weight_bytes = 4 * (w1eff.size + b1_2d.size + w2p.size + b2p.size)
    stream_bytes = 4 * 2 * (tm * C + tm * Vp)
    vmem_limit = int(min(128 << 20,
                         max(16 << 20, 2 * weight_bytes + stream_bytes + (2 << 20))))

    def build(single_buffer_weights):
        def w_spec(shape):
            if single_buffer_weights:
                return pl.BlockSpec(shape, lambda *_: (0,) * len(shape),
                                    pipeline_mode=pl.Buffered(1))
            return pl.BlockSpec(shape, lambda *_: (0,) * len(shape))

        return pl.pallas_call(
            kernel,
            out_shape=jax.ShapeDtypeStruct((Bp, Vp), jnp.float32),
            grid=(Bp // tm,),
            in_specs=[
                pl.BlockSpec((tm, C), lambda i: (i, 0)),   # streamed ids tile
                w_spec((CVp, H)),                          # resident folded W1_eff
                w_spec((1, H)),                            # resident b1
                w_spec((H, Vp)),                           # resident W2 (lane-dense)
                w_spec((1, Vp)),                           # resident b2 (-1e30 pad)
            ],
            out_specs=pl.BlockSpec((tm, Vp), lambda i: (i, 0)),
            compiler_params=pltpu.CompilerParams(
                dimension_semantics=("parallel",),
                vmem_limit_bytes=vmem_limit),
        )

    try:
        out = build(True)(ids_p, w1eff, b1_2d, w2p, b2p)
    except Exception:
        # Fallback for jax versions without single-buffer pipeline_mode support;
        # identical numerics, just default double-buffered resident weights.
        out = build(False)(ids_p, w1eff, b1_2d, w2p, b2p)

    return out[:B, :V]


def ngram_forward(inputs, emb_table, w1, b1, w2, b2):
    """Exact analogue of the PyTorch module's forward: (C,) ids -> (1, V)."""
    return ngram_forward_batched(
        inputs.reshape(1, -1), emb_table, w1, b1, w2, b2, block_m=8)


if __name__ == "__main__":
    # Small deterministic config consistent with the module's __init__
    # (the hidden size is fixed at 128 in the PyTorch module).
    vocab_size = 32
    embedding_dim = 16
    context_size = 2
    hidden = 128
    batch = 512          # many n-gram contexts per call -> tm=256, grid of 2

    key = jax.random.PRNGKey(0)
    k_emb, k_w1, k_b1, k_w2, k_b2, k_in = jax.random.split(key, 6)

    emb_table = jax.random.normal(k_emb, (vocab_size, embedding_dim), jnp.float32)
    w1 = jax.random.normal(
        k_w1, (context_size * embedding_dim, hidden), jnp.float32) * 0.1
    b1 = jax.random.normal(k_b1, (hidden,), jnp.float32) * 0.1
    w2 = jax.random.normal(k_w2, (hidden, vocab_size), jnp.float32) * 0.1
    b2 = jax.random.normal(k_b2, (vocab_size,), jnp.float32) * 0.1

    ids = jax.random.randint(k_in, (batch, context_size), 0, vocab_size, jnp.int32)

    # Batched kernel forward (f32 so it can be compared tightly).
    # TODO(synk): on v6e/v7x pass compute_dtype=jnp.bfloat16 for MXU-bound sizes.
    log_probs = ngram_forward_batched(ids, emb_table, w1, b1, w2, b2, block_m=512)
    jax.block_until_ready(log_probs)

    # Pure-JAX reference of the same forward pass (HIGHEST precision so the
    # f32 numerics match the kernel's exact-gather + f32-accumulate path).
    hi = jax.lax.Precision.HIGHEST
    embeds = emb_table[ids].reshape(batch, -1)
    h_ref = jnp.maximum(jnp.dot(embeds, w1, precision=hi) + b1, 0.0)
    logits_ref = jnp.dot(h_ref, w2, precision=hi) + b2
    ref = jax.nn.log_softmax(logits_ref, axis=-1)
    assert log_probs.shape == (batch, vocab_size)
    assert jnp.allclose(log_probs, ref, atol=2e-4, rtol=2e-4), \
        "batched mismatch vs reference"

    # Single-context path, matching the original module signature exactly.
    single = ngram_forward(ids[0], emb_table, w1, b1, w2, b2)
    jax.block_until_ready(single)
    assert single.shape == (1, vocab_size)
    assert jnp.allclose(single, ref[0:1], atol=2e-4, rtol=2e-4), \
        "single-context mismatch"

    print("KERNEL_OK")
</pallas_src>

<mosaic_0001>
module attributes {stable_mosaic.version = 11 : i64} {
  func.func @_ngram_kernel(%arg0: i32, %arg1: memref<256x2xi32, #tpu.memory_space<vmem>>, %arg2: memref<128x128xf32, #tpu.memory_space<vmem>>, %arg3: memref<1x128xf32, #tpu.memory_space<vmem>>, %arg4: memref<128x128xf32, #tpu.memory_space<vmem>>, %arg5: memref<1x128xf32, #tpu.memory_space<vmem>>, %arg6: memref<256x128xf32, #tpu.memory_space<vmem>>) attributes {dimension_semantics = [#tpu.dimension_semantics<parallel>], iteration_bounds = array<i64: 2>, scalar_prefetch = 0 : i64, scratch_operands = 0 : i64, tpu.core_type = #tpu.core_type<tc>, window_params = [{transform_indices = @transform_0, window_bounds = array<i64: 256, 2>}, {pipeline_mode = #tpu.pipeline_mode<synchronous>, transform_indices = @transform_1, window_bounds = array<i64: 128, 128>}, {pipeline_mode = #tpu.pipeline_mode<synchronous>, transform_indices = @transform_2, window_bounds = array<i64: 1, 128>}, {pipeline_mode = #tpu.pipeline_mode<synchronous>, transform_indices = @transform_3, window_bounds = array<i64: 128, 128>}, {pipeline_mode = #tpu.pipeline_mode<synchronous>, transform_indices = @transform_4, window_bounds = array<i64: 1, 128>}, {transform_indices = @transform_5, window_bounds = array<i64: 256, 128>}]} {
    %c0 = arith.constant 0 : index
    %c0_0 = arith.constant 0 : index
    %0 = vector.load %arg1[%c0, %c0_0] : memref<256x2xi32, #tpu.memory_space<vmem>>, vector<256x2xi32>
    %1 = tpu.iota {dimensions = array<i32: 1>} : vector<256x128xi32>
    %2 = vector.extract_strided_slice %0 {offsets = [0, 0], sizes = [256, 1], strides = [1, 1]} : vector<256x2xi32> to vector<256x1xi32>
    %3 = vector.broadcast %2 : vector<256x1xi32> to vector<256x128xi32>
    %4 = arith.cmpi eq, %1, %3 : vector<256x128xi32>
    %5 = arith.extui %4 : vector<256x128xi1> to vector<256x128xi32>
    %6 = arith.sitofp %5 : vector<256x128xi32> to vector<256x128xf32>
    %7 = vector.extract_strided_slice %0 {offsets = [0, 1], sizes = [256, 1], strides = [1, 1]} : vector<256x2xi32> to vector<256x1xi32>
    %c32_i32 = arith.constant 32 : i32
    %8 = vector.broadcast %c32_i32 : i32 to vector<256x1xi32>
    %9 = arith.addi %7, %8 : vector<256x1xi32>
    %10 = vector.broadcast %9 : vector<256x1xi32> to vector<256x128xi32>
    %11 = arith.cmpi eq, %1, %10 : vector<256x128xi32>
    %12 = arith.extui %11 : vector<256x128xi1> to vector<256x128xi32>
    %13 = arith.sitofp %12 : vector<256x128xi32> to vector<256x128xf32>
    %14 = arith.addf %6, %13 : vector<256x128xf32>
    %c0_1 = arith.constant 0 : index
    %c0_2 = arith.constant 0 : index
    %15 = vector.load %arg2[%c0_1, %c0_2] : memref<128x128xf32, #tpu.memory_space<vmem>>, vector<128x128xf32>
    %cst = arith.constant dense<0.000000e+00> : vector<256x128xf32>
    %16 = tpu.matmul %14, %15, %cst {dimension_numbers = #tpu.dot_dimension_numbers<[1], [0], [0], [1], [0, 0, 1, 1], [], []>} : vector<256x128xf32>, vector<128x128xf32>, vector<256x128xf32> -> vector<256x128xf32>
    %c0_3 = arith.constant 0 : index
    %c0_4 = arith.constant 0 : index
    %17 = vector.load %arg3[%c0_3, %c0_4] : memref<1x128xf32, #tpu.memory_space<vmem>>, vector<1x128xf32>
    %18 = vector.broadcast %17 : vector<1x128xf32> to vector<256x128xf32>
    %19 = arith.addf %16, %18 : vector<256x128xf32>
    %cst_5 = arith.constant 0.000000e+00 : f32
    %20 = vector.broadcast %cst_5 : f32 to vector<256x128xf32>
    %21 = arith.maximumf %19, %20 : vector<256x128xf32>
    %c0_6 = arith.constant 0 : index
    %c0_7 = arith.constant 0 : index
    %22 = vector.load %arg4[%c0_6, %c0_7] : memref<128x128xf32, #tpu.memory_space<vmem>>, vector<128x128xf32>
    %cst_8 = arith.constant dense<0.000000e+00> : vector<256x128xf32>
    %23 = tpu.matmul %21, %22, %cst_8 {dimension_numbers = #tpu.dot_dimension_numbers<[1], [0], [0], [1], [0, 0, 1, 1], [], []>} : vector<256x128xf32>, vector<128x128xf32>, vector<256x128xf32> -> vector<256x128xf32>
    %c0_9 = arith.constant 0 : index
    %c0_10 = arith.constant 0 : index
    %24 = vector.load %arg5[%c0_9, %c0_10] : memref<1x128xf32, #tpu.memory_space<vmem>>, vector<1x128xf32>
    %25 = vector.broadcast %24 : vector<1x128xf32> to vector<256x128xf32>
    %26 = arith.addf %23, %25 : vector<256x128xf32>
    %cst_11 = arith.constant dense<0xFF800000> : vector<256xf32>
    %27 = vector.multi_reduction <maximumf>, %26, %cst_11 [1] : vector<256x128xf32> to vector<256xf32>
    %28 = vector.shape_cast %27 : vector<256xf32> to vector<256x1xf32>
    %29 = vector.broadcast %28 : vector<256x1xf32> to vector<256x128xf32>
    %30 = arith.subf %26, %29 : vector<256x128xf32>
    %31 = math.exp %30 : vector<256x128xf32>
    %cst_12 = arith.constant dense<0.000000e+00> : vector<256xf32>
    %32 = vector.multi_reduction <add>, %31, %cst_12 [1] : vector<256x128xf32> to vector<256xf32>
    %33 = vector.shape_cast %32 : vector<256xf32> to vector<256x1xf32>
    %34 = math.log %33 : vector<256x1xf32>
    %35 = vector.broadcast %34 : vector<256x1xf32> to vector<256x128xf32>
    %36 = arith.subf %30, %35 : vector<256x128xf32>
    %c0_13 = arith.constant 0 : index
    %c0_14 = arith.constant 0 : index
    %37 = vector.load %arg6[%c0_13, %c0_14] : memref<256x128xf32, #tpu.memory_space<vmem>>, vector<256x128xf32>
    tpu.vector_store %arg6[%c0_13, %c0_14], %36 {strides = array<i32>} : memref<256x128xf32, #tpu.memory_space<vmem>>, vector<256x128xf32>,
    return
  }
  func.func @transform_0(%arg0: i32) -> (i32, i32) {
    %c0_i32 = arith.constant 0 : i32
    %c0_i32_0 = arith.constant 0 : i32
    return %arg0, %c0_i32 : i32, i32
  }
  func.func @transform_1(%arg0: i32) -> (i32, i32) {
    %c0_i32 = arith.constant 0 : i32
    %c0_i32_0 = arith.constant 0 : i32
    %c0_i32_1 = arith.constant 0 : i32
    return %c0_i32, %c0_i32_0 : i32, i32
  }
  func.func @transform_2(%arg0: i32) -> (i32, i32) {
    %c0_i32 = arith.constant 0 : i32
    %c0_i32_0 = arith.constant 0 : i32
    %c0_i32_1 = arith.constant 0 : i32
    return %c0_i32, %c0_i32_0 : i32, i32
  }
  func.func @transform_3(%arg0: i32) -> (i32, i32) {
    %c0_i32 = arith.constant 0 : i32
    %c0_i32_0 = arith.constant 0 : i32
    %c0_i32_1 = arith.constant 0 : i32
    return %c0_i32, %c0_i32_0 : i32, i32
  }
  func.func @transform_4(%arg0: i32) -> (i32, i32) {
    %c0_i32 = arith.constant 0 : i32
    %c0_i32_0 = arith.constant 0 : i32
    %c0_i32_1 = arith.constant 0 : i32
    return %c0_i32, %c0_i32_0 : i32, i32
  }
  func.func @transform_5(%arg0: i32) -> (i32, i32) {
    %c0_i32 = arith.constant 0 : i32
    %c0_i32_0 = arith.constant 0 : i32
    return %arg0, %c0_i32 : i32, i32
  }
}

module attributes {stable_mosaic.version = 11 : i64} {
  func.func @_ngram_kernel(%arg0: i32, %arg1: memref<256x2xi32, #tpu.memory_space<vmem>>, %arg2: memref<128x128xf32, #tpu.memory_space<vmem>>, %arg3: memref<1x128xf32, #tpu.memory_space<vmem>>, %arg4: memref<128x128xf32, #tpu.memory_space<vmem>>, %arg5: memref<1x128xf32, #tpu.memory_space<vmem>>, %arg6: memref<256x128xf32, #tpu.memory_space<vmem>>) attributes {dimension_semantics = [#tpu.dimension_semantics<parallel>], iteration_bounds = array<i64: 2>, scalar_prefetch = 0 : i64, scratch_operands = 0 : i64, tpu.core_type = #tpu.core_type<tc>, window_params = [{transform_indices = @transform_0, window_bounds = array<i64: 256, 2>}, {pipeline_mode = #tpu.pipeline_mode<synchronous>, transform_indices = @transform_1, window_bounds = array<i64: 128, 128>}, {pipeline_mode = #tpu.pipeline_mode<synchronous>, transform_indices = @transform_2, window_bounds = array<i64: 1, 128>}, {pipeline_mode = #tpu.pipeline_mode<synchronous>, transform_indices = @transform_3, window_bounds = array<i64: 128, 128>}, {pipeline_mode = #tpu.pipeline_mode<synchronous>, transform_indices = @transform_4, window_bounds = array<i64: 1, 128>}, {transform_indices = @transform_5, window_bounds = array<i64: 256, 128>}]} {
    %c0 = arith.constant 0 : index
    %c0_0 = arith.constant 0 : index
    %0 = vector.load %arg1[%c0, %c0_0] : memref<256x2xi32, #tpu.memory_space<vmem>>, vector<256x2xi32>
    %1 = tpu.iota {dimensions = array<i32: 1>} : vector<256x128xi32>
    %2 = vector.extract_strided_slice %0 {offsets = [0, 0], sizes = [256, 1], strides = [1, 1]} : vector<256x2xi32> to vector<256x1xi32>
    %3 = vector.broadcast %2 : vector<256x1xi32> to vector<256x128xi32>
    %4 = arith.cmpi eq, %1, %3 : vector<256x128xi32>
    %5 = arith.extui %4 : vector<256x128xi1> to vector<256x128xi32>
    %6 = arith.sitofp %5 : vector<256x128xi32> to vector<256x128xf32>
    %7 = vector.extract_strided_slice %0 {offsets = [0, 1], sizes = [256, 1], strides = [1, 1]} : vector<256x2xi32> to vector<256x1xi32>
    %c32_i32 = arith.constant 32 : i32
    %8 = vector.broadcast %c32_i32 : i32 to vector<256x1xi32>
    %9 = arith.addi %7, %8 : vector<256x1xi32>
    %10 = vector.broadcast %9 : vector<256x1xi32> to vector<256x128xi32>
    %11 = arith.cmpi eq, %1, %10 : vector<256x128xi32>
    %12 = arith.extui %11 : vector<256x128xi1> to vector<256x128xi32>
    %13 = arith.sitofp %12 : vector<256x128xi32> to vector<256x128xf32>
    %14 = arith.addf %6, %13 : vector<256x128xf32>
    %c0_1 = arith.constant 0 : index
    %c0_2 = arith.constant 0 : index
    %15 = vector.load %arg2[%c0_1, %c0_2] : memref<128x128xf32, #tpu.memory_space<vmem>>, vector<128x128xf32>
    %cst = arith.constant dense<0.000000e+00> : vector<256x128xf32>
    %16 = tpu.matmul %14, %15, %cst {dimension_numbers = #tpu.dot_dimension_numbers<[1], [0], [0], [1], [0, 0, 1, 1], [], []>} : vector<256x128xf32>, vector<128x128xf32>, vector<256x128xf32> -> vector<256x128xf32>
    %c0_3 = arith.constant 0 : index
    %c0_4 = arith.constant 0 : index
    %17 = vector.load %arg3[%c0_3, %c0_4] : memref<1x128xf32, #tpu.memory_space<vmem>>, vector<1x128xf32>
    %18 = vector.broadcast %17 : vector<1x128xf32> to vector<256x128xf32>
    %19 = arith.addf %16, %18 : vector<256x128xf32>
    %cst_5 = arith.constant 0.000000e+00 : f32
    %20 = vector.broadcast %cst_5 : f32 to vector<256x128xf32>
    %21 = arith.maximumf %19, %20 : vector<256x128xf32>
    %c0_6 = arith.constant 0 : index
    %c0_7 = arith.constant 0 : index
    %22 = vector.load %arg4[%c0_6, %c0_7] : memref<128x128xf32, #tpu.memory_space<vmem>>, vector<128x128xf32>
    %cst_8 = arith.constant dense<0.000000e+00> : vector<256x128xf32>
    %23 = tpu.matmul %21, %22, %cst_8 {dimension_numbers = #tpu.dot_dimension_numbers<[1], [0], [0], [1], [0, 0, 1, 1], [], []>} : vector<256x128xf32>, vector<128x128xf32>, vector<256x128xf32> -> vector<256x128xf32>
    %c0_9 = arith.constant 0 : index
    %c0_10 = arith.constant 0 : index
    %24 = vector.load %arg5[%c0_9, %c0_10] : memref<1x128xf32, #tpu.memory_space<vmem>>, vector<1x128xf32>
    %25 = vector.broadcast %24 : vector<1x128xf32> to vector<256x128xf32>
    %26 = arith.addf %23, %25 : vector<256x128xf32>
    %cst_11 = arith.constant dense<0xFF800000> : vector<256xf32>
    %27 = vector.multi_reduction <maximumf>, %26, %cst_11 [1] : vector<256x128xf32> to vector<256xf32>
    %28 = vector.shape_cast %27 : vector<256xf32> to vector<256x1xf32>
    %29 = vector.broadcast %28 : vector<256x1xf32> to vector<256x128xf32>
    %30 = arith.subf %26, %29 : vector<256x128xf32>
    %31 = math.exp %30 : vector<256x128xf32>
    %cst_12 = arith.constant dense<0.000000e+00> : vector<256xf32>
    %32 = vector.multi_reduction <add>, %31, %cst_12 [1] : vector<256x128xf32> to vector<256xf32>
    %33 = vector.shape_cast %32 : vector<256xf32> to vector<256x1xf32>
    %34 = math.log %33 : vector<256x1xf32>
    %35 = vector.broadcast %34 : vector<256x1xf32> to vector<256x128xf32>
    %36 = arith.subf %30, %35 : vector<256x128xf32>
    %c0_13 = arith.constant 0 : index
    %c0_14 = arith.constant 0 : index
    %37 = vector.load %arg6[%c0_13, %c0_14] : memref<256x128xf32, #tpu.memory_space<vmem>>, vector<256x128xf32>
    tpu.vector_store %arg6[%c0_13, %c0_14], %36 {strides = array<i32>} : memref<256x128xf32, #tpu.memory_space<vmem>>, vector<256x128xf32>,
    return
  }
  func.func @transform_0(%arg0: i32) -> (i32, i32) {
    %c0_i32 = arith.constant 0 : i32
    %c0_i32_0 = arith.constant 0 : i32
    return %arg0, %c0_i32 : i32, i32
  }
  func.func @transform_1(%arg0: i32) -> (i32, i32) {
    %c0_i32 = arith.constant 0 : i32
    %c0_i32_0 = arith.constant 0 : i32
    %c0_i32_1 = arith.constant 0 : i32
    return %c0_i32, %c0_i32_0 : i32, i32
  }
  func.func @transform_2(%arg0: i32) -> (i32, i32) {
    %c0_i32 = arith.constant 0 : i32
    %c0_i32_0 = arith.constant 0 : i32
    %c0_i32_1 = arith.constant 0 : i32
    return %c0_i32, %c0_i32_0 : i32, i32
  }
  func.func @transform_3(%arg0: i32) -> (i32, i32) {
    %c0_i32 = arith.constant 0 : i32
    %c0_i32_0 = arith.constant 0 : i32
    %c0_i32_1 = arith.constant 0 : i32
    return %c0_i32, %c0_i32_0 : i32, i32
  }
  func.func @transform_4(%arg0: i32) -> (i32, i32) {
    %c0_i32 = arith.constant 0 : i32
    %c0_i32_0 = arith.constant 0 : i32
    %c0_i32_1 = arith.constant 0 : i32
    return %c0_i32, %c0_i32_0 : i32, i32
  }
  func.func @transform_5(%arg0: i32) -> (i32, i32) {
    %c0_i32 = arith.constant 0 : i32
    %c0_i32_0 = arith.constant 0 : i32
    return %arg0, %c0_i32 : i32, i32
  }
}

</mosaic_0001>

<bundles_post_ra>
// kernel: tpu_custom_call.1
= control target key start
LH: loop header
LB: loop body
LE: loop exit
PB: predicated region body
PF: predicated region fallthrough
CT: control target
= control target key end

     0   :  { %10 = vsyncpa [#allocation3], 0  ;;  %s3004_s0 = inlined_call_operand.vmem [shape: s32[512,2], index: 0, kind: input, shape index: {}]   ;;  %s3005_s1 = inlined_call_operand.vmem [shape: f32[128,128], index: 1, kind: input, shape index: {}]   ;;  %s3006_s2 = inlined_call_operand.vmem [shape: f32[1,128], index: 2, kind: input, shape index: {}]   ;;  %s3007_s3 = inlined_call_operand.vmem [shape: f32[128,128], index: 3, kind: input, shape index: {}]   ;;  %s3008_s4 = inlined_call_operand.vmem [shape: f32[1,128], index: 4, kind: input, shape index: {}]   ;;  %s3009_s5 = inlined_call_operand.hbm [shape: f32[512,128], index: 5, kind: output, shape index: {}]  }
   0x1   :  { %12 = vsyncpa [#allocation3 + $0x1], 0  ;;  %s2274_s18 = smov 0   ;;  %s2276_s19 = smov 0  }
   0x2   :  { %s2278_s20 = smov 0   ;;  %s2280_s21 = smov 0  }
   0x3 LB: > { %s2295_s22 = sadd.s32 4294967295, %s2236_s21   ;;  %s1664_s23 = sadd.s32 4294967294, %s2236_s21   ;;  %s2236_s21 = sphi %s2280_s21, %s3015_s21   ;;  %s2232_s20 = sphi %s2278_s20, %s3014_s20   ;;  %s2228_s19 = sphi %s2276_s19, %s3013_s19   ;;  %s2224_s18 = sphi %s2274_s18, %s3012_s18  }
   0x4   : > { %s2299_s24 = sadd.s32 1, %s2236_s21   ;;  %s135_s25 = sadd.s32 1, %s2232_s20 }
   0x5   : > { %s132_s26 = ssub.s32 %s2236_s21, %s2299_s24  ;;  %p145_p0 = scmp.ne.s32.totalorder %s2232_s20, %s2228_s19 }
   0x6   : > { %p133_p1 = scmp.eq.s32.totalorder %s132_s26, 0  ;;  %p146_p2 = scmp.eq.s32.totalorder %s2295_s22, 1 }
   0x7   : > { %p151_p3 = scmp.ne.s32.totalorder %s2228_s19, %s2224_s18  ;;  %p152_p4 = scmp.eq.s32.totalorder %s1664_s23, 1 }
   0x8   : > { %s2310_s27 = scalar_select %p133_p1, %s2232_s20, %s135_s25  }
   0x9   : > { %p2312_p5 = por %p146_p2, %p145_p0  ;;  %p2316_p6 = por %p152_p4, %p151_p3 }
   0xa   : > { %p1667_p7 = scmp.ge.s32.totalorder %s2236_s21, 1  ;;  %p191_p8 = scmp.lt.s32.totalorder %s2236_s21, 3 }
   0xc   : > { %p192_p9 = pnand %p1667_p7, %p191_p8 }
   0xd   : > { %s1669_s30 = sshll.u32 (!%p192_p9), %s2295_s22, 5  ;;  %s1742_s23 = sshll.u32 (!%p192_p9), %s2295_s22, 12 }
   0xe   : > { %195 = sbr.rel (%p192_p9) target bundleno = 1001 (0x3e9), region = 40  ;;  %p220_p10 = scmp.lt.s32.totalorder (!%p192_p9), %s1669_s30, 63 }
   0xf   : > { %s2955_s6 = scalar_lea.hbm (!%p192_p9), %s3009_s5, %s1742_s23  ;;  %s2241_s8 = smov (!%p192_p9), [#allocation2]  }
  0x10   : > { %s2180_s9 = sshll.u32 (!%p192_p9), %s2241_s8, 4  ;;  %s2181_s9 = int_to_ptr.vmem [resolvable:$false] %s2180_s9 }
  0x11   : > { %s2182_s10 = scalar_lea.vmem (!%p192_p9), %s2181_s9, 8192 }
  0x13   : > { %v723_v0 = vld [vmem:[%s3005_s1 + $0x78] sm:$0xff]  ;;  %v2238_v1 = vmov 0   ;;  %v722_v2 = vld [vmem:[%s3005_s1 + $0x70] sm:$0xff]  ;;  %s3017_s30 = smov (!%p220_p10, %s1669_s30), 63  ;;  %v721_v3 = vld [vmem:[%s3005_s1 + $0x68] sm:$0xff]  ;;  %v2239_v11 = vmov 1  }
  0x14   : > { %2044 = vset.pattern.permute.xlu1 %v2238_v1  ;;  %2043 = vset.pattern.permute.xlu0 %v2238_v1  ;;  %s1670_s12 = sshll.u32 %s3017_s30, 3  ;;  %v720_v4 = vld [vmem:[%s3005_s1 + $0x60] sm:$0xff]  ;;  %v719_v7 = vld [vmem:[%s3005_s1 + $0x58] sm:$0xff]  ;;  %v718_v10 = vld [vmem:[%s3005_s1 + $0x50] sm:$0xff] }
  0x15   : > { %1839 = vmatprep.subr.mxu0 %v723_v0  ;;  %s2335_s15 = scalar_lea.vmem %s3004_s0, %s1670_s12  ;;  %v717_v14 = vld [vmem:[%s3005_s1 + $0x48] sm:$0xff]  ;;  %v716_v16 = vld [vmem:[%s3005_s1 + $0x40] sm:$0xff]  ;;  %v715_v19 = vld [vmem:[%s3005_s1 + $0x38] sm:$0xff] }
  0x16   : > { %1840 = vmatpush3.msra.mxu0 %v723_v0  ;;  %v227_v5 = vld [vmem:[%s2335_s15 + $0x8] sm:$0xff]  ;;  %v226_v6 = vld [vmem:[%s2335_s15] sm:$0xff]  ;;  %v228_v9 = vld [vmem:[%s2335_s15 + $0x10] sm:$0xff] }
  0x17   : > { %1841 = vmatprep.subr.mxu0 %v722_v2  ;;  %264 = vperm.xlu1 %2044, %v227_v5   ;;  %v452_v8 = vadd.s32 32, %v226_v6  ;;  %v453_v12 = vadd.s32 32, %v227_v5  ;;  %v454_v13 = vadd.s32 32, %v228_v9  ;;  %v229_v15 = vld [vmem:[%s2335_s15 + $0x18] sm:$0xff]  ;;  %v230_v18 = vld [vmem:[%s2335_s15 + $0x20] sm:$0xff]  ;;  %v714_v21 = vld [vmem:[%s3005_s1 + $0x30] sm:$0xff] }
  0x18   : > { %1842 = vmatpush3.msra.mxu0 %v722_v2  ;;  %261 = vperm.xlu0 %2043, %v226_v6   ;;  %v455_v17 = vadd.s32 32, %v229_v15  ;;  %v456_v20 = vadd.s32 32, %v230_v18  ;;  %v231_v22 = vld [vmem:[%s2335_s15 + $0x28] sm:$0xff]  ;;  %v712_v25 = vld [vmem:[%s3005_s1 + $0x20] sm:$0xff]  ;;  %v232_v26 = vld [vmem:[%s2335_s15 + $0x30] sm:$0xff] }
  0x19   : > { %1843 = vmatprep.subr.mxu0 %v721_v3  ;;  %v713_v23 = vld [vmem:[%s3005_s1 + $0x28] sm:$0xff]  ;;  %v457_v24 = vadd.s32 32, %v231_v22  ;;  %v711_v27 = vld [vmem:[%s3005_s1 + $0x18] sm:$0xff]  ;;  %v458_v28 = vadd.s32 32, %v232_v26  ;;  %v710_v29 = vld [vmem:[%s3005_s1 + $0x10] sm:$0xff] }
  0x1a   : > { %1844 = vmatpush3.msra.mxu0 %v721_v3  ;;  %v233_v30 = vld [vmem:[%s2335_s15 + $0x38] sm:$0xff]  ;;  %v709_v31 = vld [vmem:[%s3005_s1 + $0x8] sm:$0xff]  ;;  %v708_v33 = vld [vmem:[%s3005_s1] sm:$0xff] }
  0x1b   : > { %1845 = vmatprep.subr.mxu0 %v720_v4  ;;  %267 = vperm.xlu1 %2044, %v228_v9   ;;  %v459_v32 = vadd.s32 32, %v233_v30  ;;  %v234_v34 = vld [vmem:[%s2335_s15 + $0x40] sm:$0xff]  ;;  %v235_v36 = vld [vmem:[%s2335_s15 + $0x48] sm:$0xff]  ;;  %v236_v38 = vld [vmem:[%s2335_s15 + $0x50] sm:$0xff] }
  0x1c   : > { %1846 = vmatpush3.msra.mxu0 %v720_v4  ;;  %2045 = vset.pattern.permute.xlu0 %v2239_v11  ;;  %v460_v35 = vadd.s32 32, %v234_v34  ;;  %v461_v37 = vadd.s32 32, %v235_v36  ;;  %v462_v39 = vadd.s32 32, %v236_v38  ;;  %v237_v40 = vld [vmem:[%s2335_s15 + $0x58] sm:$0xff]  ;;  %v238_v42 = vld [vmem:[%s2335_s15 + $0x60] sm:$0xff]  ;;  %v239_v44 = vld [vmem:[%s2335_s15 + $0x68] sm:$0xff] }
  0x1d   : > { %1847 = vmatprep.subr.mxu0 %v719_v7  ;;  %485 = vperm.xlu0 %2045, %v452_v8   ;;  %v463_v41 = vadd.s32 32, %v237_v40  ;;  %v464_v43 = vadd.s32 32, %v238_v42  ;;  %v465_v45 = vadd.s32 32, %v239_v44  ;;  %v240_v46 = vld [vmem:[%s2335_s15 + $0x70] sm:$0xff]  ;;  %v241_v48 = vld [vmem:[%s2335_s15 + $0x78] sm:$0xff]  ;;  %v242_v50 = vld [vmem:[%s2335_s15 + $0x80] sm:$0xff] }
  0x1e   : > { %1848 = vmatpush3.msra.mxu0 %v719_v7  ;;  %v466_v47 = vadd.s32 32, %v240_v46  ;;  %v467_v49 = vadd.s32 32, %v241_v48  ;;  %v468_v51 = vadd.s32 32, %v242_v50  ;;  %v243_v52 = vld [vmem:[%s2335_s15 + $0x88] sm:$0xff]  ;;  %v244_v54 = vld [vmem:[%s2335_s15 + $0x90] sm:$0xff]  ;;  %v245_v56 = vld [vmem:[%s2335_s15 + $0x98] sm:$0xff] }
  0x1f   : > { %1849 = vmatprep.subr.mxu0 %v718_v10  ;;  %2046 = vset.pattern.permute.xlu1 %v2239_v11  ;;  %v469_v53 = vadd.s32 32, %v243_v52  ;;  %v470_v55 = vadd.s32 32, %v244_v54  ;;  %v471_v57 = vadd.s32 32, %v245_v56  ;;  %v246_v58 = vld [vmem:[%s2335_s15 + $0xa0] sm:$0xff]  ;;  %v247_v60 = vld [vmem:[%s2335_s15 + $0xa8] sm:$0xff]  ;;  %v248_v62 = vld [vmem:[%s2335_s15 + $0xb0] sm:$0xff] }
  0x20   : > { %1850 = vmatpush3.msra.mxu0 %v718_v10  ;;  %488 = vperm.xlu1 %2046, %v453_v12   ;;  %v472_v59 = vadd.s32 32, %v246_v58  ;;  %v473_v61 = vadd.s32 32, %v247_v60  ;;  %v474_v63 = vadd.s32 32, %v248_v62  ;;  %v249_v0 = vld [vmem:[%s2335_s15 + $0xb8] sm:$0xff]  ;;  %v250_v2 = vld [vmem:[%s2335_s15 + $0xc0] sm:$0xff]  ;;  %v251_v4 = vld [vmem:[%s2335_s15 + $0xc8] sm:$0xff] }
  0x21   : > { %1851 = vmatprep.subr.mxu0 %v717_v14  ;;  %491 = vperm.xlu0 %2045, %v454_v13   ;;  %v476_v3 = vadd.s32 32, %v250_v2  ;;  %v477_v5 = vadd.s32 32, %v251_v4  ;;  %v252_v6 = vld [vmem:[%s2335_s15 + $0xd0] sm:$0xff]  ;;  %v253_v8 = vld [vmem:[%s2335_s15 + $0xd8] sm:$0xff]  ;;  %v254_v10 = vld [vmem:[%s2335_s15 + $0xe0] sm:$0xff] }
  0x22   : > { %1852 = vmatpush3.msra.mxu0 %v717_v14  ;;  %v478_v7 = vadd.s32 32, %v252_v6  ;;  %v479_v9 = vadd.s32 32, %v253_v8  ;;  %v480_v11 = vadd.s32 32, %v254_v10  ;;  %v255_v12 = vld [vmem:[%s2335_s15 + $0xe8] sm:$0xff]  ;;  %v256_v14 = vld [vmem:[%s2335_s15 + $0xf0] sm:$0xff] }
  0x23   : > { %1853 = vmatprep.subr.mxu0 %v716_v16  ;;  %v481_v13 = vadd.s32 32, %v255_v12 }
  0x24   : > { %1854 = vmatpush3.msra.mxu0 %v716_v16  ;;  %2047 = vset.pattern.permute.xlu1 %v2238_v1  ;;  %v475_v1 = vadd.s32 32, %v249_v0  ;;  %v257_v16 = vld [vmem:[%s2335_s15 + $0xf8] sm:$0xff]  ;;  %s216_s15 = sand.u32 1, %s2228_s19  }
  0x25   : > { %494 = vperm.xlu0 %2045, %v455_v17   ;;  %270 = vperm.xlu1 %2047, %v229_v15   ;;  %v482_v15 = vadd.s32 32, %v256_v14  ;;  %v258_v17 = vlaneseq  ;;  %s1668_s16 = sshll.u32 %s216_s15, 8  ;;  %s2964_s22 = scalar_lea.sflag [#allocation3], %s216_s15 }
  0x26   : > { %1855 = vmatprep.subr.mxu0 %v715_v19  ;;  %s2888_s17 = scalar_lea.vmem [#allocation2], %s1668_s16 }
  0x27   : > { %1856 = vmatpush3.msra.mxu0 %v715_v19  ;;  %v2408_v19 = vand.u32 127, %v258_v17  ;;  %s1602_s25 = sshll.u32 %s2888_s17, 4  ;;  %s2957_s25 = int_to_ptr.vmem [resolvable:$true] %s1602_s25 }
  0x28   : > { %1857 = vmatprep.subr.mxu0 %v714_v21  ;;  %s2176_s7 = scalar_lea.vmem %s2957_s25, 4096  ;;  %p2183_p0 = scmp.lt.s32.totalorder %s2957_s25, %s2181_s9 }
  0x29   : > { %497 = vperm.xlu0 %2045, %v456_v20   ;;  %1858 = vmatpush3.msra.mxu0 %v714_v21  ;;  %p2177_p11 = scmp.ne.s32.totalorder %s2957_s25, %s2176_s7  ;;  %p2184_p1 = scmp.lt.s32.totalorder %s2182_s10, %s2176_s7 }
  0x2a   : > { %273 = vperm.xlu1 %2047, %v230_v18   ;;  %1859 = vmatprep.subr.mxu0 %v713_v23  ;;  %v483_v18 = vadd.s32 32, %v257_v16 }
  0x2b   : > { %1860 = vmatpush3.msra.mxu0 %v713_v23  ;;  %v1002_v23 = vld [vmem:[%s3007_s3 + $0x70] sm:$0xff]  ;;  %p2178_p12 = pnand %p2177_p11, %p2312_p5  ;;  %p2185_p2 = por %p2184_p1, %p2183_p0 }
  0x2c   : > { %1861 = vmatprep.subr.mxu0 %v712_v25 }
  0x2d   : > { %500 = vperm.xlu0 %2045, %v457_v24   ;;  %1862 = vmatpush3.msra.mxu0 %v712_v25  ;;  %p2179_p13 = pneg %p2178_p12 }
  0x2e   : > { %276 = vperm.xlu1 %2047, %v231_v22   ;;  %1863 = vmatprep.subr.mxu0 %v711_v27  ;;  %v1003_v22 = vld [vmem:[%s3007_s3 + $0x78] sm:$0xff] }
  0x2f   : > { %1864 = vmatpush3.msra.mxu0 %v711_v27  ;;  %1919 = vmatprep.subr.mxu1 %v1003_v22  ;;  %v2240_v27 = vmov 0.0   ;;  %p2186_p3 = pnand %p2185_p2, %p2179_p13 }
  0x30   : > { %1865 = vmatprep.subr.mxu0 %v710_v29  ;;  %1920 = vmatpush3.msra.mxu1 %v1003_v22 }
  0x31   : > { %503 = vperm.xlu0 %2045, %v458_v28   ;;  %1866 = vmatpush3.msra.mxu0 %v710_v29 }
  0x32   : > { %279 = vperm.xlu1 %2047, %v232_v26   ;;  %1867 = vmatprep.subr.mxu0 %v709_v31  ;;  %v1001_v26 = vld [vmem:[%s3007_s3 + $0x68] sm:$0xff] }
  0x33   : > { %1868 = vmatpush3.msra.mxu0 %v709_v31  ;;  %1921 = vmatprep.subr.mxu1 %v1002_v23 }
  0x34   : > { %1869 = vmatprep.subr.mxu0 %v708_v33  ;;  %1922 = vmatpush3.msra.mxu1 %v1002_v23 }
  0x35   : > { %506 = vperm.xlu0 %2045, %v459_v32   ;;  %1870 = vmatpush3.msra.mxu0 %v708_v33 }
  0x36   : > { %282 = vperm.xlu1 %2047, %v233_v30   ;;  %v1000_v30 = vld [vmem:[%s3007_s3 + $0x60] sm:$0xff]  ;;  %1923 = vmatprep.subr.mxu1 %v1001_v26 }
  0x37   : > { %1924 = vmatpush3.msra.mxu1 %v1001_v26 }
  0x38   : > { %1925 = vmatprep.subr.mxu1 %v1000_v30 }
  0x39   : > { %509 = vperm.xlu0 %2045, %v460_v35   ;;  %1926 = vmatpush3.msra.mxu1 %v1000_v30 }
  0x3a   : > { %285 = vperm.xlu1 %2047, %v234_v34   ;;  %v999_v34 = vld [vmem:[%s3007_s3 + $0x58] sm:$0xff] }
  0x3b   : > { %1927 = vmatprep.subr.mxu1 %v999_v34 }
  0x3c   : > { %1928 = vmatpush3.msra.mxu1 %v999_v34 }
  0x3d   : > { %512 = vperm.xlu0 %2045, %v461_v37  }
  0x3e   : > { %288 = vperm.xlu1 %2047, %v235_v36  }
  0x41   : > { %515 = vperm.xlu0 %2045, %v462_v39   ;;  %v998_v39 = vld [vmem:[%s3007_s3 + $0x50] sm:$0xff] }
  0x42   : > { %291 = vperm.xlu1 %2047, %v236_v38   ;;  %1929 = vmatprep.subr.mxu1 %v998_v39 }
  0x43   : > { %1930 = vmatpush3.msra.mxu1 %v998_v39 }
  0x45   : > { %518 = vperm.xlu0 %2045, %v463_v41  }
  0x46   : > { %294 = vperm.xlu1 %2047, %v237_v40  }
  0x49   : > { %521 = vperm.xlu0 %2045, %v464_v43   ;;  %v997_v43 = vld [vmem:[%s3007_s3 + $0x48] sm:$0xff] }
  0x4a   : > { %297 = vperm.xlu1 %2047, %v238_v42   ;;  %1931 = vmatprep.subr.mxu1 %v997_v43 }
  0x4b   : > { %1932 = vmatpush3.msra.mxu1 %v997_v43 }
  0x4d   : > { %524 = vperm.xlu0 %2045, %v465_v45  }
  0x4e   : > { %300 = vperm.xlu1 %2047, %v239_v44  }
  0x51   : > { %527 = vperm.xlu0 %2045, %v466_v47  }
  0x52   : > { %303 = vperm.xlu1 %2047, %v240_v46   ;;  %v996_v46 = vld [vmem:[%s3007_s3 + $0x40] sm:$0xff] }
  0x53   : > { %1933 = vmatprep.subr.mxu1 %v996_v46 }
  0x54   : > { %1934 = vmatpush3.msra.mxu1 %v996_v46 }
  0x55   : > { %530 = vperm.xlu0 %2045, %v467_v49  }
  0x56   : > { %306 = vperm.xlu1 %2047, %v241_v48  }
  0x59   : > { %533 = vperm.xlu0 %2045, %v468_v51  }
  0x5a   : > { %309 = vperm.xlu1 %2047, %v242_v50   ;;  %v995_v50 = vld [vmem:[%s3007_s3 + $0x38] sm:$0xff] }
  0x5b   : > { %1935 = vmatprep.subr.mxu1 %v995_v50 }
  0x5c   : > { %1936 = vmatpush3.msra.mxu1 %v995_v50 }
  0x5d   : > { %536 = vperm.xlu0 %2045, %v469_v53   ;;  %v994_v53 = vld [vmem:[%s3007_s3 + $0x30] sm:$0xff] }
  0x5e   : > { %312 = vperm.xlu1 %2047, %v243_v52   ;;  %1937 = vmatprep.subr.mxu1 %v994_v53 }
  0x5f   : > { %1938 = vmatpush3.msra.mxu1 %v994_v53 }
  0x61   : > { %539 = vperm.xlu0 %2045, %v470_v55  }
  0x62   : > { %315 = vperm.xlu1 %2047, %v244_v54  }
  0x65   : > { %542 = vperm.xlu0 %2045, %v471_v57   ;;  %v993_v57 = vld [vmem:[%s3007_s3 + $0x28] sm:$0xff] }
  0x66   : > { %318 = vperm.xlu1 %2047, %v245_v56   ;;  %1939 = vmatprep.subr.mxu1 %v993_v57 }
  0x67   : > { %1940 = vmatpush3.msra.mxu1 %v993_v57 }
  0x69   : > { %545 = vperm.xlu0 %2045, %v472_v59  }
  0x6a   : > { %321 = vperm.xlu1 %2047, %v246_v58  }
  0x6d   : > { %548 = vperm.xlu0 %2045, %v473_v61  }
  0x6e   : > { %324 = vperm.xlu1 %2047, %v247_v60   ;;  %v992_v60 = vld [vmem:[%s3007_s3 + $0x20] sm:$0xff] }
  0x6f   : > { %1941 = vmatprep.subr.mxu1 %v992_v60 }
  0x70   : > { %1942 = vmatpush3.msra.mxu1 %v992_v60 }
  0x71   : > { %551 = vperm.xlu0 %2045, %v474_v63  }
  0x72   : > { %327 = vperm.xlu1 %2047, %v248_v62  }
  0x75   : > { %554 = vperm.xlu0 %2045, %v475_v1  }
  0x76   : > { %330 = vperm.xlu1 %2047, %v249_v0  }
  0x79   : > { %557 = vperm.xlu0 %2045, %v476_v3  }
  0x7a   : > { %333 = vperm.xlu1 %2047, %v250_v2  }
  0x7d   : > { %560 = vperm.xlu0 %2045, %v477_v5  }
  0x7e   : > { %336 = vperm.xlu1 %2047, %v251_v4  }
  0x81   : > { %563 = vperm.xlu0 %2045, %v478_v7  }
  0x82   : > { %339 = vperm.xlu1 %2047, %v252_v6  }
  0x85   : > { %566 = vperm.xlu0 %2045, %v479_v9  }
  0x86   : > { %342 = vperm.xlu1 %2047, %v253_v8  }
  0x89   : > { %569 = vperm.xlu0 %2045, %v480_v11  }
  0x8a   : > { %345 = vperm.xlu1 %2047, %v254_v10  }
  0x8d   : > { %572 = vperm.xlu0 %2045, %v481_v13  }
  0x8e   : > { %348 = vperm.xlu1 %2047, %v255_v12  }
  0x91   : > { %575 = vperm.xlu0 %2045, %v482_v15  }
  0x92   : > { %351 = vperm.xlu1 %2047, %v256_v14   ;;  %v265_v20 = vpop.permute.xlu1 %264 }
  0x93   : > { %v262_v21 = vpop.permute.xlu0 %261  ;;  %vm357_vm2 = vcmp.eq.s32.totalorder %v2408_v19, %v265_v20 }
  0x94   : > { %vm356_vm0 = vcmp.eq.s32.totalorder %v2408_v19, %v262_v21  ;;  %v1672_v35 = vsel %vm357_vm2, 1.0, %v2240_v27 }
  0x95   : > { %578 = vperm.xlu0 %2045, %v483_v18   ;;  %v1671_v28 = vsel %vm356_vm0, 1.0, %v2240_v27 }
  0x96   : > { %354 = vperm.xlu1 %2047, %v257_v16   ;;  %v268_v24 = vpop.permute.xlu1 %267 }
  0x97   : > { %vm358_vm3 = vcmp.eq.s32.totalorder %v2408_v19, %v268_v24 }
  0x98   : > { %v486_v25 = vpop.permute.xlu0 %485  ;;  %v1673_v36 = vsel %vm358_vm3, 1.0, %v2240_v27 }
  0x99   : > { %vm580_vm1 = vcmp.eq.s32.totalorder %v2408_v19, %v486_v25 }
  0x9a   : > { %v1703_v29 = vsel %vm580_vm1, 1.0, %v2240_v27 }
  0x9b   : > { %v676_v31 = vadd.f32 %v1703_v29, %v1671_v28  ;;  %v489_v32 = vpop.permute.xlu1 %488 }
  0x9c   : > { %v492_v33 = vpop.permute.xlu0 %491  ;;  %vm581_vm4 = vcmp.eq.s32.totalorder %v2408_v19, %v489_v32 }
  0x9d   : > { %vm582_vm5 = vcmp.eq.s32.totalorder %v2408_v19, %v492_v33  ;;  %1871 = vmatprep.mubr.f32.mxu0 %v676_v31  ;;  %v1704_v37 = vsel %vm581_vm4, 1.0, %v2240_v27 }
  0x9e   : > { %v1705_v38 = vsel %vm582_vm5, 1.0, %v2240_v27  ;;  %v677_v40 = vadd.f32 %v1704_v37, %v1672_v35 }
  0x9f   : > { %v678_v41 = vadd.f32 %v1705_v38, %v1673_v36 }
  0xa0   : > { %v495_v42 = vpop.permute.xlu0 %494  ;;  %v271_v44 = vpop.permute.xlu1 %270  ;;  %1872 = vmatmul.mubr.f32.vlgmr.msra.gmra.mxu0 %v677_v40 }
  0xa1   : > { %vm583_vm6 = vcmp.eq.s32.totalorder %v2408_v19, %v495_v42  ;;  %vm359_vm7 = vcmp.eq.s32.totalorder %v2408_v19, %v271_v44  ;;  %1874 = vmatprep.mubr.f32.mxu0 %v678_v41 }
  0xa2   : > { %v1706_v45 = vsel %vm583_vm6, 1.0, %v2240_v27  ;;  %v1674_v47 = vsel %vm359_vm7, 1.0, %v2240_v27 }
  0xa3   : > { %v679_v48 = vadd.f32 %v1706_v45, %v1674_v47 }
  0xa4   : > { %v498_v49 = vpop.permute.xlu0 %497 }
  0xa5   : > { %vm584_vm8 = vcmp.eq.s32.totalorder %v2408_v19, %v498_v49  ;;  %v274_v51 = vpop.permute.xlu1 %273  ;;  %1875 = vmatmul.mubr.f32.gmra.mxu0 %v679_v48 }
  0xa6   : > { %v1707_v52 = vsel %vm584_vm8, 1.0, %v2240_v27  ;;  %vm360_vm9 = vcmp.eq.s32.totalorder %v2408_v19, %v274_v51 }
  0xa7   : > { %v1675_v54 = vsel %vm360_vm9, 1.0, %v2240_v27 }
  0xa8   : > { %v680_v55 = vadd.f32 %v1707_v52, %v1675_v54  ;;  %v501_v56 = vpop.permute.xlu0 %500 }
  0xa9   : > { %vm585_vm10 = vcmp.eq.s32.totalorder %v2408_v19, %v501_v56  ;;  %v277_v58 = vpop.permute.xlu1 %276 }
  0xaa   : > { %v1708_v59 = vsel %vm585_vm10, 1.0, %v2240_v27  ;;  %vm361_vm11 = vcmp.eq.s32.totalorder %v2408_v19, %v277_v58  ;;  %1877 = vmatprep.mubr.f32.mxu0 %v680_v55 }
  0xab   : > { %v1676_v61 = vsel %vm361_vm11, 1.0, %v2240_v27 }
  0xac   : > { %v681_v62 = vadd.f32 %v1708_v59, %v1676_v61  ;;  %v504_v63 = vpop.permute.xlu0 %503 }
  0xad   : > { %vm586_vm12 = vcmp.eq.s32.totalorder %v2408_v19, %v504_v63  ;;  %v280_v0 = vpop.permute.xlu1 %279 }
  0xae   : > { %v1709_v1 = vsel %vm586_vm12, 1.0, %v2240_v27  ;;  %vm362_vm13 = vcmp.eq.s32.totalorder %v2408_v19, %v280_v0  ;;  %1878 = vmatmul.mubr.f32.gmra.mxu0 %v681_v62 }
  0xaf   : > { %v1677_v2 = vsel %vm362_vm13, 1.0, %v2240_v27 }
  0xb0   : > { %v682_v3 = vadd.f32 %v1709_v1, %v1677_v2  ;;  %v507_v4 = vpop.permute.xlu0 %506 }
  0xb1   : > { %vm587_vm14 = vcmp.eq.s32.totalorder %v2408_v19, %v507_v4  ;;  %v283_v5 = vpop.permute.xlu1 %282 }
  0xb2   : > { %v1710_v6 = vsel %vm587_vm14, 1.0, %v2240_v27  ;;  %vm363_vm15 = vcmp.eq.s32.totalorder %v2408_v19, %v283_v5  ;;  %1880 = vmatprep.mubr.f32.mxu0 %v682_v3  ;;  %v991_v3 = vld [vmem:[%s3007_s3 + $0x18] sm:$0xff] }
  0xb3   : > { %v1678_v7 = vsel %vm363_vm15, 1.0, %v2240_v27  ;;  %1943 = vmatprep.subr.mxu1 %v991_v3 }
  0xb4   : > { %v683_v8 = vadd.f32 %v1710_v6, %v1678_v7  ;;  %v510_v9 = vpop.permute.xlu0 %509  ;;  %1944 = vmatpush3.msra.mxu1 %v991_v3  ;;  %v990_v6 = vld [vmem:[%s3007_s3 + $0x10] sm:$0xff] }
  0xb5   : > { %vm588_vm0 = vcmp.eq.s32.totalorder %v2408_v19, %v510_v9  ;;  %v286_v10 = vpop.permute.xlu1 %285  ;;  %1945 = vmatprep.subr.mxu1 %v990_v6 }
  0xb6   : > { %v1711_v11 = vsel %vm588_vm0, 1.0, %v2240_v27  ;;  %vm364_vm1 = vcmp.eq.s32.totalorder %v2408_v19, %v286_v10  ;;  %1881 = vmatmul.mubr.f32.gmra.mxu0 %v683_v8  ;;  %1946 = vmatpush3.msra.mxu1 %v990_v6  ;;  %v989_v10 = vld [vmem:[%s3007_s3 + $0x8] sm:$0xff] }
  0xb7   : > { %v1679_v12 = vsel %vm364_vm1, 1.0, %v2240_v27  ;;  %1947 = vmatprep.subr.mxu1 %v989_v10 }
  0xb8   : > { %v684_v13 = vadd.f32 %v1711_v11, %v1679_v12  ;;  %v513_v14 = vpop.permute.xlu0 %512  ;;  %1948 = vmatpush3.msra.mxu1 %v989_v10 }
  0xb9   : > { %vm589_vm2 = vcmp.eq.s32.totalorder %v2408_v19, %v513_v14  ;;  %v289_v15 = vpop.permute.xlu1 %288 }
  0xba   : > { %v1712_v16 = vsel %vm589_vm2, 1.0, %v2240_v27  ;;  %vm365_vm3 = vcmp.eq.s32.totalorder %v2408_v19, %v289_v15  ;;  %1883 = vmatprep.mubr.f32.mxu0 %v684_v13  ;;  %v988_v13 = vld [vmem:[%s3007_s3] sm:$0xff] }
  0xbb   : > { %v1680_v17 = vsel %vm365_vm3, 1.0, %v2240_v27  ;;  %1949 = vmatprep.subr.mxu1 %v988_v13 }
  0xbc   : > { %v685_v18 = vadd.f32 %v1712_v16, %v1680_v17  ;;  %v516_v20 = vpop.permute.xlu0 %515  ;;  %1950 = vmatpush3.msra.mxu1 %v988_v13 }
  0xbd   : > { %vm590_vm4 = vcmp.eq.s32.totalorder %v2408_v19, %v516_v20  ;;  %v292_v21 = vpop.permute.xlu1 %291 }
  0xbe   : > { %v1713_v22 = vsel %vm590_vm4, 1.0, %v2240_v27  ;;  %vm366_vm5 = vcmp.eq.s32.totalorder %v2408_v19, %v292_v21  ;;  %1884 = vmatmul.mubr.f32.gmra.mxu0 %v685_v18 }
  0xbf   : > { %v1681_v23 = vsel %vm366_vm5, 1.0, %v2240_v27 }
  0xc0   : > { %v686_v24 = vadd.f32 %v1713_v22, %v1681_v23  ;;  %v519_v25 = vpop.permute.xlu0 %518 }
  0xc1   : > { %vm591_vm6 = vcmp.eq.s32.totalorder %v2408_v19, %v519_v25  ;;  %v295_v26 = vpop.permute.xlu1 %294 }
  0xc2   : > { %v1714_v28 = vsel %vm591_vm6, 1.0, %v2240_v27  ;;  %vm367_vm7 = vcmp.eq.s32.totalorder %v2408_v19, %v295_v26  ;;  %1886 = vmatprep.mubr.f32.mxu0 %v686_v24 }
  0xc3   : > { %v1682_v29 = vsel %vm367_vm7, 1.0, %v2240_v27 }
  0xc4   : > { %v687_v30 = vadd.f32 %v1714_v28, %v1682_v29  ;;  %v522_v31 = vpop.permute.xlu0 %521 }
  0xc5   : > { %vm592_vm8 = vcmp.eq.s32.totalorder %v2408_v19, %v522_v31  ;;  %v298_v32 = vpop.permute.xlu1 %297 }
  0xc6   : > { %v1715_v33 = vsel %vm592_vm8, 1.0, %v2240_v27  ;;  %vm368_vm9 = vcmp.eq.s32.totalorder %v2408_v19, %v298_v32  ;;  %1887 = vmatmul.mubr.f32.gmra.mxu0 %v687_v30 }
  0xc7   : > { %v1683_v34 = vsel %vm368_vm9, 1.0, %v2240_v27 }
  0xc8   : > { %v688_v35 = vadd.f32 %v1715_v33, %v1683_v34  ;;  %v525_v36 = vpop.permute.xlu0 %524 }
  0xc9   : > { %vm593_vm10 = vcmp.eq.s32.totalorder %v2408_v19, %v525_v36  ;;  %v301_v37 = vpop.permute.xlu1 %300 }
  0xca   : > { %v1716_v38 = vsel %vm593_vm10, 1.0, %v2240_v27  ;;  %vm369_vm11 = vcmp.eq.s32.totalorder %v2408_v19, %v301_v37  ;;  %1889 = vmatprep.mubr.f32.mxu0 %v688_v35 }
  0xcb   : > { %v1684_v39 = vsel %vm369_vm11, 1.0, %v2240_v27 }
  0xcc   : > { %v689_v40 = vadd.f32 %v1716_v38, %v1684_v39  ;;  %v528_v41 = vpop.permute.xlu0 %527 }
  0xcd   : > { %vm594_vm12 = vcmp.eq.s32.totalorder %v2408_v19, %v528_v41  ;;  %v304_v42 = vpop.permute.xlu1 %303 }
  0xce   : > { %v1717_v43 = vsel %vm594_vm12, 1.0, %v2240_v27  ;;  %vm370_vm13 = vcmp.eq.s32.totalorder %v2408_v19, %v304_v42  ;;  %1890 = vmatmul.mubr.f32.gmra.mxu0 %v689_v40 }
  0xcf   : > { %v1685_v44 = vsel %vm370_vm13, 1.0, %v2240_v27 }
  0xd0   : > { %v690_v45 = vadd.f32 %v1717_v43, %v1685_v44  ;;  %v531_v46 = vpop.permute.xlu0 %530 }
  0xd1   : > { %vm595_vm14 = vcmp.eq.s32.totalorder %v2408_v19, %v531_v46  ;;  %v307_v47 = vpop.permute.xlu1 %306 }
  0xd2   : > { %v1718_v48 = vsel %vm595_vm14, 1.0, %v2240_v27  ;;  %vm371_vm15 = vcmp.eq.s32.totalorder %v2408_v19, %v307_v47  ;;  %1892 = vmatprep.mubr.f32.mxu0 %v690_v45 }
  0xd3   : > { %v1686_v49 = vsel %vm371_vm15, 1.0, %v2240_v27 }
  0xd4   : > { %v691_v50 = vadd.f32 %v1718_v48, %v1686_v49  ;;  %v534_v51 = vpop.permute.xlu0 %533 }
  0xd5   : > { %vm596_vm0 = vcmp.eq.s32.totalorder %v2408_v19, %v534_v51  ;;  %v310_v52 = vpop.permute.xlu1 %309 }
  0xd6   : > { %v1719_v53 = vsel %vm596_vm0, 1.0, %v2240_v27  ;;  %vm372_vm1 = vcmp.eq.s32.totalorder %v2408_v19, %v310_v52  ;;  %1893 = vmatmul.mubr.f32.gmra.mxu0 %v691_v50 }
  0xd7   : > { %v1687_v54 = vsel %vm372_vm1, 1.0, %v2240_v27 }
  0xd8   : > { %v692_v55 = vadd.f32 %v1719_v53, %v1687_v54  ;;  %v537_v56 = vpop.permute.xlu0 %536 }
  0xd9   : > { %vm597_vm2 = vcmp.eq.s32.totalorder %v2408_v19, %v537_v56  ;;  %v313_v57 = vpop.permute.xlu1 %312 }
  0xda   : > { %v1720_v58 = vsel %vm597_vm2, 1.0, %v2240_v27  ;;  %vm373_vm3 = vcmp.eq.s32.totalorder %v2408_v19, %v313_v57  ;;  %1895 = vmatprep.mubr.f32.mxu0 %v692_v55 }
  0xdb   : > { %v1688_v59 = vsel %vm373_vm3, 1.0, %v2240_v27 }
  0xdc   : > { %v693_v60 = vadd.f32 %v1720_v58, %v1688_v59  ;;  %v540_v61 = vpop.permute.xlu0 %539 }
  0xdd   : > { %vm598_vm4 = vcmp.eq.s32.totalorder %v2408_v19, %v540_v61  ;;  %v316_v62 = vpop.permute.xlu1 %315 }
  0xde   : > { %v1721_v63 = vsel %vm598_vm4, 1.0, %v2240_v27  ;;  %vm374_vm5 = vcmp.eq.s32.totalorder %v2408_v19, %v316_v62  ;;  %1896 = vmatmul.mubr.f32.gmra.mxu0 %v693_v60 }
  0xdf   : > { %v1689_v0 = vsel %vm374_vm5, 1.0, %v2240_v27 }
  0xe0   : > { %v694_v1 = vadd.f32 %v1721_v63, %v1689_v0  ;;  %v543_v2 = vpop.permute.xlu0 %542 }
  0xe1   : > { %vm599_vm6 = vcmp.eq.s32.totalorder %v2408_v19, %v543_v2  ;;  %v319_v4 = vpop.permute.xlu1 %318 }
  0xe2   : > { %v1722_v5 = vsel %vm599_vm6, 1.0, %v2240_v27  ;;  %vm375_vm7 = vcmp.eq.s32.totalorder %v2408_v19, %v319_v4  ;;  %1898 = vmatprep.mubr.f32.mxu0 %v694_v1 }
  0xe3   : > { %v1690_v7 = vsel %vm375_vm7, 1.0, %v2240_v27 }
  0xe4   : > { %v695_v8 = vadd.f32 %v1722_v5, %v1690_v7  ;;  %v546_v9 = vpop.permute.xlu0 %545 }
  0xe5   : > { %vm600_vm8 = vcmp.eq.s32.totalorder %v2408_v19, %v546_v9  ;;  %v322_v11 = vpop.permute.xlu1 %321  ;;  %v2589_v9 = vld [vmem:[%s3006_s2] ss:$0 sm:$0xff] }
  0xe6   : > { %v1723_v12 = vsel %vm600_vm8, 1.0, %v2240_v27  ;;  %vm376_vm9 = vcmp.eq.s32.totalorder %v2408_v19, %v322_v11  ;;  %1899 = vmatmul.mubr.f32.gmra.mxu0 %v695_v8 }
  0xe7   : > { %v1691_v14 = vsel %vm376_vm9, 1.0, %v2240_v27 }
  0xe8   : > { %v696_v15 = vadd.f32 %v1723_v12, %v1691_v14  ;;  %v549_v16 = vpop.permute.xlu0 %548 }
  0xe9   : > { %vm601_vm10 = vcmp.eq.s32.totalorder %v2408_v19, %v549_v16  ;;  %v325_v17 = vpop.permute.xlu1 %324 }
  0xea   : > { %v1724_v18 = vsel %vm601_vm10, 1.0, %v2240_v27  ;;  %vm377_vm11 = vcmp.eq.s32.totalorder %v2408_v19, %v325_v17  ;;  %1901 = vmatprep.mubr.f32.mxu0 %v696_v15 }
  0xeb   : > { %v1692_v20 = vsel %vm377_vm11, 1.0, %v2240_v27 }
  0xec   : > { %v697_v21 = vadd.f32 %v1724_v18, %v1692_v20  ;;  %v552_v22 = vpop.permute.xlu0 %551 }
  0xed   : > { %vm602_vm12 = vcmp.eq.s32.totalorder %v2408_v19, %v552_v22  ;;  %v328_v23 = vpop.permute.xlu1 %327 }
  0xee   : > { %v1725_v24 = vsel %vm602_vm12, 1.0, %v2240_v27  ;;  %vm378_vm13 = vcmp.eq.s32.totalorder %v2408_v19, %v328_v23  ;;  %1902 = vmatmul.mubr.f32.gmra.mxu0 %v697_v21 }
  0xef   : > { %v1693_v25 = vsel %vm378_vm13, 1.0, %v2240_v27 }
  0xf0   : > { %v698_v26 = vadd.f32 %v1725_v24, %v1693_v25  ;;  %v555_v28 = vpop.permute.xlu0 %554 }
  0xf1   : > { %vm603_vm14 = vcmp.eq.s32.totalorder %v2408_v19, %v555_v28  ;;  %v331_v29 = vpop.permute.xlu1 %330 }
  0xf2   : > { %v1726_v30 = vsel %vm603_vm14, 1.0, %v2240_v27  ;;  %vm379_vm15 = vcmp.eq.s32.totalorder %v2408_v19, %v331_v29  ;;  %1904 = vmatprep.mubr.f32.mxu0 %v698_v26 }
  0xf3   : > { %v1694_v31 = vsel %vm379_vm15, 1.0, %v2240_v27 }
  0xf4   : > { %v699_v32 = vadd.f32 %v1726_v30, %v1694_v31  ;;  %v558_v33 = vpop.permute.xlu0 %557 }
  0xf5   : > { %vm604_vm0 = vcmp.eq.s32.totalorder %v2408_v19, %v558_v33  ;;  %v334_v34 = vpop.permute.xlu1 %333 }
  0xf6   : > { %v1727_v35 = vsel %vm604_vm0, 1.0, %v2240_v27  ;;  %vm380_vm1 = vcmp.eq.s32.totalorder %v2408_v19, %v334_v34  ;;  %1905 = vmatmul.mubr.f32.gmra.mxu0 %v699_v32 }
  0xf7   : > { %v1695_v36 = vsel %vm380_vm1, 1.0, %v2240_v27 }
  0xf8   : > { %v700_v37 = vadd.f32 %v1727_v35, %v1695_v36  ;;  %v561_v38 = vpop.permute.xlu0 %560 }
  0xf9   : > { %vm605_vm2 = vcmp.eq.s32.totalorder %v2408_v19, %v561_v38  ;;  %v337_v39 = vpop.permute.xlu1 %336 }
  0xfa   : > { %v1728_v40 = vsel %vm605_vm2, 1.0, %v2240_v27  ;;  %vm381_vm3 = vcmp.eq.s32.totalorder %v2408_v19, %v337_v39  ;;  %1907 = vmatprep.mubr.f32.mxu0 %v700_v37 }
  0xfb   : > { %v1696_v41 = vsel %vm381_vm3, 1.0, %v2240_v27 }
  0xfc   : > { %v701_v42 = vadd.f32 %v1728_v40, %v1696_v41  ;;  %v564_v43 = vpop.permute.xlu0 %563 }
  0xfd   : > { %vm606_vm4 = vcmp.eq.s32.totalorder %v2408_v19, %v564_v43  ;;  %v340_v44 = vpop.permute.xlu1 %339 }
  0xfe   : > { %v1729_v45 = vsel %vm606_vm4, 1.0, %v2240_v27  ;;  %vm382_vm5 = vcmp.eq.s32.totalorder %v2408_v19, %v340_v44  ;;  %1908 = vmatmul.mubr.f32.gmra.mxu0 %v701_v42 }
  0xff   : > { %v1697_v46 = vsel %vm382_vm5, 1.0, %v2240_v27 }
 0x100   : > { %v702_v47 = vadd.f32 %v1729_v45, %v1697_v46  ;;  %v567_v48 = vpop.permute.xlu0 %566 }
 0x101   : > { %vm607_vm6 = vcmp.eq.s32.totalorder %v2408_v19, %v567_v48  ;;  %v343_v49 = vpop.permute.xlu1 %342 }
 0x102   : > { %v1730_v50 = vsel %vm607_vm6, 1.0, %v2240_v27  ;;  %vm383_vm7 = vcmp.eq.s32.totalorder %v2408_v19, %v343_v49  ;;  %1910 = vmatprep.mubr.f32.mxu0 %v702_v47 }
 0x103   : > { %v1698_v51 = vsel %vm383_vm7, 1.0, %v2240_v27 }
 0x104   : > { %v703_v52 = vadd.f32 %v1730_v50, %v1698_v51  ;;  %v570_v53 = vpop.permute.xlu0 %569 }
 0x105   : > { %vm608_vm8 = vcmp.eq.s32.totalorder %v2408_v19, %v570_v53  ;;  %v346_v54 = vpop.permute.xlu1 %345 }
 0x106   : > { %v1731_v55 = vsel %vm608_vm8, 1.0, %v2240_v27  ;;  %vm384_vm9 = vcmp.eq.s32.totalorder %v2408_v19, %v346_v54  ;;  %1911 = vmatmul.mubr.f32.gmra.mxu0 %v703_v52 }
 0x107   : > { %v1699_v56 = vsel %vm384_vm9, 1.0, %v2240_v27 }
 0x108   : > { %v704_v57 = vadd.f32 %v1731_v55, %v1699_v56  ;;  %v573_v58 = vpop.permute.xlu0 %572 }
 0x109   : > { %vm609_vm10 = vcmp.eq.s32.totalorder %v2408_v19, %v573_v58  ;;  %v349_v59 = vpop.permute.xlu1 %348 }
 0x10a   : > { %v1732_v60 = vsel %vm609_vm10, 1.0, %v2240_v27  ;;  %vm385_vm11 = vcmp.eq.s32.totalorder %v2408_v19, %v349_v59  ;;  %1913 = vmatprep.mubr.f32.mxu0 %v704_v57 }
 0x10b   : > { %v1700_v61 = vsel %vm385_vm11, 1.0, %v2240_v27 }
 0x10c   : > { %v705_v62 = vadd.f32 %v1732_v60, %v1700_v61  ;;  %v576_v63 = vpop.permute.xlu0 %575 }
 0x10d   : > { %vm610_vm12 = vcmp.eq.s32.totalorder %v2408_v19, %v576_v63  ;;  %v352_v0 = vpop.permute.xlu1 %351 }
 0x10e   : > { %v1733_v1 = vsel %vm610_vm12, 1.0, %v2240_v27  ;;  %vm386_vm13 = vcmp.eq.s32.totalorder %v2408_v19, %v352_v0  ;;  %1914 = vmatmul.mubr.f32.gmra.mxu0 %v705_v62 }
 0x10f   : > { %v1701_v2 = vsel %vm386_vm13, 1.0, %v2240_v27 }
 0x110   : > { %v706_v3 = vadd.f32 %v1733_v1, %v1701_v2  ;;  %v579_v4 = vpop.permute.xlu0 %578 }
 0x111   : > { %vm611_vm14 = vcmp.eq.s32.totalorder %v2408_v19, %v579_v4  ;;  %v355_v5 = vpop.permute.xlu1 %354 }
 0x112   : > { %v1734_v6 = vsel %vm611_vm14, 1.0, %v2240_v27  ;;  %vm387_vm15 = vcmp.eq.s32.totalorder %v2408_v19, %v355_v5  ;;  %1916 = vmatprep.mubr.f32.mxu0 %v706_v3 }
 0x113   : > { %v1702_v7 = vsel %vm387_vm15, 1.0, %v2240_v27 }
 0x114   : > { %v707_v8 = vadd.f32 %v1734_v6, %v1702_v7 }
 0x116   : > { %1917 = vmatmul.mubr.f32.gmra.mxu0 %v707_v8 }
 0x160   : > { %v1873_v10 = vpop.f32.mrf.mxu0 }
 0x161   : > { %v803_v11 = vadd.f32 %v1873_v10, %v2589_v9 }
 0x162   : > { %v797_v12 = vpop.f32.mrf.mxu0 }
 0x163   : > { %v798_v13 = vadd.f32 %v2589_v9, %v797_v12  ;;  %v957_v16 = vmax.f32 %v803_v11, 0.0 }
 0x165   : > { %v1876_v14 = vpop.f32.mrf.mxu0  ;;  %v956_v15 = vmax.f32 %v798_v13, 0.0 }
 0x166   : > { %v813_v19 = vadd.f32 %v1876_v14, %v2589_v9 }
 0x167   : > { %v807_v17 = vpop.f32.mrf.mxu0  ;;  %1951 = vmatprep.mubr.f32.mxu1 %v956_v15 }
 0x168   : > { %v808_v27 = vadd.f32 %v2589_v9, %v807_v17  ;;  %1952 = vmatmul.mubr.f32.vlgmr.msra.gmra.mxu1 %v957_v16  ;;  %v959_v20 = vmax.f32 %v813_v19, 0.0 }
 0x16a   : > { %v958_v18 = vmax.f32 %v808_v27, 0.0 }
 0x16c   : > { %1954 = vmatprep.mubr.f32.mxu1 %v958_v18 }
 0x16d   : > { %1955 = vmatmul.mubr.f32.gmra.mxu1 %v959_v20 }
 0x16e   : > { %v1879_v21 = vpop.f32.mrf.mxu0 }
 0x16f   : > { %v823_v22 = vadd.f32 %v1879_v21, %v2589_v9 }
 0x170   : > { %v817_v23 = vpop.f32.mrf.mxu0 }
 0x171   : > { %v818_v24 = vadd.f32 %v2589_v9, %v817_v23  ;;  %v961_v26 = vmax.f32 %v823_v22, 0.0 }
 0x173   : > { %v960_v25 = vmax.f32 %v818_v24, 0.0 }
 0x175   : > { %1957 = vmatprep.mubr.f32.mxu1 %v960_v25 }
 0x176   : > { %v1882_v28 = vpop.f32.mrf.mxu0  ;;  %1958 = vmatmul.mubr.f32.gmra.mxu1 %v961_v26 }
 0x177   : > { %v833_v29 = vadd.f32 %v1882_v28, %v2589_v9 }
 0x178   : > { %v827_v30 = vpop.f32.mrf.mxu0 }
 0x179   : > { %v828_v31 = vadd.f32 %v2589_v9, %v827_v30  ;;  %v963_v33 = vmax.f32 %v833_v29, 0.0 }
 0x17b   : > { %v962_v32 = vmax.f32 %v828_v31, 0.0 }
 0x17d   : > { %1960 = vmatprep.mubr.f32.mxu1 %v962_v32 }
 0x17e   : > { %v1885_v34 = vpop.f32.mrf.mxu0  ;;  %1961 = vmatmul.mubr.f32.gmra.mxu1 %v963_v33 }
 0x17f   : > { %v843_v35 = vadd.f32 %v1885_v34, %v2589_v9 }
 0x180   : > { %v837_v36 = vpop.f32.mrf.mxu0 }
 0x181   : > { %v838_v37 = vadd.f32 %v2589_v9, %v837_v36  ;;  %v965_v39 = vmax.f32 %v843_v35, 0.0 }
 0x183   : > { %v964_v38 = vmax.f32 %v838_v37, 0.0 }
 0x185   : > { %1963 = vmatprep.mubr.f32.mxu1 %v964_v38 }
 0x186   : > { %v1888_v40 = vpop.f32.mrf.mxu0  ;;  %1964 = vmatmul.mubr.f32.gmra.mxu1 %v965_v39 }
 0x187   : > { %v853_v41 = vadd.f32 %v1888_v40, %v2589_v9 }
 0x188   : > { %v847_v42 = vpop.f32.mrf.mxu0 }
 0x189   : > { %v848_v43 = vadd.f32 %v2589_v9, %v847_v42  ;;  %v967_v45 = vmax.f32 %v853_v41, 0.0 }
 0x18b   : > { %v966_v44 = vmax.f32 %v848_v43, 0.0  ;;  %v2626_v43 = vld [vmem:[%s3008_s4] ss:$0 sm:$0xff] }
 0x18d   : > { %1966 = vmatprep.mubr.f32.mxu1 %v966_v44 }
 0x18e   : > { %v1891_v46 = vpop.f32.mrf.mxu0  ;;  %1967 = vmatmul.mubr.f32.gmra.mxu1 %v967_v45 }
 0x18f   : > { %v863_v47 = vadd.f32 %v1891_v46, %v2589_v9 }
 0x190   : > { %v857_v48 = vpop.f32.mrf.mxu0 }
 0x191   : > { %v858_v49 = vadd.f32 %v2589_v9, %v857_v48  ;;  %v969_v51 = vmax.f32 %v863_v47, 0.0 }
 0x193   : > { %v968_v50 = vmax.f32 %v858_v49, 0.0 }
 0x195   : > { %1969 = vmatprep.mubr.f32.mxu1 %v968_v50 }
 0x196   : > { %v1894_v52 = vpop.f32.mrf.mxu0  ;;  %1970 = vmatmul.mubr.f32.gmra.mxu1 %v969_v51 }
 0x197   : > { %v873_v53 = vadd.f32 %v1894_v52, %v2589_v9 }
 0x198   : > { %v867_v54 = vpop.f32.mrf.mxu0 }
 0x199   : > { %v868_v55 = vadd.f32 %v2589_v9, %v867_v54  ;;  %v971_v57 = vmax.f32 %v873_v53, 0.0 }
 0x19b   : > { %v970_v56 = vmax.f32 %v868_v55, 0.0 }
 0x19d   : > { %1972 = vmatprep.mubr.f32.mxu1 %v970_v56 }
 0x19e   : > { %v1897_v58 = vpop.f32.mrf.mxu0  ;;  %1973 = vmatmul.mubr.f32.gmra.mxu1 %v971_v57 }
 0x19f   : > { %v883_v59 = vadd.f32 %v1897_v58, %v2589_v9 }
 0x1a0   : > { %v877_v60 = vpop.f32.mrf.mxu0 }
 0x1a1   : > { %v878_v61 = vadd.f32 %v2589_v9, %v877_v60  ;;  %v973_v63 = vmax.f32 %v883_v59, 0.0 }
 0x1a3   : > { %v972_v62 = vmax.f32 %v878_v61, 0.0 }
 0x1a5   : > { %1975 = vmatprep.mubr.f32.mxu1 %v972_v62 }
 0x1a6   : > { %v1900_v0 = vpop.f32.mrf.mxu0  ;;  %1976 = vmatmul.mubr.f32.gmra.mxu1 %v973_v63 }
 0x1a7   : > { %v893_v1 = vadd.f32 %v1900_v0, %v2589_v9 }
 0x1a8   : > { %v887_v2 = vpop.f32.mrf.mxu0 }
 0x1a9   : > { %v888_v3 = vadd.f32 %v2589_v9, %v887_v2  ;;  %v975_v5 = vmax.f32 %v893_v1, 0.0 }
 0x1ab   : > { %v974_v4 = vmax.f32 %v888_v3, 0.0 }
 0x1ad   : > { %1978 = vmatprep.mubr.f32.mxu1 %v974_v4 }
 0x1ae   : > { %v1903_v6 = vpop.f32.mrf.mxu0  ;;  %1979 = vmatmul.mubr.f32.gmra.mxu1 %v975_v5 }
 0x1af   : > { %v903_v7 = vadd.f32 %v1903_v6, %v2589_v9 }
 0x1b0   : > { %v897_v8 = vpop.f32.mrf.mxu0 }
 0x1b1   : > { %v898_v10 = vadd.f32 %v2589_v9, %v897_v8  ;;  %v977_v12 = vmax.f32 %v903_v7, 0.0 }
 0x1b3   : > { %v976_v11 = vmax.f32 %v898_v10, 0.0 }
 0x1b5   : > { %1981 = vmatprep.mubr.f32.mxu1 %v976_v11 }
 0x1b6   : > { %v1906_v13 = vpop.f32.mrf.mxu0  ;;  %1982 = vmatmul.mubr.f32.gmra.mxu1 %v977_v12 }
 0x1b7   : > { %v913_v14 = vadd.f32 %v1906_v13, %v2589_v9 }
 0x1b8   : > { %v907_v15 = vpop.f32.mrf.mxu0 }
 0x1b9   : > { %v908_v16 = vadd.f32 %v2589_v9, %v907_v15  ;;  %v979_v17 = vmax.f32 %v913_v14, 0.0 }
 0x1bb   : > { %v978_v19 = vmax.f32 %v908_v16, 0.0 }
 0x1bd   : > { %1984 = vmatprep.mubr.f32.mxu1 %v978_v19 }
 0x1be   : > { %v1909_v27 = vpop.f32.mrf.mxu0  ;;  %1985 = vmatmul.mubr.f32.gmra.mxu1 %v979_v17 }
 0x1bf   : > { %v923_v18 = vadd.f32 %v1909_v27, %v2589_v9 }
 0x1c0   : > { %v917_v20 = vpop.f32.mrf.mxu0 }
 0x1c1   : > { %v918_v21 = vadd.f32 %v2589_v9, %v917_v20  ;;  %v981_v23 = vmax.f32 %v923_v18, 0.0 }
 0x1c3   : > { %v980_v22 = vmax.f32 %v918_v21, 0.0 }
 0x1c5   : > { %1987 = vmatprep.mubr.f32.mxu1 %v980_v22 }
 0x1c6   : > { %v1912_v24 = vpop.f32.mrf.mxu0  ;;  %1988 = vmatmul.mubr.f32.gmra.mxu1 %v981_v23 }
 0x1c7   : > { %v933_v25 = vadd.f32 %v1912_v24, %v2589_v9 }
 0x1c8   : > { %v927_v26 = vpop.f32.mrf.mxu0 }
 0x1c9   : > { %v928_v28 = vadd.f32 %v2589_v9, %v927_v26  ;;  %v983_v30 = vmax.f32 %v933_v25, 0.0 }
 0x1cb   : > { %v982_v29 = vmax.f32 %v928_v28, 0.0 }
 0x1cd   : > { %1990 = vmatprep.mubr.f32.mxu1 %v982_v29 }
 0x1ce   : > { %v1915_v31 = vpop.f32.mrf.mxu0  ;;  %1991 = vmatmul.mubr.f32.gmra.mxu1 %v983_v30 }
 0x1cf   : > { %v943_v32 = vadd.f32 %v1915_v31, %v2589_v9 }
 0x1d0   : > { %v937_v33 = vpop.f32.mrf.mxu0 }
 0x1d1   : > { %v938_v34 = vadd.f32 %v2589_v9, %v937_v33  ;;  %v985_v36 = vmax.f32 %v943_v32, 0.0 }
 0x1d3   : > { %v984_v35 = vmax.f32 %v938_v34, 0.0 }
 0x1d5   : > { %1993 = vmatprep.mubr.f32.mxu1 %v984_v35 }
 0x1d6   : > { %v1918_v37 = vpop.f32.mrf.mxu0  ;;  %1994 = vmatmul.mubr.f32.gmra.mxu1 %v985_v36 }
 0x1d7   : > { %v953_v38 = vadd.f32 %v1918_v37, %v2589_v9 }
 0x1d8   : > { %v947_v39 = vpop.f32.mrf.mxu0 }
 0x1d9   : > { %v948_v40 = vadd.f32 %v2589_v9, %v947_v39  ;;  %v987_v42 = vmax.f32 %v953_v38, 0.0 }
 0x1db   : > { %v986_v41 = vmax.f32 %v948_v40, 0.0 }
 0x1dd   : > { %1996 = vmatprep.mubr.f32.mxu1 %v986_v41 }
 0x1de   : > { %1997 = vmatmul.mubr.f32.gmra.mxu1 %v987_v42 }
 0x228   : > { %v1953_v44 = vpop.f32.mrf.mxu1 }
 0x229   : > { %v2629_v45 = vadd.f32 %v1953_v44, %v2626_v43 }
 0x22a   : > { %v1077_v46 = vpop.f32.mrf.mxu1 }
 0x22b   : > { %v2632_v47 = vadd.f32 %v2626_v43, %v1077_v46  ;;  %1238 = vmax.xlane.f32.xlu0 %v2629_v45 }
 0x22d   : > { %1236 = vmax.xlane.f32.xlu1 %v2632_v47  ;;  %v1956_v9 = vpop.f32.mrf.mxu1 }
 0x22e   : > { %v2637_v48 = vadd.f32 %v1956_v9, %v2626_v43 }
 0x22f   : > { %v1087_v49 = vpop.f32.mrf.mxu1 }
 0x230   : > { %v2640_v50 = vadd.f32 %v2626_v43, %v1087_v49 }
 0x231   : > { %1242 = vmax.xlane.f32.xlu1 %v2637_v48 }
 0x232   : > { %1240 = vmax.xlane.f32.xlu0 %v2640_v50 }
 0x236   : > { %v1959_v51 = vpop.f32.mrf.mxu1 }
 0x237   : > { %v2645_v52 = vadd.f32 %v1959_v51, %v2626_v43 }
 0x238   : > { %v1097_v53 = vpop.f32.mrf.mxu1 }
 0x239   : > { %v2648_v54 = vadd.f32 %v2626_v43, %v1097_v53  ;;  %1246 = vmax.xlane.f32.xlu1 %v2645_v52 }
 0x23b   : > { %1244 = vmax.xlane.f32.xlu0 %v2648_v54 }
 0x23e   : > { %v1962_v55 = vpop.f32.mrf.mxu1 }
 0x23f   : > { %v2653_v56 = vadd.f32 %v1962_v55, %v2626_v43 }
 0x240   : > { %v1107_v57 = vpop.f32.mrf.mxu1 }
 0x241   : > { %v2656_v58 = vadd.f32 %v2626_v43, %v1107_v57  ;;  %1250 = vmax.xlane.f32.xlu1 %v2653_v56 }
 0x243   : > { %1248 = vmax.xlane.f32.xlu0 %v2656_v58 }
 0x246   : > { %v1965_v59 = vpop.f32.mrf.mxu1 }
 0x247   : > { %v2661_v60 = vadd.f32 %v1965_v59, %v2626_v43 }
 0x248   : > { %v1117_v61 = vpop.f32.mrf.mxu1 }
 0x249   : > { %v2664_v62 = vadd.f32 %v2626_v43, %v1117_v61  ;;  %1254 = vmax.xlane.f32.xlu1 %v2661_v60 }
 0x24b   : > { %1252 = vmax.xlane.f32.xlu0 %v2664_v62 }
 0x24e   : > { %v1968_v63 = vpop.f32.mrf.mxu1 }
 0x24f   : > { %v2669_v0 = vadd.f32 %v1968_v63, %v2626_v43 }
 0x250   : > { %v1127_v1 = vpop.f32.mrf.mxu1 }
 0x251   : > { %v2672_v2 = vadd.f32 %v2626_v43, %v1127_v1  ;;  %1258 = vmax.xlane.f32.xlu1 %v2669_v0 }
 0x253   : > { %1256 = vmax.xlane.f32.xlu0 %v2672_v2 }
 0x256   : > { %v1971_v3 = vpop.f32.mrf.mxu1 }
 0x257   : > { %v2677_v4 = vadd.f32 %v1971_v3, %v2626_v43 }
 0x258   : > { %v1137_v5 = vpop.f32.mrf.mxu1 }
 0x259   : > { %v2680_v6 = vadd.f32 %v2626_v43, %v1137_v5  ;;  %1262 = vmax.xlane.f32.xlu1 %v2677_v4 }
 0x25b   : > { %1260 = vmax.xlane.f32.xlu0 %v2680_v6 }
 0x25e   : > { %v1974_v7 = vpop.f32.mrf.mxu1 }
 0x25f   : > { %v2685_v8 = vadd.f32 %v1974_v7, %v2626_v43 }
 0x260   : > { %v1147_v10 = vpop.f32.mrf.mxu1 }
 0x261   : > { %v2688_v11 = vadd.f32 %v2626_v43, %v1147_v10  ;;  %1266 = vmax.xlane.f32.xlu1 %v2685_v8 }
 0x263   : > { %1264 = vmax.xlane.f32.xlu0 %v2688_v11 }
 0x266   : > { %v1977_v12 = vpop.f32.mrf.mxu1 }
 0x267   : > { %v2693_v13 = vadd.f32 %v1977_v12, %v2626_v43 }
 0x268   : > { %v1157_v14 = vpop.f32.mrf.mxu1 }
 0x269   : > { %v2696_v15 = vadd.f32 %v2626_v43, %v1157_v14  ;;  %1270 = vmax.xlane.f32.xlu1 %v2693_v13 }
 0x26b   : > { %1268 = vmax.xlane.f32.xlu0 %v2696_v15 }
 0x26e   : > { %v1980_v16 = vpop.f32.mrf.mxu1 }
 0x26f   : > { %v2701_v19 = vadd.f32 %v1980_v16, %v2626_v43 }
 0x270   : > { %v1167_v17 = vpop.f32.mrf.mxu1 }
 0x271   : > { %v2704_v27 = vadd.f32 %v2626_v43, %v1167_v17  ;;  %1274 = vmax.xlane.f32.xlu1 %v2701_v19 }
 0x273   : > { %1272 = vmax.xlane.f32.xlu0 %v2704_v27 }
 0x276   : > { %v1983_v18 = vpop.f32.mrf.mxu1 }
 0x277   : > { %v2709_v20 = vadd.f32 %v1983_v18, %v2626_v43 }
 0x278   : > { %v1177_v21 = vpop.f32.mrf.mxu1 }
 0x279   : > { %v2712_v22 = vadd.f32 %v2626_v43, %v1177_v21  ;;  %1278 = vmax.xlane.f32.xlu1 %v2709_v20 }
 0x27b   : > { %1276 = vmax.xlane.f32.xlu0 %v2712_v22 }
 0x27e   : > { %v1986_v23 = vpop.f32.mrf.mxu1 }
 0x27f   : > { %v2717_v24 = vadd.f32 %v1986_v23, %v2626_v43 }
 0x280   : > { %v1187_v25 = vpop.f32.mrf.mxu1 }
 0x281   : > { %v2720_v26 = vadd.f32 %v2626_v43, %v1187_v25  ;;  %1282 = vmax.xlane.f32.xlu1 %v2717_v24 }
 0x283   : > { %1280 = vmax.xlane.f32.xlu0 %v2720_v26 }
 0x286   : > { %v1989_v28 = vpop.f32.mrf.mxu1 }
 0x287   : > { %v2725_v29 = vadd.f32 %v1989_v28, %v2626_v43 }
 0x288   : > { %v1197_v30 = vpop.f32.mrf.mxu1 }
 0x289   : > { %v2728_v31 = vadd.f32 %v2626_v43, %v1197_v30  ;;  %1286 = vmax.xlane.f32.xlu1 %v2725_v29 }
 0x28b   : > { %1284 = vmax.xlane.f32.xlu0 %v2728_v31 }
 0x28e   : > { %v1992_v32 = vpop.f32.mrf.mxu1 }
 0x28f   : > { %v2733_v33 = vadd.f32 %v1992_v32, %v2626_v43 }
 0x290   : > { %v1207_v34 = vpop.f32.mrf.mxu1 }
 0x291   : > { %v2736_v35 = vadd.f32 %v2626_v43, %v1207_v34  ;;  %1290 = vmax.xlane.f32.xlu1 %v2733_v33 }
 0x293   : > { %1288 = vmax.xlane.f32.xlu0 %v2736_v35 }
 0x296   : > { %v1995_v36 = vpop.f32.mrf.mxu1 }
 0x297   : > { %v2741_v37 = vadd.f32 %v1995_v36, %v2626_v43 }
 0x298   : > { %v1217_v38 = vpop.f32.mrf.mxu1 }
 0x299   : > { %v2744_v39 = vadd.f32 %v2626_v43, %v1217_v38  ;;  %1294 = vmax.xlane.f32.xlu1 %v2741_v37 }
 0x29b   : > { %1292 = vmax.xlane.f32.xlu0 %v2744_v39 }
 0x29e   : > { %v1998_v40 = vpop.f32.mrf.mxu1 }
 0x29f   : > { %v2749_v41 = vadd.f32 %v1998_v40, %v2626_v43 }
 0x2a0   : > { %v1227_v42 = vpop.f32.mrf.mxu1 }
 0x2a1   : > { %v2752_v44 = vadd.f32 %v2626_v43, %v1227_v42  ;;  %1298 = vmax.xlane.f32.xlu1 %v2749_v41 }
 0x2a3   : > { %1296 = vmax.xlane.f32.xlu0 %v2752_v44 }
 0x2b4   : > { %v1239_v46 = vpop.xlane.xlu0 %1238 }
 0x2b5   : > { %v2757_v9 = vsub.f32 %v2629_v45, %v1239_v46 }
 0x2b6   : > { %v1237_v49 = vpop.xlane.xlu1 %1236 }
 0x2b7   : > { %v1334_v51 = vmul.f32 1.442695, %v2757_v9  ;;  %v2761_v53 = vsub.f32 %v2632_v47, %v1237_v49 }
 0x2b9   : > { %2048 = vpow2.f32 %v1334_v51  ;;  %v1332_v55 = vmul.f32 1.442695, %v2761_v53 }
 0x2ba   : > { %v1243_v57 = vpop.xlane.xlu1 %1242 }
 0x2bb   : > { %2050 = vpow2.f32 %v1332_v55  ;;  %v2765_v43 = vsub.f32 %v2637_v48, %v1243_v57  ;;  %v1241_v59 = vpop.xlane.xlu0 %1240 }
 0x2bc   : > { %v2768_v61 = vsub.f32 %v2640_v50, %v1241_v59 }
 0x2bd   : > { %v1338_v45 = vmul.f32 1.442695, %v2765_v43 }
 0x2be   : > { %v1336_v63 = vmul.f32 1.442695, %v2768_v61 }
 0x2bf   : > { %2052 = vpow2.f32 %v1338_v45 }
 0x2c0   : > { %2054 = vpow2.f32 %v1336_v63 }
 0x2c2   : > { %v1247_v47 = vpop.xlane.xlu1 %1246 }
 0x2c3   : > { %v2773_v1 = vsub.f32 %v2645_v52, %v1247_v47 }
 0x2c4   : > { %v1245_v3 = vpop.xlane.xlu0 %1244 }
 0x2c5   : > { %v1342_v5 = vmul.f32 1.442695, %v2773_v1  ;;  %v2777_v48 = vsub.f32 %v2648_v54, %v1245_v3 }
 0x2c6   : > { %v2049_v7 = vpop.eup %2048 }
 0x2c7   : > { %2056 = vpow2.f32 %v1342_v5  ;;  %v1340_v50 = vmul.f32 1.442695, %v2777_v48  ;;  %1398 = vadd.xlane.f32.xlu1 %v2049_v7 }
 0x2c8   : > { %v2051_v10 = vpop.eup %2050 }
 0x2c9   : > { %2058 = vpow2.f32 %v1340_v50  ;;  %1396 = vadd.xlane.f32.xlu0 %v2051_v10 }
 0x2ca   : > { %v1251_v12 = vpop.xlane.xlu1 %1250 }
 0x2cb   : > { %v2781_v14 = vsub.f32 %v2653_v56, %v1251_v12 }
 0x2cc   : > { %v1249_v52 = vpop.xlane.xlu0 %1248  ;;  %v2053_v16 = vpop.eup %2052 }
 0x2cd   : > { %v1346_v17 = vmul.f32 1.442695, %v2781_v14  ;;  %v2785_v18 = vsub.f32 %v2656_v58, %v1249_v52  ;;  %v2055_v54 = vpop.eup %2054  ;;  %1402 = vadd.xlane.f32.xlu1 %v2053_v16 }
 0x2ce   : > { %1400 = vadd.xlane.f32.xlu0 %v2055_v54 }
 0x2cf   : > { %2060 = vpow2.f32 %v1346_v17  ;;  %v1344_v21 = vmul.f32 1.442695, %v2785_v18 }
 0x2d1   : > { %2062 = vpow2.f32 %v1344_v21 }
 0x2d2   : > { %v1255_v23 = vpop.xlane.xlu1 %1254 }
 0x2d3   : > { %v2789_v25 = vsub.f32 %v2661_v60, %v1255_v23 }
 0x2d4   : > { %v2057_v56 = vpop.eup %2056  ;;  %v1253_v28 = vpop.xlane.xlu0 %1252 }
 0x2d5   : > { %v1350_v30 = vmul.f32 1.442695, %v2789_v25  ;;  %v2793_v32 = vsub.f32 %v2664_v62, %v1253_v28  ;;  %1406 = vadd.xlane.f32.xlu1 %v2057_v56 }
 0x2d6   : > { %v2059_v58 = vpop.eup %2058 }
 0x2d7   : > { %2064 = vpow2.f32 %v1350_v30  ;;  %v1348_v34 = vmul.f32 1.442695, %v2793_v32  ;;  %1404 = vadd.xlane.f32.xlu0 %v2059_v58 }
 0x2d9   : > { %2066 = vpow2.f32 %v1348_v34 }
 0x2da   : > { %v1259_v36 = vpop.xlane.xlu1 %1258 }
 0x2db   : > { %v2797_v38 = vsub.f32 %v2669_v0, %v1259_v36 }
 0x2dc   : > { %v2061_v60 = vpop.eup %2060  ;;  %v1257_v40 = vpop.xlane.xlu0 %1256 }
 0x2dd   : > { %v1354_v42 = vmul.f32 1.442695, %v2797_v38  ;;  %v2801_v46 = vsub.f32 %v2672_v2, %v1257_v40  ;;  %1410 = vadd.xlane.f32.xlu1 %v2061_v60 }
 0x2de   : > { %v2063_v62 = vpop.eup %2062 }
 0x2df   : > { %2068 = vpow2.f32 %v1354_v42  ;;  %v1352_v49 = vmul.f32 1.442695, %v2801_v46  ;;  %1408 = vadd.xlane.f32.xlu0 %v2063_v62 }
 0x2e1   : > { %2070 = vpow2.f32 %v1352_v49 }
 0x2e2   : > { %v1263_v51 = vpop.xlane.xlu1 %1262 }
 0x2e3   : > { %v2805_v55 = vsub.f32 %v2677_v4, %v1263_v51 }
 0x2e4   : > { %v2065_v0 = vpop.eup %2064  ;;  %v1261_v57 = vpop.xlane.xlu0 %1260 }
 0x2e5   : > { %v1358_v59 = vmul.f32 1.442695, %v2805_v55  ;;  %v2809_v45 = vsub.f32 %v2680_v6, %v1261_v57  ;;  %1414 = vadd.xlane.f32.xlu1 %v2065_v0 }
 0x2e6   : > { %v2067_v2 = vpop.eup %2066 }
 0x2e7   : > { %2072 = vpow2.f32 %v1358_v59  ;;  %v1356_v63 = vmul.f32 1.442695, %v2809_v45  ;;  %1412 = vadd.xlane.f32.xlu0 %v2067_v2 }
 0x2e9   : > { %2074 = vpow2.f32 %v1356_v63 }
 0x2ea   : > { %v1267_v47 = vpop.xlane.xlu1 %1266 }
 0x2eb   : > { %v2813_v3 = vsub.f32 %v2685_v8, %v1267_v47 }
 0x2ec   : > { %v2069_v4 = vpop.eup %2068  ;;  %v1265_v5 = vpop.xlane.xlu0 %1264 }
 0x2ed   : > { %v1362_v7 = vmul.f32 1.442695, %v2813_v3  ;;  %v2817_v50 = vsub.f32 %v2688_v11, %v1265_v5  ;;  %1418 = vadd.xlane.f32.xlu1 %v2069_v4 }
 0x2ee   : > { %v2071_v6 = vpop.eup %2070 }
 0x2ef   : > { %2076 = vpow2.f32 %v1362_v7  ;;  %v1360_v10 = vmul.f32 1.442695, %v2817_v50  ;;  %1416 = vadd.xlane.f32.xlu0 %v2071_v6 }
 0x2f1   : > { %2078 = vpow2.f32 %v1360_v10 }
 0x2f2   : > { %v1271_v12 = vpop.xlane.xlu1 %1270 }
 0x2f3   : > { %v2821_v52 = vsub.f32 %v2693_v13, %v1271_v12 }
 0x2f4   : > { %v2073_v8 = vpop.eup %2072  ;;  %v1269_v16 = vpop.xlane.xlu0 %1268 }
 0x2f5   : > { %v1366_v17 = vmul.f32 1.442695, %v2821_v52  ;;  %v2825_v54 = vsub.f32 %v2696_v15, %v1269_v16  ;;  %1422 = vadd.xlane.f32.xlu1 %v2073_v8 }
 0x2f6   : > { %v2075_v11 = vpop.eup %2074 }
 0x2f7   : > { %2080 = vpow2.f32 %v1366_v17  ;;  %v1364_v21 = vmul.f32 1.442695, %v2825_v54  ;;  %1420 = vadd.xlane.f32.xlu0 %v2075_v11 }
 0x2f9   : > { %2082 = vpow2.f32 %v1364_v21 }
 0x2fa   : > { %v1275_v23 = vpop.xlane.xlu1 %1274 }
 0x2fb   : > { %v2829_v56 = vsub.f32 %v2701_v19, %v1275_v23 }
 0x2fc   : > { %v2077_v13 = vpop.eup %2076  ;;  %v1273_v28 = vpop.xlane.xlu0 %1272 }
 0x2fd   : > { %v1370_v30 = vmul.f32 1.442695, %v2829_v56  ;;  %v2833_v58 = vsub.f32 %v2704_v27, %v1273_v28  ;;  %1426 = vadd.xlane.f32.xlu1 %v2077_v13 }
 0x2fe   : > { %v2079_v15 = vpop.eup %2078 }
 0x2ff   : > { %2084 = vpow2.f32 %v1370_v30  ;;  %v1368_v34 = vmul.f32 1.442695, %v2833_v58  ;;  %1424 = vadd.xlane.f32.xlu0 %v2079_v15 }
 0x301   : > { %2086 = vpow2.f32 %v1368_v34 }
 0x302   : > { %v1279_v36 = vpop.xlane.xlu1 %1278 }
 0x303   : > { %v2837_v60 = vsub.f32 %v2709_v20, %v1279_v36 }
 0x304   : > { %v2081_v19 = vpop.eup %2080  ;;  %v1277_v40 = vpop.xlane.xlu0 %1276 }
 0x305   : > { %v1374_v42 = vmul.f32 1.442695, %v2837_v60  ;;  %v2841_v62 = vsub.f32 %v2712_v22, %v1277_v40  ;;  %1430 = vadd.xlane.f32.xlu1 %v2081_v19 }
 0x306   : > { %v2083_v27 = vpop.eup %2082 }
 0x307   : > { %2088 = vpow2.f32 %v1374_v42  ;;  %v1372_v49 = vmul.f32 1.442695, %v2841_v62  ;;  %1428 = vadd.xlane.f32.xlu0 %v2083_v27 }
 0x309   : > { %2090 = vpow2.f32 %v1372_v49 }
 0x30a   : > { %v1283_v51 = vpop.xlane.xlu1 %1282 }
 0x30b   : > { %v2845_v0 = vsub.f32 %v2717_v24, %v1283_v51 }
 0x30c   : > { %v2085_v20 = vpop.eup %2084  ;;  %v1281_v57 = vpop.xlane.xlu0 %1280 }
 0x30d   : > { %v1378_v59 = vmul.f32 1.442695, %v2845_v0  ;;  %v2849_v2 = vsub.f32 %v2720_v26, %v1281_v57  ;;  %1434 = vadd.xlane.f32.xlu1 %v2085_v20 }
 0x30e   : > { %v2087_v22 = vpop.eup %2086 }
 0x30f   : > { %2092 = vpow2.f32 %v1378_v59  ;;  %v1376_v63 = vmul.f32 1.442695, %v2849_v2  ;;  %1432 = vadd.xlane.f32.xlu0 %v2087_v22 }
 0x311   : > { %2094 = vpow2.f32 %v1376_v63 }
 0x312   : > { %v1287_v47 = vpop.xlane.xlu1 %1286 }
 0x313   : > { %v2853_v4 = vsub.f32 %v2725_v29, %v1287_v47 }
 0x314   : > { %v2089_v24 = vpop.eup %2088  ;;  %v1285_v5 = vpop.xlane.xlu0 %1284 }
 0x315   : > { %v1382_v7 = vmul.f32 1.442695, %v2853_v4  ;;  %v2857_v6 = vsub.f32 %v2728_v31, %v1285_v5  ;;  %1438 = vadd.xlane.f32.xlu1 %v2089_v24 }
 0x316   : > { %v2091_v26 = vpop.eup %2090 }
 0x317   : > { %2096 = vpow2.f32 %v1382_v7  ;;  %v1380_v10 = vmul.f32 1.442695, %v2857_v6  ;;  %1436 = vadd.xlane.f32.xlu0 %v2091_v26 }
 0x319   : > { %2098 = vpow2.f32 %v1380_v10 }
 0x31a   : > { %v1291_v12 = vpop.xlane.xlu1 %1290 }
 0x31b   : > { %v2861_v8 = vsub.f32 %v2733_v33, %v1291_v12 }
 0x31c   : > { %v2093_v29 = vpop.eup %2092  ;;  %v1289_v16 = vpop.xlane.xlu0 %1288 }
 0x31d   : > { %v1386_v17 = vmul.f32 1.442695, %v2861_v8  ;;  %v2865_v11 = vsub.f32 %v2736_v35, %v1289_v16  ;;  %1442 = vadd.xlane.f32.xlu1 %v2093_v29 }
 0x31e   : > { %v2095_v31 = vpop.eup %2094 }
 0x31f   : > { %2100 = vpow2.f32 %v1386_v17  ;;  %v1384_v21 = vmul.f32 1.442695, %v2865_v11  ;;  %1440 = vadd.xlane.f32.xlu0 %v2095_v31 }
 0x321   : > { %2102 = vpow2.f32 %v1384_v21 }
 0x322   : > { %v1295_v23 = vpop.xlane.xlu1 %1294 }
 0x323   : > { %v2869_v13 = vsub.f32 %v2741_v37, %v1295_v23 }
 0x324   : > { %v2097_v33 = vpop.eup %2096  ;;  %v1293_v28 = vpop.xlane.xlu0 %1292 }
 0x325   : > { %v1390_v30 = vmul.f32 1.442695, %v2869_v13  ;;  %v2873_v15 = vsub.f32 %v2744_v39, %v1293_v28  ;;  %1446 = vadd.xlane.f32.xlu1 %v2097_v33 }
 0x326   : > { %v2099_v35 = vpop.eup %2098 }
 0x327   : > { %2104 = vpow2.f32 %v1390_v30  ;;  %v1388_v34 = vmul.f32 1.442695, %v2873_v15  ;;  %1444 = vadd.xlane.f32.xlu0 %v2099_v35 }
 0x329   : > { %2106 = vpow2.f32 %v1388_v34 }
 0x32a   : > { %v1299_v36 = vpop.xlane.xlu1 %1298 }
 0x32b   : > { %v2877_v19 = vsub.f32 %v2749_v41, %v1299_v36 }
 0x32c   : > { %v2101_v37 = vpop.eup %2100  ;;  %v1297_v40 = vpop.xlane.xlu0 %1296 }
 0x32d   : > { %v1394_v42 = vmul.f32 1.442695, %v2877_v19  ;;  %v2881_v27 = vsub.f32 %v2752_v44, %v1297_v40  ;;  %1450 = vadd.xlane.f32.xlu1 %v2101_v37 }
 0x32e   : > { %v2103_v39 = vpop.eup %2102 }
 0x32f   : > { %2108 = vpow2.f32 %v1394_v42  ;;  %v1392_v49 = vmul.f32 1.442695, %v2881_v27  ;;  %1448 = vadd.xlane.f32.xlu0 %v2103_v39 }
 0x331   : > { %2110 = vpow2.f32 %v1392_v49 }
 0x334   : > { %v2105_v51 = vpop.eup %2104 }
 0x335   : > { %1454 = vadd.xlane.f32.xlu1 %v2105_v51 }
 0x336   : > { %v2107_v41 = vpop.eup %2106 }
 0x337   : > { %1452 = vadd.xlane.f32.xlu0 %v2107_v41 }
 0x33c   : > { %v2109_v20 = vpop.eup %2108 }
 0x33d   : > { %1458 = vadd.xlane.f32.xlu1 %v2109_v20 }
 0x33e   : > { %v2111_v57 = vpop.eup %2110 }
 0x33f   : > { %1456 = vadd.xlane.f32.xlu0 %v2111_v57 }
 0x350   : > { %v1399_v59 = vpop.xlane.xlu1 %1398 }
 0x351   : > { %2112 = vlog2.f32 %v1399_v59 }
 0x352   : > { %v1397_v44 = vpop.xlane.xlu0 %1396 }
 0x353   : > { %2114 = vlog2.f32 %v1397_v44 }
 0x356   : > { %v1403_v22 = vpop.xlane.xlu1 %1402 }
 0x357   : > { %2116 = vlog2.f32 %v1403_v22  ;;  %v1401_v63 = vpop.xlane.xlu0 %1400 }
 0x358   : > { %2118 = vlog2.f32 %v1401_v63 }
 0x35e   : > { %v1407_v47 = vpop.xlane.xlu1 %1406  ;;  %v2113_v24 = vpop.eup %2112 }
 0x35f   : > { %2120 = vlog2.f32 %v1407_v47  ;;  %v1463_v5 = vmul.f32 0.6931472, %v2113_v24 }
 0x360   : > { %v1405_v7 = vpop.xlane.xlu0 %1404  ;;  %v2115_v26 = vpop.eup %2114 }
 0x361   : > { %2122 = vlog2.f32 %v1405_v7  ;;  %v1525_v10 = vsub.f32 %v2757_v9, %v1463_v5  ;;  %v1461_v12 = vmul.f32 0.6931472, %v2115_v26 }
 0x363   : > { %1557 = vst [vmem:[%s2888_s17 + $0x8] sm:$0xff] %v1525_v10  ;;  %v1524_v29 = vsub.f32 %v2761_v53, %v1461_v12 }
 0x364   : > { %v2117_v16 = vpop.eup %2116 }
 0x365   : > { %v2119_v17 = vpop.eup %2118  ;;  %1556 = vst [vmem:[%s2888_s17] sm:$0xff] %v1524_v29  ;;  %v1467_v31 = vmul.f32 0.6931472, %v2117_v16 }
 0x366   : > { %v1411_v21 = vpop.xlane.xlu1 %1410  ;;  %v1465_v23 = vmul.f32 0.6931472, %v2119_v17 }
 0x367   : > { %2124 = vlog2.f32 %v1411_v21  ;;  %v1527_v9 = vsub.f32 %v2765_v43, %v1467_v31 }
 0x368   : > { %v1409_v33 = vpop.xlane.xlu0 %1408  ;;  %v1526_v28 = vsub.f32 %v2768_v61, %v1465_v23 }
 0x369   : > { %2126 = vlog2.f32 %v1409_v33  ;;  %1559 = vst [vmem:[%s2888_s17 + $0x18] sm:$0xff] %v1527_v9 }
 0x36a   : > { %1558 = vst [vmem:[%s2888_s17 + $0x10] sm:$0xff] %v1526_v28 }
 0x36c   : > { %v2121_v30 = vpop.eup %2120 }
 0x36d   : > { %v1471_v35 = vmul.f32 0.6931472, %v2121_v30 }
 0x36e   : > { %v2123_v53 = vpop.eup %2122  ;;  %v1415_v34 = vpop.xlane.xlu1 %1414 }
 0x36f   : > { %v1529_v36 = vsub.f32 %v2773_v1, %v1471_v35  ;;  %v1469_v37 = vmul.f32 0.6931472, %v2123_v53  ;;  %2128 = vlog2.f32 %v1415_v34 }
 0x370   : > { %v1413_v40 = vpop.xlane.xlu0 %1412 }
 0x371   : > { %1561 = vst [vmem:[%s2888_s17 + $0x28] sm:$0xff] %v1529_v36  ;;  %v1528_v43 = vsub.f32 %v2777_v48, %v1469_v37  ;;  %2130 = vlog2.f32 %v1413_v40 }
 0x373   : > { %1560 = vst [vmem:[%s2888_s17 + $0x20] sm:$0xff] %v1528_v43 }
 0x374   : > { %v2125_v61 = vpop.eup %2124 }
 0x375   : > { %v1475_v42 = vmul.f32 0.6931472, %v2125_v61 }
 0x376   : > { %v2127_v39 = vpop.eup %2126  ;;  %v1419_v49 = vpop.xlane.xlu1 %1418 }
 0x377   : > { %v1531_v51 = vsub.f32 %v2781_v14, %v1475_v42  ;;  %v1473_v41 = vmul.f32 0.6931472, %v2127_v39  ;;  %2132 = vlog2.f32 %v1419_v49 }
 0x378   : > { %v1417_v1 = vpop.xlane.xlu0 %1416 }
 0x379   : > { %1563 = vst [vmem:[%s2888_s17 + $0x38] sm:$0xff] %v1531_v51  ;;  %v1530_v20 = vsub.f32 %v2785_v18, %v1473_v41  ;;  %2134 = vlog2.f32 %v1417_v1 }
 0x37b   : > { %1562 = vst [vmem:[%s2888_s17 + $0x30] sm:$0xff] %v1530_v20 }
 0x37c   : > { %v2129_v57 = vpop.eup %2128 }
 0x37d   : > { %v1479_v48 = vmul.f32 0.6931472, %v2129_v57 }
 0x37e   : > { %v2131_v59 = vpop.eup %2130  ;;  %v1423_v44 = vpop.xlane.xlu1 %1422 }
 0x37f   : > { %v1533_v22 = vsub.f32 %v2789_v25, %v1479_v48  ;;  %v1477_v63 = vmul.f32 0.6931472, %v2131_v59  ;;  %2136 = vlog2.f32 %v1423_v44 }
 0x380   : > { %v1421_v14 = vpop.xlane.xlu0 %1420 }
 0x381   : > { %1565 = vst [vmem:[%s2888_s17 + $0x48] sm:$0xff] %v1533_v22  ;;  %v1532_v47 = vsub.f32 %v2793_v32, %v1477_v63  ;;  %2138 = vlog2.f32 %v1421_v14 }
 0x383   : > { %1564 = vst [vmem:[%s2888_s17 + $0x40] sm:$0xff] %v1532_v47 }
 0x384   : > { %v2133_v24 = vpop.eup %2132 }
 0x385   : > { %v1483_v18 = vmul.f32 0.6931472, %v2133_v24 }
 0x386   : > { %v2135_v5 = vpop.eup %2134  ;;  %v1427_v7 = vpop.xlane.xlu1 %1426 }
 0x387   : > { %v1535_v26 = vsub.f32 %v2797_v38, %v1483_v18  ;;  %v1481_v10 = vmul.f32 0.6931472, %v2135_v5  ;;  %2140 = vlog2.f32 %v1427_v7 }
 0x388   : > { %v1425_v25 = vpop.xlane.xlu0 %1424 }
 0x389   : > { %1567 = vst [vmem:[%s2888_s17 + $0x58] sm:$0xff] %v1535_v26  ;;  %v1534_v12 = vsub.f32 %v2801_v46, %v1481_v10  ;;  %2142 = vlog2.f32 %v1425_v25 }
 0x38b   : > { %1566 = vst [vmem:[%s2888_s17 + $0x50] sm:$0xff] %v1534_v12 }
 0x38c   : > { %v2137_v29 = vpop.eup %2136 }
 0x38d   : > { %v1487_v32 = vmul.f32 0.6931472, %v2137_v29 }
 0x38e   : > { %v2139_v16 = vpop.eup %2138  ;;  %v1431_v17 = vpop.xlane.xlu1 %1430 }
 0x38f   : > { %v1537_v31 = vsub.f32 %v2805_v55, %v1487_v32  ;;  %v1485_v21 = vmul.f32 0.6931472, %v2139_v16  ;;  %2144 = vlog2.f32 %v1431_v17 }
 0x390   : > { %v1429_v38 = vpop.xlane.xlu0 %1428 }
 0x391   : > { %1569 = vst [vmem:[%s2888_s17 + $0x68] sm:$0xff] %v1537_v31  ;;  %v1536_v23 = vsub.f32 %v2809_v45, %v1485_v21  ;;  %2146 = vlog2.f32 %v1429_v38 }
 0x393   : > { %1568 = vst [vmem:[%s2888_s17 + $0x60] sm:$0xff] %v1536_v23 }
 0x394   : > { %v2141_v9 = vpop.eup %2140 }
 0x395   : > { %v1491_v46 = vmul.f32 0.6931472, %v2141_v9 }
 0x396   : > { %v2143_v33 = vpop.eup %2142  ;;  %v1435_v28 = vpop.xlane.xlu1 %1434 }
 0x397   : > { %v1539_v30 = vsub.f32 %v2813_v3, %v1491_v46  ;;  %v1489_v35 = vmul.f32 0.6931472, %v2143_v33  ;;  %2148 = vlog2.f32 %v1435_v28 }
 0x398   : > { %v1433_v55 = vpop.xlane.xlu0 %1432 }
 0x399   : > { %1571 = vst [vmem:[%s2888_s17 + $0x78] sm:$0xff] %v1539_v30  ;;  %v1538_v53 = vsub.f32 %v2817_v50, %v1489_v35  ;;  %2150 = vlog2.f32 %v1433_v55 }
 0x39b   : > { %1570 = vst [vmem:[%s2888_s17 + $0x70] sm:$0xff] %v1538_v53 }
 0x39c   : > { %v2145_v34 = vpop.eup %2144 }
 0x39d   : > { %v1495_v45 = vmul.f32 0.6931472, %v2145_v34 }
 0x39e   : > { %v2147_v36 = vpop.eup %2146  ;;  %v1439_v37 = vpop.xlane.xlu1 %1438 }
 0x39f   : > { %v1541_v40 = vsub.f32 %v2821_v52, %v1495_v45  ;;  %v1493_v43 = vmul.f32 0.6931472, %v2147_v36  ;;  %2152 = vlog2.f32 %v1439_v37 }
 0x3a0   : > { %v1437_v3 = vpop.xlane.xlu0 %1436 }
 0x3a1   : > { %1573 = vst [vmem:[%s2888_s17 + $0x88] sm:$0xff] %v1541_v40  ;;  %v1540_v61 = vsub.f32 %v2825_v54, %v1493_v43  ;;  %2154 = vlog2.f32 %v1437_v3 }
 0x3a3   : > { %1572 = vst [vmem:[%s2888_s17 + $0x80] sm:$0xff] %v1540_v61 }
 0x3a4   : > { %v2149_v42 = vpop.eup %2148 }
 0x3a5   : > { %v1499_v50 = vmul.f32 0.6931472, %v2149_v42 }
 0x3a6   : > { %v2151_v39 = vpop.eup %2150  ;;  %v1443_v49 = vpop.xlane.xlu1 %1442 }
 0x3a7   : > { %v1543_v51 = vsub.f32 %v2829_v56, %v1499_v50  ;;  %v1497_v41 = vmul.f32 0.6931472, %v2151_v39  ;;  %2156 = vlog2.f32 %v1443_v49 }
 0x3a8   : > { %v1441_v52 = vpop.xlane.xlu0 %1440 }
 0x3a9   : > { %1575 = vst [vmem:[%s2888_s17 + $0x98] sm:$0xff] %v1543_v51  ;;  %v1542_v1 = vsub.f32 %v2833_v58, %v1497_v41  ;;  %2158 = vlog2.f32 %v1441_v52 }
 0x3ab   : > { %1574 = vst [vmem:[%s2888_s17 + $0x90] sm:$0xff] %v1542_v1 }
 0x3ac   : > { %v2153_v20 = vpop.eup %2152 }
 0x3ad   : > { %v1503_v54 = vmul.f32 0.6931472, %v2153_v20 }
 0x3ae   : > { %v2155_v57 = vpop.eup %2154  ;;  %v1447_v48 = vpop.xlane.xlu1 %1446 }
 0x3af   : > { %v1545_v59 = vsub.f32 %v2837_v60, %v1503_v54  ;;  %v1501_v44 = vmul.f32 0.6931472, %v2155_v57  ;;  %2160 = vlog2.f32 %v1447_v48 }
 0x3b0   : > { %v1445_v56 = vpop.xlane.xlu0 %1444 }
 0x3b1   : > { %1577 = vst [vmem:[%s2888_s17 + $0xa8] sm:$0xff] %v1545_v59  ;;  %v1544_v22 = vsub.f32 %v2841_v62, %v1501_v44  ;;  %2162 = vlog2.f32 %v1445_v56 }
 0x3b3   : > { %1576 = vst [vmem:[%s2888_s17 + $0xa0] sm:$0xff] %v1544_v22 }
 0x3b4   : > { %v2157_v63 = vpop.eup %2156 }
 0x3b5   : > { %v1507_v58 = vmul.f32 0.6931472, %v2157_v63 }
 0x3b6   : > { %v2159_v14 = vpop.eup %2158  ;;  %v1451_v47 = vpop.xlane.xlu1 %1450 }
 0x3b7   : > { %v1547_v24 = vsub.f32 %v2845_v0, %v1507_v58  ;;  %v1505_v18 = vmul.f32 0.6931472, %v2159_v14  ;;  %2164 = vlog2.f32 %v1451_v47 }
 0x3b8   : > { %v1449_v60 = vpop.xlane.xlu0 %1448 }
 0x3b9   : > { %1579 = vst [vmem:[%s2888_s17 + $0xb8] sm:$0xff] %v1547_v24  ;;  %v1546_v5 = vsub.f32 %v2849_v2, %v1505_v18  ;;  %2166 = vlog2.f32 %v1449_v60 }
 0x3bb   : > { %1578 = vst [vmem:[%s2888_s17 + $0xb0] sm:$0xff] %v1546_v5 }
 0x3bc   : > { %v2161_v7 = vpop.eup %2160 }
 0x3bd   : > { %v1511_v62 = vmul.f32 0.6931472, %v2161_v7 }
 0x3be   : > { %v2163_v26 = vpop.eup %2162  ;;  %v1455_v10 = vpop.xlane.xlu1 %1454 }
 0x3bf   : > { %v1549_v25 = vsub.f32 %v2853_v4, %v1511_v62  ;;  %v1509_v12 = vmul.f32 0.6931472, %v2163_v26  ;;  %2168 = vlog2.f32 %v1455_v10 }
 0x3c0   : > { %v1453_v0 = vpop.xlane.xlu0 %1452 }
 0x3c1   : > { %1581 = vst [vmem:[%s2888_s17 + $0xc8] sm:$0xff] %v1549_v25  ;;  %v1548_v29 = vsub.f32 %v2857_v6, %v1509_v12  ;;  %2170 = vlog2.f32 %v1453_v0 }
 0x3c3   : > { %1580 = vst [vmem:[%s2888_s17 + $0xc0] sm:$0xff] %v1548_v29 }
 0x3c4   : > { %v2165_v32 = vpop.eup %2164 }
 0x3c5   : > { %v1515_v2 = vmul.f32 0.6931472, %v2165_v32 }
 0x3c6   : > { %v2167_v16 = vpop.eup %2166  ;;  %v1459_v17 = vpop.xlane.xlu1 %1458 }
 0x3c7   : > { %v1551_v31 = vsub.f32 %v2861_v8, %v1515_v2  ;;  %v1513_v21 = vmul.f32 0.6931472, %v2167_v16  ;;  %2172 = vlog2.f32 %v1459_v17 }
 0x3c8   : > { %v1457_v4 = vpop.xlane.xlu0 %1456 }
 0x3c9   : > { %1583 = vst [vmem:[%s2888_s17 + $0xd8] sm:$0xff] %v1551_v31  ;;  %v1550_v38 = vsub.f32 %v2865_v11, %v1513_v21  ;;  %2174 = vlog2.f32 %v1457_v4 }
 0x3cb   : > { %1582 = vst [vmem:[%s2888_s17 + $0xd0] sm:$0xff] %v1550_v38 }
 0x3cc   : > { %v2169_v6 = vpop.eup %2168 }
 0x3cd   : > { %v1519_v23 = vmul.f32 0.6931472, %v2169_v6 }
 0x3ce   : > { %v2171_v9 = vpop.eup %2170 }
 0x3cf   : > { %v1553_v46 = vsub.f32 %v2869_v13, %v1519_v23  ;;  %v1517_v33 = vmul.f32 0.6931472, %v2171_v9 }
 0x3d1   : > { %1585 = vst [vmem:[%s2888_s17 + $0xe8] sm:$0xff] %v1553_v46  ;;  %v1552_v8 = vsub.f32 %v2873_v15, %v1517_v33 }
 0x3d3   : > { %1584 = vst [vmem:[%s2888_s17 + $0xe0] sm:$0xff] %v1552_v8 }
 0x3d4   : > { %v2173_v28 = vpop.eup %2172 }
 0x3d5   : > { %v1523_v30 = vmul.f32 0.6931472, %v2173_v28 }
 0x3d6   : > { %v2175_v11 = vpop.eup %2174 }
 0x3d7   : > { %v1555_v35 = vsub.f32 %v2877_v19, %v1523_v30  ;;  %v1521_v55 = vmul.f32 0.6931472, %v2175_v11 }
 0x3d9   : > { %1587 = vst [vmem:[%s2888_s17 + $0xf8] sm:$0xff] %v1555_v35  ;;  %v1554_v13 = vsub.f32 %v2881_v27, %v1521_v55 }
 0x3db   : > { %1586 = vst [vmem:[%s2888_s17 + $0xf0] sm:$0xff] %v1554_v13 }
 0x3dc   : > { %2189 = shalt.err (!%p2186_p3)
}
 0x3dd   : > { %s2190_s11 = scalar_lea.hbm %s2955_s6, 4096  ;;  %s2194_s14 = scalar_lea.hbm %s3009_s5, 8192 }
 0x3de   : > { %p2191_p4 = scmp.ne.s32.totalorder %s2955_s6, %s2190_s11  ;;  %p2195_p9 = scmp.lt.s32.totalorder %s2955_s6, %s3009_s5 }
 0x3df   : > { %p2196_p10 = scmp.lt.s32.totalorder %s2194_s14, %s2190_s11 }
 0x3e0   : > { %p2192_p7 = pnand %p2191_p4, %p2312_p5 }
 0x3e1   : > { %p2197_p11 = por %p2196_p10, %p2195_p9 }
 0x3e2   : > { %p2193_p8 = pneg %p2192_p7 }
 0x3e4   : > { %p2198_p12 = pnand %p2197_p11, %p2193_p8 }
 0x3e6   : > { %2201 = shalt.err (!%p2198_p12)
}
 0x3e7   : > { %s2242_s17 = smov 128   ;;  %s2243_s23 = smov 8  }
 0x3e8   : > { %1999 = dma.vmem_to_hbm [thread:$0]  (%p2312_p5), %s2957_s25, 4096, %s2955_s6, %s2964_s22, %s2242_s17, %s2242_s17, %s2243_s23  }
 0x3e9 PF: > { %p2005_p13 = scmp.ge.s32.totalorder %s2236_s21, 2  ;;  %s1617_s26 = sand.u32 1, %s2224_s18  }
 0x3ea   : > { %s1618_s30 = scalar_lea.sflag [#allocation3], %s1617_s26 }
 0x3eb   : > { %p2002_p0 = pnand %p2005_p13, %p2316_p6 }
 0x3ed   : > { %p2003_p1 = pneg %p2002_p0 }
 0x3ef   : > { %2219 = dma.done.wait (%p2003_p1), %s1618_s30, 4096  }
 0x3f0   : > { %2221 = vsyncadd (%p2003_p1), %s1618_s30, 4294963200  ;;  %p15_p2 = scmp.ge.s32.totalorder %s2299_s24, 4   ;;  %s3012_s18 = smov %s2228_s19 }
 0x3f1   : > { %s3013_s19 = smov %s2232_s20  ;;  %s3014_s20 = smov %s2310_s27 }
 0x3f2   : > { %s3015_s21 = smov %s2299_s24  ;;  %17 = sbr.rel (!%p15_p2) target bundleno = 3 (0x3), region = 75 }
 0x3f7   :  { %1623 = vsyncpa [#allocation3], 1 }
 0x3f8   :  { %1625 = vsyncpa [#allocation3 + $0x1], 1 }

// kernel: tpu_custom_call.1
= control target key start
LH: loop header
LB: loop body
LE: loop exit
PB: predicated region body
PF: predicated region fallthrough
CT: control target
= control target key end

     0   :  { %10 = vsyncpa [#allocation3], 0  ;;  %s3004_s0 = inlined_call_operand.vmem [shape: s32[512,2], index: 0, kind: input, shape index: {}]   ;;  %s3005_s1 = inlined_call_operand.vmem [shape: f32[128,128], index: 1, kind: input, shape index: {}]   ;;  %s3006_s2 = inlined_call_operand.vmem [shape: f32[1,128], index: 2, kind: input, shape index: {}]   ;;  %s3007_s3 = inlined_call_operand.vmem [shape: f32[128,128], index: 3, kind: input, shape index: {}]   ;;  %s3008_s4 = inlined_call_operand.vmem [shape: f32[1,128], index: 4, kind: input, shape index: {}]   ;;  %s3009_s5 = inlined_call_operand.hbm [shape: f32[512,128], index: 5, kind: output, shape index: {}]  }
   0x1   :  { %12 = vsyncpa [#allocation3 + $0x1], 0  ;;  %s2274_s18 = smov 0   ;;  %s2276_s19 = smov 0  }
   0x2   :  { %s2278_s20 = smov 0   ;;  %s2280_s21 = smov 0  }
   0x3 LB: > { %s2295_s22 = sadd.s32 4294967295, %s2236_s21   ;;  %s1664_s23 = sadd.s32 4294967294, %s2236_s21   ;;  %s2236_s21 = sphi %s2280_s21, %s3015_s21   ;;  %s2232_s20 = sphi %s2278_s20, %s3014_s20   ;;  %s2228_s19 = sphi %s2276_s19, %s3013_s19   ;;  %s2224_s18 = sphi %s2274_s18, %s3012_s18  }
   0x4   : > { %s2299_s24 = sadd.s32 1, %s2236_s21   ;;  %s135_s25 = sadd.s32 1, %s2232_s20 }
   0x5   : > { %s132_s26 = ssub.s32 %s2236_s21, %s2299_s24  ;;  %p145_p0 = scmp.ne.s32.totalorder %s2232_s20, %s2228_s19 }
   0x6   : > { %p133_p1 = scmp.eq.s32.totalorder %s132_s26, 0  ;;  %p146_p2 = scmp.eq.s32.totalorder %s2295_s22, 1 }
   0x7   : > { %p151_p3 = scmp.ne.s32.totalorder %s2228_s19, %s2224_s18  ;;  %p152_p4 = scmp.eq.s32.totalorder %s1664_s23, 1 }
   0x8   : > { %s2310_s27 = scalar_select %p133_p1, %s2232_s20, %s135_s25  }
   0x9   : > { %p2312_p5 = por %p146_p2, %p145_p0  ;;  %p2316_p6 = por %p152_p4, %p151_p3 }
   0xa   : > { %p1667_p7 = scmp.ge.s32.totalorder %s2236_s21, 1  ;;  %p191_p8 = scmp.lt.s32.totalorder %s2236_s21, 3 }
   0xc   : > { %p192_p9 = pnand %p1667_p7, %p191_p8 }
   0xd   : > { %s1669_s30 = sshll.u32 (!%p192_p9), %s2295_s22, 5  ;;  %s1742_s23 = sshll.u32 (!%p192_p9), %s2295_s22, 12 }
   0xe   : > { %195 = sbr.rel (%p192_p9) target bundleno = 1001 (0x3e9), region = 40  ;;  %p220_p10 = scmp.lt.s32.totalorder (!%p192_p9), %s1669_s30, 63 }
   0xf   : > { %s2955_s6 = scalar_lea.hbm (!%p192_p9), %s3009_s5, %s1742_s23  ;;  %s2241_s8 = smov (!%p192_p9), [#allocation2]  }
  0x10   : > { %s2180_s9 = sshll.u32 (!%p192_p9), %s2241_s8, 4  ;;  %s2181_s9 = int_to_ptr.vmem [resolvable:$false] %s2180_s9 }
  0x11   : > { %s2182_s10 = scalar_lea.vmem (!%p192_p9), %s2181_s9, 8192 }
  0x13   : > { %v723_v0 = vld [vmem:[%s3005_s1 + $0x78] sm:$0xff]  ;;  %v2238_v1 = vmov 0   ;;  %v722_v2 = vld [vmem:[%s3005_s1 + $0x70] sm:$0xff]  ;;  %s3017_s30 = smov (!%p220_p10, %s1669_s30), 63  ;;  %v721_v3 = vld [vmem:[%s3005_s1 + $0x68] sm:$0xff]  ;;  %v2239_v11 = vmov 1  }
  0x14   : > { %2044 = vset.pattern.permute.xlu1 %v2238_v1  ;;  %2043 = vset.pattern.permute.xlu0 %v2238_v1  ;;  %s1670_s12 = sshll.u32 %s3017_s30, 3  ;;  %v720_v4 = vld [vmem:[%s3005_s1 + $0x60] sm:$0xff]  ;;  %v719_v7 = vld [vmem:[%s3005_s1 + $0x58] sm:$0xff]  ;;  %v718_v10 = vld [vmem:[%s3005_s1 + $0x50] sm:$0xff] }
  0x15   : > { %1839 = vmatprep.subr.mxu0 %v723_v0  ;;  %s2335_s15 = scalar_lea.vmem %s3004_s0, %s1670_s12  ;;  %v717_v14 = vld [vmem:[%s3005_s1 + $0x48] sm:$0xff]  ;;  %v716_v16 = vld [vmem:[%s3005_s1 + $0x40] sm:$0xff]  ;;  %v715_v19 = vld [vmem:[%s3005_s1 + $0x38] sm:$0xff] }
  0x16   : > { %1840 = vmatpush3.msra.mxu0 %v723_v0  ;;  %v227_v5 = vld [vmem:[%s2335_s15 + $0x8] sm:$0xff]  ;;  %v226_v6 = vld [vmem:[%s2335_s15] sm:$0xff]  ;;  %v228_v9 = vld [vmem:[%s2335_s15 + $0x10] sm:$0xff] }
  0x17   : > { %1841 = vmatprep.subr.mxu0 %v722_v2  ;;  %264 = vperm.xlu1 %2044, %v227_v5   ;;  %v452_v8 = vadd.s32 32, %v226_v6  ;;  %v453_v12 = vadd.s32 32, %v227_v5  ;;  %v454_v13 = vadd.s32 32, %v228_v9  ;;  %v229_v15 = vld [vmem:[%s2335_s15 + $0x18] sm:$0xff]  ;;  %v230_v18 = vld [vmem:[%s2335_s15 + $0x20] sm:$0xff]  ;;  %v714_v21 = vld [vmem:[%s3005_s1 + $0x30] sm:$0xff] }
  0x18   : > { %1842 = vmatpush3.msra.mxu0 %v722_v2  ;;  %261 = vperm.xlu0 %2043, %v226_v6   ;;  %v455_v17 = vadd.s32 32, %v229_v15  ;;  %v456_v20 = vadd.s32 32, %v230_v18  ;;  %v231_v22 = vld [vmem:[%s2335_s15 + $0x28] sm:$0xff]  ;;  %v712_v25 = vld [vmem:[%s3005_s1 + $0x20] sm:$0xff]  ;;  %v232_v26 = vld [vmem:[%s2335_s15 + $0x30] sm:$0xff] }
  0x19   : > { %1843 = vmatprep.subr.mxu0 %v721_v3  ;;  %v713_v23 = vld [vmem:[%s3005_s1 + $0x28] sm:$0xff]  ;;  %v457_v24 = vadd.s32 32, %v231_v22  ;;  %v711_v27 = vld [vmem:[%s3005_s1 + $0x18] sm:$0xff]  ;;  %v458_v28 = vadd.s32 32, %v232_v26  ;;  %v710_v29 = vld [vmem:[%s3005_s1 + $0x10] sm:$0xff] }
  0x1a   : > { %1844 = vmatpush3.msra.mxu0 %v721_v3  ;;  %v233_v30 = vld [vmem:[%s2335_s15 + $0x38] sm:$0xff]  ;;  %v709_v31 = vld [vmem:[%s3005_s1 + $0x8] sm:$0xff]  ;;  %v708_v33 = vld [vmem:[%s3005_s1] sm:$0xff] }
  0x1b   : > { %1845 = vmatprep.subr.mxu0 %v720_v4  ;;  %267 = vperm.xlu1 %2044, %v228_v9   ;;  %v459_v32 = vadd.s32 32, %v233_v30  ;;  %v234_v34 = vld [vmem:[%s2335_s15 + $0x40] sm:$0xff]  ;;  %v235_v36 = vld [vmem:[%s2335_s15 + $0x48] sm:$0xff]  ;;  %v236_v38 = vld [vmem:[%s2335_s15 + $0x50] sm:$0xff] }
  0x1c   : > { %1846 = vmatpush3.msra.mxu0 %v720_v4  ;;  %2045 = vset.pattern.permute.xlu0 %v2239_v11  ;;  %v460_v35 = vadd.s32 32, %v234_v34  ;;  %v461_v37 = vadd.s32 32, %v235_v36  ;;  %v462_v39 = vadd.s32 32, %v236_v38  ;;  %v237_v40 = vld [vmem:[%s2335_s15 + $0x58] sm:$0xff]  ;;  %v238_v42 = vld [vmem:[%s2335_s15 + $0x60] sm:$0xff]  ;;  %v239_v44 = vld [vmem:[%s2335_s15 + $0x68] sm:$0xff] }
  0x1d   : > { %1847 = vmatprep.subr.mxu0 %v719_v7  ;;  %485 = vperm.xlu0 %2045, %v452_v8   ;;  %v463_v41 = vadd.s32 32, %v237_v40  ;;  %v464_v43 = vadd.s32 32, %v238_v42  ;;  %v465_v45 = vadd.s32 32, %v239_v44  ;;  %v240_v46 = vld [vmem:[%s2335_s15 + $0x70] sm:$0xff]  ;;  %v241_v48 = vld [vmem:[%s2335_s15 + $0x78] sm:$0xff]  ;;  %v242_v50 = vld [vmem:[%s2335_s15 + $0x80] sm:$0xff] }
  0x1e   : > { %1848 = vmatpush3.msra.mxu0 %v719_v7  ;;  %v466_v47 = vadd.s32 32, %v240_v46  ;;  %v467_v49 = vadd.s32 32, %v241_v48  ;;  %v468_v51 = vadd.s32 32, %v242_v50  ;;  %v243_v52 = vld [vmem:[%s2335_s15 + $0x88] sm:$0xff]  ;;  %v244_v54 = vld [vmem:[%s2335_s15 + $0x90] sm:$0xff]  ;;  %v245_v56 = vld [vmem:[%s2335_s15 + $0x98] sm:$0xff] }
  0x1f   : > { %1849 = vmatprep.subr.mxu0 %v718_v10  ;;  %2046 = vset.pattern.permute.xlu1 %v2239_v11  ;;  %v469_v53 = vadd.s32 32, %v243_v52  ;;  %v470_v55 = vadd.s32 32, %v244_v54  ;;  %v471_v57 = vadd.s32 32, %v245_v56  ;;  %v246_v58 = vld [vmem:[%s2335_s15 + $0xa0] sm:$0xff]  ;;  %v247_v60 = vld [vmem:[%s2335_s15 + $0xa8] sm:$0xff]  ;;  %v248_v62 = vld [vmem:[%s2335_s15 + $0xb0] sm:$0xff] }
  0x20   : > { %1850 = vmatpush3.msra.mxu0 %v718_v10  ;;  %488 = vperm.xlu1 %2046, %v453_v12   ;;  %v472_v59 = vadd.s32 32, %v246_v58  ;;  %v473_v61 = vadd.s32 32, %v247_v60  ;;  %v474_v63 = vadd.s32 32, %v248_v62  ;;  %v249_v0 = vld [vmem:[%s2335_s15 + $0xb8] sm:$0xff]  ;;  %v250_v2 = vld [vmem:[%s2335_s15 + $0xc0] sm:$0xff]  ;;  %v251_v4 = vld [vmem:[%s2335_s15 + $0xc8] sm:$0xff] }
  0x21   : > { %1851 = vmatprep.subr.mxu0 %v717_v14  ;;  %491 = vperm.xlu0 %2045, %v454_v13   ;;  %v476_v3 = vadd.s32 32, %v250_v2  ;;  %v477_v5 = vadd.s32 32, %v251_v4  ;;  %v252_v6 = vld [vmem:[%s2335_s15 + $0xd0] sm:$0xff]  ;;  %v253_v8 = vld [vmem:[%s2335_s15 + $0xd8] sm:$0xff]  ;;  %v254_v10 = vld [vmem:[%s2335_s15 + $0xe0] sm:$0xff] }
  0x22   : > { %1852 = vmatpush3.msra.mxu0 %v717_v14  ;;  %v478_v7 = vadd.s32 32, %v252_v6  ;;  %v479_v9 = vadd.s32 32, %v253_v8  ;;  %v480_v11 = vadd.s32 32, %v254_v10  ;;  %v255_v12 = vld [vmem:[%s2335_s15 + $0xe8] sm:$0xff]  ;;  %v256_v14 = vld [vmem:[%s2335_s15 + $0xf0] sm:$0xff] }
  0x23   : > { %1853 = vmatprep.subr.mxu0 %v716_v16  ;;  %v481_v13 = vadd.s32 32, %v255_v12 }
  0x24   : > { %1854 = vmatpush3.msra.mxu0 %v716_v16  ;;  %2047 = vset.pattern.permute.xlu1 %v2238_v1  ;;  %v475_v1 = vadd.s32 32, %v249_v0  ;;  %v257_v16 = vld [vmem:[%s2335_s15 + $0xf8] sm:$0xff]  ;;  %s216_s15 = sand.u32 1, %s2228_s19  }
  0x25   : > { %494 = vperm.xlu0 %2045, %v455_v17   ;;  %270 = vperm.xlu1 %2047, %v229_v15   ;;  %v482_v15 = vadd.s32 32, %v256_v14  ;;  %v258_v17 = vlaneseq  ;;  %s1668_s16 = sshll.u32 %s216_s15, 8  ;;  %s2964_s22 = scalar_lea.sflag [#allocation3], %s216_s15 }
  0x26   : > { %1855 = vmatprep.subr.mxu0 %v715_v19  ;;  %s2888_s17 = scalar_lea.vmem [#allocation2], %s1668_s16 }
  0x27   : > { %1856 = vmatpush3.msra.mxu0 %v715_v19  ;;  %v2408_v19 = vand.u32 127, %v258_v17  ;;  %s1602_s25 = sshll.u32 %s2888_s17, 4  ;;  %s2957_s25 = int_to_ptr.vmem [resolvable:$true] %s1602_s25 }
  0x28   : > { %1857 = vmatprep.subr.mxu0 %v714_v21  ;;  %s2176_s7 = scalar_lea.vmem %s2957_s25, 4096  ;;  %p2183_p0 = scmp.lt.s32.totalorder %s2957_s25, %s2181_s9 }
  0x29   : > { %497 = vperm.xlu0 %2045, %v456_v20   ;;  %1858 = vmatpush3.msra.mxu0 %v714_v21  ;;  %p2177_p11 = scmp.ne.s32.totalorder %s2957_s25, %s2176_s7  ;;  %p2184_p1 = scmp.lt.s32.totalorder %s2182_s10, %s2176_s7 }
  0x2a   : > { %273 = vperm.xlu1 %2047, %v230_v18   ;;  %1859 = vmatprep.subr.mxu0 %v713_v23  ;;  %v483_v18 = vadd.s32 32, %v257_v16 }
  0x2b   : > { %1860 = vmatpush3.msra.mxu0 %v713_v23  ;;  %v1002_v23 = vld [vmem:[%s3007_s3 + $0x70] sm:$0xff]  ;;  %p2178_p12 = pnand %p2177_p11, %p2312_p5  ;;  %p2185_p2 = por %p2184_p1, %p2183_p0 }
  0x2c   : > { %1861 = vmatprep.subr.mxu0 %v712_v25 }
  0x2d   : > { %500 = vperm.xlu0 %2045, %v457_v24   ;;  %1862 = vmatpush3.msra.mxu0 %v712_v25  ;;  %p2179_p13 = pneg %p2178_p12 }
  0x2e   : > { %276 = vperm.xlu1 %2047, %v231_v22   ;;  %1863 = vmatprep.subr.mxu0 %v711_v27  ;;  %v1003_v22 = vld [vmem:[%s3007_s3 + $0x78] sm:$0xff] }
  0x2f   : > { %1864 = vmatpush3.msra.mxu0 %v711_v27  ;;  %1919 = vmatprep.subr.mxu1 %v1003_v22  ;;  %v2240_v27 = vmov 0.0   ;;  %p2186_p3 = pnand %p2185_p2, %p2179_p13 }
  0x30   : > { %1865 = vmatprep.subr.mxu0 %v710_v29  ;;  %1920 = vmatpush3.msra.mxu1 %v1003_v22 }
  0x31   : > { %503 = vperm.xlu0 %2045, %v458_v28   ;;  %1866 = vmatpush3.msra.mxu0 %v710_v29 }
  0x32   : > { %279 = vperm.xlu1 %2047, %v232_v26   ;;  %1867 = vmatprep.subr.mxu0 %v709_v31  ;;  %v1001_v26 = vld [vmem:[%s3007_s3 + $0x68] sm:$0xff] }
  0x33   : > { %1868 = vmatpush3.msra.mxu0 %v709_v31  ;;  %1921 = vmatprep.subr.mxu1 %v1002_v23 }
  0x34   : > { %1869 = vmatprep.subr.mxu0 %v708_v33  ;;  %1922 = vmatpush3.msra.mxu1 %v1002_v23 }
  0x35   : > { %506 = vperm.xlu0 %2045, %v459_v32   ;;  %1870 = vmatpush3.msra.mxu0 %v708_v33 }
  0x36   : > { %282 = vperm.xlu1 %2047, %v233_v30   ;;  %v1000_v30 = vld [vmem:[%s3007_s3 + $0x60] sm:$0xff]  ;;  %1923 = vmatprep.subr.mxu1 %v1001_v26 }
  0x37   : > { %1924 = vmatpush3.msra.mxu1 %v1001_v26 }
  0x38   : > { %1925 = vmatprep.subr.mxu1 %v1000_v30 }
  0x39   : > { %509 = vperm.xlu0 %2045, %v460_v35   ;;  %1926 = vmatpush3.msra.mxu1 %v1000_v30 }
  0x3a   : > { %285 = vperm.xlu1 %2047, %v234_v34   ;;  %v999_v34 = vld [vmem:[%s3007_s3 + $0x58] sm:$0xff] }
  0x3b   : > { %1927 = vmatprep.subr.mxu1 %v999_v34 }
  0x3c   : > { %1928 = vmatpush3.msra.mxu1 %v999_v34 }
  0x3d   : > { %512 = vperm.xlu0 %2045, %v461_v37  }
  0x3e   : > { %288 = vperm.xlu1 %2047, %v235_v36  }
  0x41   : > { %515 = vperm.xlu0 %2045, %v462_v39   ;;  %v998_v39 = vld [vmem:[%s3007_s3 + $0x50] sm:$0xff] }
  0x42   : > { %291 = vperm.xlu1 %2047, %v236_v38   ;;  %1929 = vmatprep.subr.mxu1 %v998_v39 }
  0x43   : > { %1930 = vmatpush3.msra.mxu1 %v998_v39 }
  0x45   : > { %518 = vperm.xlu0 %2045, %v463_v41  }
  0x46   : > { %294 = vperm.xlu1 %2047, %v237_v40  }
  0x49   : > { %521 = vperm.xlu0 %2045, %v464_v43   ;;  %v997_v43 = vld [vmem:[%s3007_s3 + $0x48] sm:$0xff] }
  0x4a   : > { %297 = vperm.xlu1 %2047, %v238_v42   ;;  %1931 = vmatprep.subr.mxu1 %v997_v43 }
  0x4b   : > { %1932 = vmatpush3.msra.mxu1 %v997_v43 }
  0x4d   : > { %524 = vperm.xlu0 %2045, %v465_v45  }
  0x4e   : > { %300 = vperm.xlu1 %2047, %v239_v44  }
  0x51   : > { %527 = vperm.xlu0 %2045, %v466_v47  }
  0x52   : > { %303 = vperm.xlu1 %2047, %v240_v46   ;;  %v996_v46 = vld [vmem:[%s3007_s3 + $0x40] sm:$0xff] }
  0x53   : > { %1933 = vmatprep.subr.mxu1 %v996_v46 }
  0x54   : > { %1934 = vmatpush3.msra.mxu1 %v996_v46 }
  0x55   : > { %530 = vperm.xlu0 %2045, %v467_v49  }
  0x56   : > { %306 = vperm.xlu1 %2047, %v241_v48  }
  0x59   : > { %533 = vperm.xlu0 %2045, %v468_v51  }
  0x5a   : > { %309 = vperm.xlu1 %2047, %v242_v50   ;;  %v995_v50 = vld [vmem:[%s3007_s3 + $0x38] sm:$0xff] }
  0x5b   : > { %1935 = vmatprep.subr.mxu1 %v995_v50 }
  0x5c   : > { %1936 = vmatpush3.msra.mxu1 %v995_v50 }
  0x5d   : > { %536 = vperm.xlu0 %2045, %v469_v53   ;;  %v994_v53 = vld [vmem:[%s3007_s3 + $0x30] sm:$0xff] }
  0x5e   : > { %312 = vperm.xlu1 %2047, %v243_v52   ;;  %1937 = vmatprep.subr.mxu1 %v994_v53 }
  0x5f   : > { %1938 = vmatpush3.msra.mxu1 %v994_v53 }
  0x61   : > { %539 = vperm.xlu0 %2045, %v470_v55  }
  0x62   : > { %315 = vperm.xlu1 %2047, %v244_v54  }
  0x65   : > { %542 = vperm.xlu0 %2045, %v471_v57   ;;  %v993_v57 = vld [vmem:[%s3007_s3 + $0x28] sm:$0xff] }
  0x66   : > { %318 = vperm.xlu1 %2047, %v245_v56   ;;  %1939 = vmatprep.subr.mxu1 %v993_v57 }
  0x67   : > { %1940 = vmatpush3.msra.mxu1 %v993_v57 }
  0x69   : > { %545 = vperm.xlu0 %2045, %v472_v59  }
  0x6a   : > { %321 = vperm.xlu1 %2047, %v246_v58  }
  0x6d   : > { %548 = vperm.xlu0 %2045, %v473_v61  }
  0x6e   : > { %324 = vperm.xlu1 %2047, %v247_v60   ;;  %v992_v60 = vld [vmem:[%s3007_s3 + $0x20] sm:$0xff] }
  0x6f   : > { %1941 = vmatprep.subr.mxu1 %v992_v60 }
  0x70   : > { %1942 = vmatpush3.msra.mxu1 %v992_v60 }
  0x71   : > { %551 = vperm.xlu0 %2045, %v474_v63  }
  0x72   : > { %327 = vperm.xlu1 %2047, %v248_v62  }
  0x75   : > { %554 = vperm.xlu0 %2045, %v475_v1  }
  0x76   : > { %330 = vperm.xlu1 %2047, %v249_v0  }
  0x79   : > { %557 = vperm.xlu0 %2045, %v476_v3  }
  0x7a   : > { %333 = vperm.xlu1 %2047, %v250_v2  }
  0x7d   : > { %560 = vperm.xlu0 %2045, %v477_v5  }
  0x7e   : > { %336 = vperm.xlu1 %2047, %v251_v4  }
  0x81   : > { %563 = vperm.xlu0 %2045, %v478_v7  }
  0x82   : > { %339 = vperm.xlu1 %2047, %v252_v6  }
  0x85   : > { %566 = vperm.xlu0 %2045, %v479_v9  }
  0x86   : > { %342 = vperm.xlu1 %2047, %v253_v8  }
  0x89   : > { %569 = vperm.xlu0 %2045, %v480_v11  }
  0x8a   : > { %345 = vperm.xlu1 %2047, %v254_v10  }
  0x8d   : > { %572 = vperm.xlu0 %2045, %v481_v13  }
  0x8e   : > { %348 = vperm.xlu1 %2047, %v255_v12  }
  0x91   : > { %575 = vperm.xlu0 %2045, %v482_v15  }
  0x92   : > { %351 = vperm.xlu1 %2047, %v256_v14   ;;  %v265_v20 = vpop.permute.xlu1 %264 }
  0x93   : > { %v262_v21 = vpop.permute.xlu0 %261  ;;  %vm357_vm2 = vcmp.eq.s32.totalorder %v2408_v19, %v265_v20 }
  0x94   : > { %vm356_vm0 = vcmp.eq.s32.totalorder %v2408_v19, %v262_v21  ;;  %v1672_v35 = vsel %vm357_vm2, 1.0, %v2240_v27 }
  0x95   : > { %578 = vperm.xlu0 %2045, %v483_v18   ;;  %v1671_v28 = vsel %vm356_vm0, 1.0, %v2240_v27 }
  0x96   : > { %354 = vperm.xlu1 %2047, %v257_v16   ;;  %v268_v24 = vpop.permute.xlu1 %267 }
  0x97   : > { %vm358_vm3 = vcmp.eq.s32.totalorder %v2408_v19, %v268_v24 }
  0x98   : > { %v486_v25 = vpop.permute.xlu0 %485  ;;  %v1673_v36 = vsel %vm358_vm3, 1.0, %v2240_v27 }
  0x99   : > { %vm580_vm1 = vcmp.eq.s32.totalorder %v2408_v19, %v486_v25 }
  0x9a   : > { %v1703_v29 = vsel %vm580_vm1, 1.0, %v2240_v27 }
  0x9b   : > { %v676_v31 = vadd.f32 %v1703_v29, %v1671_v28  ;;  %v489_v32 = vpop.permute.xlu1 %488 }
  0x9c   : > { %v492_v33 = vpop.permute.xlu0 %491  ;;  %vm581_vm4 = vcmp.eq.s32.totalorder %v2408_v19, %v489_v32 }
  0x9d   : > { %vm582_vm5 = vcmp.eq.s32.totalorder %v2408_v19, %v492_v33  ;;  %1871 = vmatprep.mubr.f32.mxu0 %v676_v31  ;;  %v1704_v37 = vsel %vm581_vm4, 1.0, %v2240_v27 }
  0x9e   : > { %v1705_v38 = vsel %vm582_vm5, 1.0, %v2240_v27  ;;  %v677_v40 = vadd.f32 %v1704_v37, %v1672_v35 }
  0x9f   : > { %v678_v41 = vadd.f32 %v1705_v38, %v1673_v36 }
  0xa0   : > { %v495_v42 = vpop.permute.xlu0 %494  ;;  %v271_v44 = vpop.permute.xlu1 %270  ;;  %1872 = vmatmul.mubr.f32.vlgmr.msra.gmra.mxu0 %v677_v40 }
  0xa1   : > { %vm583_vm6 = vcmp.eq.s32.totalorder %v2408_v19, %v495_v42  ;;  %vm359_vm7 = vcmp.eq.s32.totalorder %v2408_v19, %v271_v44  ;;  %1874 = vmatprep.mubr.f32.mxu0 %v678_v41 }
  0xa2   : > { %v1706_v45 = vsel %vm583_vm6, 1.0, %v2240_v27  ;;  %v1674_v47 = vsel %vm359_vm7, 1.0, %v2240_v27 }
  0xa3   : > { %v679_v48 = vadd.f32 %v1706_v45, %v1674_v47 }
  0xa4   : > { %v498_v49 = vpop.permute.xlu0 %497 }
  0xa5   : > { %vm584_vm8 = vcmp.eq.s32.totalorder %v2408_v19, %v498_v49  ;;  %v274_v51 = vpop.permute.xlu1 %273  ;;  %1875 = vmatmul.mubr.f32.gmra.mxu0 %v679_v48 }
  0xa6   : > { %v1707_v52 = vsel %vm584_vm8, 1.0, %v2240_v27  ;;  %vm360_vm9 = vcmp.eq.s32.totalorder %v2408_v19, %v274_v51 }
  0xa7   : > { %v1675_v54 = vsel %vm360_vm9, 1.0, %v2240_v27 }
  0xa8   : > { %v680_v55 = vadd.f32 %v1707_v52, %v1675_v54  ;;  %v501_v56 = vpop.permute.xlu0 %500 }
  0xa9   : > { %vm585_vm10 = vcmp.eq.s32.totalorder %v2408_v19, %v501_v56  ;;  %v277_v58 = vpop.permute.xlu1 %276 }
  0xaa   : > { %v1708_v59 = vsel %vm585_vm10, 1.0, %v2240_v27  ;;  %vm361_vm11 = vcmp.eq.s32.totalorder %v2408_v19, %v277_v58  ;;  %1877 = vmatprep.mubr.f32.mxu0 %v680_v55 }
  0xab   : > { %v1676_v61 = vsel %vm361_vm11, 1.0, %v2240_v27 }
  0xac   : > { %v681_v62 = vadd.f32 %v1708_v59, %v1676_v61  ;;  %v504_v63 = vpop.permute.xlu0 %503 }
  0xad   : > { %vm586_vm12 = vcmp.eq.s32.totalorder %v2408_v19, %v504_v63  ;;  %v280_v0 = vpop.permute.xlu1 %279 }
  0xae   : > { %v1709_v1 = vsel %vm586_vm12, 1.0, %v2240_v27  ;;  %vm362_vm13 = vcmp.eq.s32.totalorder %v2408_v19, %v280_v0  ;;  %1878 = vmatmul.mubr.f32.gmra.mxu0 %v681_v62 }
  0xaf   : > { %v1677_v2 = vsel %vm362_vm13, 1.0, %v2240_v27 }
  0xb0   : > { %v682_v3 = vadd.f32 %v1709_v1, %v1677_v2  ;;  %v507_v4 = vpop.permute.xlu0 %506 }
  0xb1   : > { %vm587_vm14 = vcmp.eq.s32.totalorder %v2408_v19, %v507_v4  ;;  %v283_v5 = vpop.permute.xlu1 %282 }
  0xb2   : > { %v1710_v6 = vsel %vm587_vm14, 1.0, %v2240_v27  ;;  %vm363_vm15 = vcmp.eq.s32.totalorder %v2408_v19, %v283_v5  ;;  %1880 = vmatprep.mubr.f32.mxu0 %v682_v3  ;;  %v991_v3 = vld [vmem:[%s3007_s3 + $0x18] sm:$0xff] }
  0xb3   : > { %v1678_v7 = vsel %vm363_vm15, 1.0, %v2240_v27  ;;  %1943 = vmatprep.subr.mxu1 %v991_v3 }
  0xb4   : > { %v683_v8 = vadd.f32 %v1710_v6, %v1678_v7  ;;  %v510_v9 = vpop.permute.xlu0 %509  ;;  %1944 = vmatpush3.msra.mxu1 %v991_v3  ;;  %v990_v6 = vld [vmem:[%s3007_s3 + $0x10] sm:$0xff] }
  0xb5   : > { %vm588_vm0 = vcmp.eq.s32.totalorder %v2408_v19, %v510_v9  ;;  %v286_v10 = vpop.permute.xlu1 %285  ;;  %1945 = vmatprep.subr.mxu1 %v990_v6 }
  0xb6   : > { %v1711_v11 = vsel %vm588_vm0, 1.0, %v2240_v27  ;;  %vm364_vm1 = vcmp.eq.s32.totalorder %v2408_v19, %v286_v10  ;;  %1881 = vmatmul.mubr.f32.gmra.mxu0 %v683_v8  ;;  %1946 = vmatpush3.msra.mxu1 %v990_v6  ;;  %v989_v10 = vld [vmem:[%s3007_s3 + $0x8] sm:$0xff] }
  0xb7   : > { %v1679_v12 = vsel %vm364_vm1, 1.0, %v2240_v27  ;;  %1947 = vmatprep.subr.mxu1 %v989_v10 }
  0xb8   : > { %v684_v13 = vadd.f32 %v1711_v11, %v1679_v12  ;;  %v513_v14 = vpop.permute.xlu0 %512  ;;  %1948 = vmatpush3.msra.mxu1 %v989_v10 }
  0xb9   : > { %vm589_vm2 = vcmp.eq.s32.totalorder %v2408_v19, %v513_v14  ;;  %v289_v15 = vpop.permute.xlu1 %288 }
  0xba   : > { %v1712_v16 = vsel %vm589_vm2, 1.0, %v2240_v27  ;;  %vm365_vm3 = vcmp.eq.s32.totalorder %v2408_v19, %v289_v15  ;;  %1883 = vmatprep.mubr.f32.mxu0 %v684_v13  ;;  %v988_v13 = vld [vmem:[%s3007_s3] sm:$0xff] }
  0xbb   : > { %v1680_v17 = vsel %vm365_vm3, 1.0, %v2240_v27  ;;  %1949 = vmatprep.subr.mxu1 %v988_v13 }
  0xbc   : > { %v685_v18 = vadd.f32 %v1712_v16, %v1680_v17  ;;  %v516_v20 = vpop.permute.xlu0 %515  ;;  %1950 = vmatpush3.msra.mxu1 %v988_v13 }
  0xbd   : > { %vm590_vm4 = vcmp.eq.s32.totalorder %v2408_v19, %v516_v20  ;;  %v292_v21 = vpop.permute.xlu1 %291 }
  0xbe   : > { %v1713_v22 = vsel %vm590_vm4, 1.0, %v2240_v27  ;;  %vm366_vm5 = vcmp.eq.s32.totalorder %v2408_v19, %v292_v21  ;;  %1884 = vmatmul.mubr.f32.gmra.mxu0 %v685_v18 }
  0xbf   : > { %v1681_v23 = vsel %vm366_vm5, 1.0, %v2240_v27 }
  0xc0   : > { %v686_v24 = vadd.f32 %v1713_v22, %v1681_v23  ;;  %v519_v25 = vpop.permute.xlu0 %518 }
  0xc1   : > { %vm591_vm6 = vcmp.eq.s32.totalorder %v2408_v19, %v519_v25  ;;  %v295_v26 = vpop.permute.xlu1 %294 }
  0xc2   : > { %v1714_v28 = vsel %vm591_vm6, 1.0, %v2240_v27  ;;  %vm367_vm7 = vcmp.eq.s32.totalorder %v2408_v19, %v295_v26  ;;  %1886 = vmatprep.mubr.f32.mxu0 %v686_v24 }
  0xc3   : > { %v1682_v29 = vsel %vm367_vm7, 1.0, %v2240_v27 }
  0xc4   : > { %v687_v30 = vadd.f32 %v1714_v28, %v1682_v29  ;;  %v522_v31 = vpop.permute.xlu0 %521 }
  0xc5   : > { %vm592_vm8 = vcmp.eq.s32.totalorder %v2408_v19, %v522_v31  ;;  %v298_v32 = vpop.permute.xlu1 %297 }
  0xc6   : > { %v1715_v33 = vsel %vm592_vm8, 1.0, %v2240_v27  ;;  %vm368_vm9 = vcmp.eq.s32.totalorder %v2408_v19, %v298_v32  ;;  %1887 = vmatmul.mubr.f32.gmra.mxu0 %v687_v30 }
  0xc7   : > { %v1683_v34 = vsel %vm368_vm9, 1.0, %v2240_v27 }
  0xc8   : > { %v688_v35 = vadd.f32 %v1715_v33, %v1683_v34  ;;  %v525_v36 = vpop.permute.xlu0 %524 }
  0xc9   : > { %vm593_vm10 = vcmp.eq.s32.totalorder %v2408_v19, %v525_v36  ;;  %v301_v37 = vpop.permute.xlu1 %300 }
  0xca   : > { %v1716_v38 = vsel %vm593_vm10, 1.0, %v2240_v27  ;;  %vm369_vm11 = vcmp.eq.s32.totalorder %v2408_v19, %v301_v37  ;;  %1889 = vmatprep.mubr.f32.mxu0 %v688_v35 }
  0xcb   : > { %v1684_v39 = vsel %vm369_vm11, 1.0, %v2240_v27 }
  0xcc   : > { %v689_v40 = vadd.f32 %v1716_v38, %v1684_v39  ;;  %v528_v41 = vpop.permute.xlu0 %527 }
  0xcd   : > { %vm594_vm12 = vcmp.eq.s32.totalorder %v2408_v19, %v528_v41  ;;  %v304_v42 = vpop.permute.xlu1 %303 }
  0xce   : > { %v1717_v43 = vsel %vm594_vm12, 1.0, %v2240_v27  ;;  %vm370_vm13 = vcmp.eq.s32.totalorder %v2408_v19, %v304_v42  ;;  %1890 = vmatmul.mubr.f32.gmra.mxu0 %v689_v40 }
  0xcf   : > { %v1685_v44 = vsel %vm370_vm13, 1.0, %v2240_v27 }
  0xd0   : > { %v690_v45 = vadd.f32 %v1717_v43, %v1685_v44  ;;  %v531_v46 = vpop.permute.xlu0 %530 }
  0xd1   : > { %vm595_vm14 = vcmp.eq.s32.totalorder %v2408_v19, %v531_v46  ;;  %v307_v47 = vpop.permute.xlu1 %306 }
  0xd2   : > { %v1718_v48 = vsel %vm595_vm14, 1.0, %v2240_v27  ;;  %vm371_vm15 = vcmp.eq.s32.totalorder %v2408_v19, %v307_v47  ;;  %1892 = vmatprep.mubr.f32.mxu0 %v690_v45 }
  0xd3   : > { %v1686_v49 = vsel %vm371_vm15, 1.0, %v2240_v27 }
  0xd4   : > { %v691_v50 = vadd.f32 %v1718_v48, %v1686_v49  ;;  %v534_v51 = vpop.permute.xlu0 %533 }
  0xd5   : > { %vm596_vm0 = vcmp.eq.s32.totalorder %v2408_v19, %v534_v51  ;;  %v310_v52 = vpop.permute.xlu1 %309 }
  0xd6   : > { %v1719_v53 = vsel %vm596_vm0, 1.0, %v2240_v27  ;;  %vm372_vm1 = vcmp.eq.s32.totalorder %v2408_v19, %v310_v52  ;;  %1893 = vmatmul.mubr.f32.gmra.mxu0 %v691_v50 }
  0xd7   : > { %v1687_v54 = vsel %vm372_vm1, 1.0, %v2240_v27 }
  0xd8   : > { %v692_v55 = vadd.f32 %v1719_v53, %v1687_v54  ;;  %v537_v56 = vpop.permute.xlu0 %536 }
  0xd9   : > { %vm597_vm2 = vcmp.eq.s32.totalorder %v2408_v19, %v537_v56  ;;  %v313_v57 = vpop.permute.xlu1 %312 }
  0xda   : > { %v1720_v58 = vsel %vm597_vm2, 1.0, %v2240_v27  ;;  %vm373_vm3 = vcmp.eq.s32.totalorder %v2408_v19, %v313_v57  ;;  %1895 = vmatprep.mubr.f32.mxu0 %v692_v55 }
  0xdb   : > { %v1688_v59 = vsel %vm373_vm3, 1.0, %v2240_v27 }
  0xdc   : > { %v693_v60 = vadd.f32 %v1720_v58, %v1688_v59  ;;  %v540_v61 = vpop.permute.xlu0 %539 }
  0xdd   : > { %vm598_vm4 = vcmp.eq.s32.totalorder %v2408_v19, %v540_v61  ;;  %v316_v62 = vpop.permute.xlu1 %315 }
  0xde   : > { %v1721_v63 = vsel %vm598_vm4, 1.0, %v2240_v27  ;;  %vm374_vm5 = vcmp.eq.s32.totalorder %v2408_v19, %v316_v62  ;;  %1896 = vmatmul.mubr.f32.gmra.mxu0 %v693_v60 }
  0xdf   : > { %v1689_v0 = vsel %vm374_vm5, 1.0, %v2240_v27 }
  0xe0   : > { %v694_v1 = vadd.f32 %v1721_v63, %v1689_v0  ;;  %v543_v2 = vpop.permute.xlu0 %542 }
  0xe1   : > { %vm599_vm6 = vcmp.eq.s32.totalorder %v2408_v19, %v543_v2  ;;  %v319_v4 = vpop.permute.xlu1 %318 }
  0xe2   : > { %v1722_v5 = vsel %vm599_vm6, 1.0, %v2240_v27  ;;  %vm375_vm7 = vcmp.eq.s32.totalorder %v2408_v19, %v319_v4  ;;  %1898 = vmatprep.mubr.f32.mxu0 %v694_v1 }
  0xe3   : > { %v1690_v7 = vsel %vm375_vm7, 1.0, %v2240_v27 }
  0xe4   : > { %v695_v8 = vadd.f32 %v1722_v5, %v1690_v7  ;;  %v546_v9 = vpop.permute.xlu0 %545 }
  0xe5   : > { %vm600_vm8 = vcmp.eq.s32.totalorder %v2408_v19, %v546_v9  ;;  %v322_v11 = vpop.permute.xlu1 %321  ;;  %v2589_v9 = vld [vmem:[%s3006_s2] ss:$0 sm:$0xff] }
  0xe6   : > { %v1723_v12 = vsel %vm600_vm8, 1.0, %v2240_v27  ;;  %vm376_vm9 = vcmp.eq.s32.totalorder %v2408_v19, %v322_v11  ;;  %1899 = vmatmul.mubr.f32.gmra.mxu0 %v695_v8 }
  0xe7   : > { %v1691_v14 = vsel %vm376_vm9, 1.0, %v2240_v27 }
  0xe8   : > { %v696_v15 = vadd.f32 %v1723_v12, %v1691_v14  ;;  %v549_v16 = vpop.permute.xlu0 %548 }
  0xe9   : > { %vm601_vm10 = vcmp.eq.s32.totalorder %v2408_v19, %v549_v16  ;;  %v325_v17 = vpop.permute.xlu1 %324 }
  0xea   : > { %v1724_v18 = vsel %vm601_vm10, 1.0, %v2240_v27  ;;  %vm377_vm11 = vcmp.eq.s32.totalorder %v2408_v19, %v325_v17  ;;  %1901 = vmatprep.mubr.f32.mxu0 %v696_v15 }
  0xeb   : > { %v1692_v20 = vsel %vm377_vm11, 1.0, %v2240_v27 }
  0xec   : > { %v697_v21 = vadd.f32 %v1724_v18, %v1692_v20  ;;  %v552_v22 = vpop.permute.xlu0 %551 }
  0xed   : > { %vm602_vm12 = vcmp.eq.s32.totalorder %v2408_v19, %v552_v22  ;;  %v328_v23 = vpop.permute.xlu1 %327 }
  0xee   : > { %v1725_v24 = vsel %vm602_vm12, 1.0, %v2240_v27  ;;  %vm378_vm13 = vcmp.eq.s32.totalorder %v2408_v19, %v328_v23  ;;  %1902 = vmatmul.mubr.f32.gmra.mxu0 %v697_v21 }
  0xef   : > { %v1693_v25 = vsel %vm378_vm13, 1.0, %v2240_v27 }
  0xf0   : > { %v698_v26 = vadd.f32 %v1725_v24, %v1693_v25  ;;  %v555_v28 = vpop.permute.xlu0 %554 }
  0xf1   : > { %vm603_vm14 = vcmp.eq.s32.totalorder %v2408_v19, %v555_v28  ;;  %v331_v29 = vpop.permute.xlu1 %330 }
  0xf2   : > { %v1726_v30 = vsel %vm603_vm14, 1.0, %v2240_v27  ;;  %vm379_vm15 = vcmp.eq.s32.totalorder %v2408_v19, %v331_v29  ;;  %1904 = vmatprep.mubr.f32.mxu0 %v698_v26 }
  0xf3   : > { %v1694_v31 = vsel %vm379_vm15, 1.0, %v2240_v27 }
  0xf4   : > { %v699_v32 = vadd.f32 %v1726_v30, %v1694_v31  ;;  %v558_v33 = vpop.permute.xlu0 %557 }
  0xf5   : > { %vm604_vm0 = vcmp.eq.s32.totalorder %v2408_v19, %v558_v33  ;;  %v334_v34 = vpop.permute.xlu1 %333 }
  0xf6   : > { %v1727_v35 = vsel %vm604_vm0, 1.0, %v2240_v27  ;;  %vm380_vm1 = vcmp.eq.s32.totalorder %v2408_v19, %v334_v34  ;;  %1905 = vmatmul.mubr.f32.gmra.mxu0 %v699_v32 }
  0xf7   : > { %v1695_v36 = vsel %vm380_vm1, 1.0, %v2240_v27 }
  0xf8   : > { %v700_v37 = vadd.f32 %v1727_v35, %v1695_v36  ;;  %v561_v38 = vpop.permute.xlu0 %560 }
  0xf9   : > { %vm605_vm2 = vcmp.eq.s32.totalorder %v2408_v19, %v561_v38  ;;  %v337_v39 = vpop.permute.xlu1 %336 }
  0xfa   : > { %v1728_v40 = vsel %vm605_vm2, 1.0, %v2240_v27  ;;  %vm381_vm3 = vcmp.eq.s32.totalorder %v2408_v19, %v337_v39  ;;  %1907 = vmatprep.mubr.f32.mxu0 %v700_v37 }
  0xfb   : > { %v1696_v41 = vsel %vm381_vm3, 1.0, %v2240_v27 }
  0xfc   : > { %v701_v42 = vadd.f32 %v1728_v40, %v1696_v41  ;;  %v564_v43 = vpop.permute.xlu0 %563 }
  0xfd   : > { %vm606_vm4 = vcmp.eq.s32.totalorder %v2408_v19, %v564_v43  ;;  %v340_v44 = vpop.permute.xlu1 %339 }
  0xfe   : > { %v1729_v45 = vsel %vm606_vm4, 1.0, %v2240_v27  ;;  %vm382_vm5 = vcmp.eq.s32.totalorder %v2408_v19, %v340_v44  ;;  %1908 = vmatmul.mubr.f32.gmra.mxu0 %v701_v42 }
  0xff   : > { %v1697_v46 = vsel %vm382_vm5, 1.0, %v2240_v27 }
 0x100   : > { %v702_v47 = vadd.f32 %v1729_v45, %v1697_v46  ;;  %v567_v48 = vpop.permute.xlu0 %566 }
 0x101   : > { %vm607_vm6 = vcmp.eq.s32.totalorder %v2408_v19, %v567_v48  ;;  %v343_v49 = vpop.permute.xlu1 %342 }
 0x102   : > { %v1730_v50 = vsel %vm607_vm6, 1.0, %v2240_v27  ;;  %vm383_vm7 = vcmp.eq.s32.totalorder %v2408_v19, %v343_v49  ;;  %1910 = vmatprep.mubr.f32.mxu0 %v702_v47 }
 0x103   : > { %v1698_v51 = vsel %vm383_vm7, 1.0, %v2240_v27 }
 0x104   : > { %v703_v52 = vadd.f32 %v1730_v50, %v1698_v51  ;;  %v570_v53 = vpop.permute.xlu0 %569 }
 0x105   : > { %vm608_vm8 = vcmp.eq.s32.totalorder %v2408_v19, %v570_v53  ;;  %v346_v54 = vpop.permute.xlu1 %345 }
 0x106   : > { %v1731_v55 = vsel %vm608_vm8, 1.0, %v2240_v27  ;;  %vm384_vm9 = vcmp.eq.s32.totalorder %v2408_v19, %v346_v54  ;;  %1911 = vmatmul.mubr.f32.gmra.mxu0 %v703_v52 }
 0x107   : > { %v1699_v56 = vsel %vm384_vm9, 1.0, %v2240_v27 }
 0x108   : > { %v704_v57 = vadd.f32 %v1731_v55, %v1699_v56  ;;  %v573_v58 = vpop.permute.xlu0 %572 }
 0x109   : > { %vm609_vm10 = vcmp.eq.s32.totalorder %v2408_v19, %v573_v58  ;;  %v349_v59 = vpop.permute.xlu1 %348 }
 0x10a   : > { %v1732_v60 = vsel %vm609_vm10, 1.0, %v2240_v27  ;;  %vm385_vm11 = vcmp.eq.s32.totalorder %v2408_v19, %v349_v59  ;;  %1913 = vmatprep.mubr.f32.mxu0 %v704_v57 }
 0x10b   : > { %v1700_v61 = vsel %vm385_vm11, 1.0, %v2240_v27 }
 0x10c   : > { %v705_v62 = vadd.f32 %v1732_v60, %v1700_v61  ;;  %v576_v63 = vpop.permute.xlu0 %575 }
 0x10d   : > { %vm610_vm12 = vcmp.eq.s32.totalorder %v2408_v19, %v576_v63  ;;  %v352_v0 = vpop.permute.xlu1 %351 }
 0x10e   : > { %v1733_v1 = vsel %vm610_vm12, 1.0, %v2240_v27  ;;  %vm386_vm13 = vcmp.eq.s32.totalorder %v2408_v19, %v352_v0  ;;  %1914 = vmatmul.mubr.f32.gmra.mxu0 %v705_v62 }
 0x10f   : > { %v1701_v2 = vsel %vm386_vm13, 1.0, %v2240_v27 }
 0x110   : > { %v706_v3 = vadd.f32 %v1733_v1, %v1701_v2  ;;  %v579_v4 = vpop.permute.xlu0 %578 }
 0x111   : > { %vm611_vm14 = vcmp.eq.s32.totalorder %v2408_v19, %v579_v4  ;;  %v355_v5 = vpop.permute.xlu1 %354 }
 0x112   : > { %v1734_v6 = vsel %vm611_vm14, 1.0, %v2240_v27  ;;  %vm387_vm15 = vcmp.eq.s32.totalorder %v2408_v19, %v355_v5  ;;  %1916 = vmatprep.mubr.f32.mxu0 %v706_v3 }
 0x113   : > { %v1702_v7 = vsel %vm387_vm15, 1.0, %v2240_v27 }
 0x114   : > { %v707_v8 = vadd.f32 %v1734_v6, %v1702_v7 }
 0x116   : > { %1917 = vmatmul.mubr.f32.gmra.mxu0 %v707_v8 }
 0x160   : > { %v1873_v10 = vpop.f32.mrf.mxu0 }
 0x161   : > { %v803_v11 = vadd.f32 %v1873_v10, %v2589_v9 }
 0x162   : > { %v797_v12 = vpop.f32.mrf.mxu0 }
 0x163   : > { %v798_v13 = vadd.f32 %v2589_v9, %v797_v12  ;;  %v957_v16 = vmax.f32 %v803_v11, 0.0 }
 0x165   : > { %v1876_v14 = vpop.f32.mrf.mxu0  ;;  %v956_v15 = vmax.f32 %v798_v13, 0.0 }
 0x166   : > { %v813_v19 = vadd.f32 %v1876_v14, %v2589_v9 }
 0x167   : > { %v807_v17 = vpop.f32.mrf.mxu0  ;;  %1951 = vmatprep.mubr.f32.mxu1 %v956_v15 }
 0x168   : > { %v808_v27 = vadd.f32 %v2589_v9, %v807_v17  ;;  %1952 = vmatmul.mubr.f32.vlgmr.msra.gmra.mxu1 %v957_v16  ;;  %v959_v20 = vmax.f32 %v813_v19, 0.0 }
 0x16a   : > { %v958_v18 = vmax.f32 %v808_v27, 0.0 }
 0x16c   : > { %1954 = vmatprep.mubr.f32.mxu1 %v958_v18 }
 0x16d   : > { %1955 = vmatmul.mubr.f32.gmra.mxu1 %v959_v20 }
 0x16e   : > { %v1879_v21 = vpop.f32.mrf.mxu0 }
 0x16f   : > { %v823_v22 = vadd.f32 %v1879_v21, %v2589_v9 }
 0x170   : > { %v817_v23 = vpop.f32.mrf.mxu0 }
 0x171   : > { %v818_v24 = vadd.f32 %v2589_v9, %v817_v23  ;;  %v961_v26 = vmax.f32 %v823_v22, 0.0 }
 0x173   : > { %v960_v25 = vmax.f32 %v818_v24, 0.0 }
 0x175   : > { %1957 = vmatprep.mubr.f32.mxu1 %v960_v25 }
 0x176   : > { %v1882_v28 = vpop.f32.mrf.mxu0  ;;  %1958 = vmatmul.mubr.f32.gmra.mxu1 %v961_v26 }
 0x177   : > { %v833_v29 = vadd.f32 %v1882_v28, %v2589_v9 }
 0x178   : > { %v827_v30 = vpop.f32.mrf.mxu0 }
 0x179   : > { %v828_v31 = vadd.f32 %v2589_v9, %v827_v30  ;;  %v963_v33 = vmax.f32 %v833_v29, 0.0 }
 0x17b   : > { %v962_v32 = vmax.f32 %v828_v31, 0.0 }
 0x17d   : > { %1960 = vmatprep.mubr.f32.mxu1 %v962_v32 }
 0x17e   : > { %v1885_v34 = vpop.f32.mrf.mxu0  ;;  %1961 = vmatmul.mubr.f32.gmra.mxu1 %v963_v33 }
 0x17f   : > { %v843_v35 = vadd.f32 %v1885_v34, %v2589_v9 }
 0x180   : > { %v837_v36 = vpop.f32.mrf.mxu0 }
 0x181   : > { %v838_v37 = vadd.f32 %v2589_v9, %v837_v36  ;;  %v965_v39 = vmax.f32 %v843_v35, 0.0 }
 0x183   : > { %v964_v38 = vmax.f32 %v838_v37, 0.0 }
 0x185   : > { %1963 = vmatprep.mubr.f32.mxu1 %v964_v38 }
 0x186   : > { %v1888_v40 = vpop.f32.mrf.mxu0  ;;  %1964 = vmatmul.mubr.f32.gmra.mxu1 %v965_v39 }
 0x187   : > { %v853_v41 = vadd.f32 %v1888_v40, %v2589_v9 }
 0x188   : > { %v847_v42 = vpop.f32.mrf.mxu0 }
 0x189   : > { %v848_v43 = vadd.f32 %v2589_v9, %v847_v42  ;;  %v967_v45 = vmax.f32 %v853_v41, 0.0 }
 0x18b   : > { %v966_v44 = vmax.f32 %v848_v43, 0.0  ;;  %v2626_v43 = vld [vmem:[%s3008_s4] ss:$0 sm:$0xff] }
 0x18d   : > { %1966 = vmatprep.mubr.f32.mxu1 %v966_v44 }
 0x18e   : > { %v1891_v46 = vpop.f32.mrf.mxu0  ;;  %1967 = vmatmul.mubr.f32.gmra.mxu1 %v967_v45 }
 0x18f   : > { %v863_v47 = vadd.f32 %v1891_v46, %v2589_v9 }
 0x190   : > { %v857_v48 = vpop.f32.mrf.mxu0 }
 0x191   : > { %v858_v49 = vadd.f32 %v2589_v9, %v857_v48  ;;  %v969_v51 = vmax.f32 %v863_v47, 0.0 }
 0x193   : > { %v968_v50 = vmax.f32 %v858_v49, 0.0 }
 0x195   : > { %1969 = vmatprep.mubr.f32.mxu1 %v968_v50 }
 0x196   : > { %v1894_v52 = vpop.f32.mrf.mxu0  ;;  %1970 = vmatmul.mubr.f32.gmra.mxu1 %v969_v51 }
 0x197   : > { %v873_v53 = vadd.f32 %v1894_v52, %v2589_v9 }
 0x198   : > { %v867_v54 = vpop.f32.mrf.mxu0 }
 0x199   : > { %v868_v55 = vadd.f32 %v2589_v9, %v867_v54  ;;  %v971_v57 = vmax.f32 %v873_v53, 0.0 }
 0x19b   : > { %v970_v56 = vmax.f32 %v868_v55, 0.0 }
 0x19d   : > { %1972 = vmatprep.mubr.f32.mxu1 %v970_v56 }
 0x19e   : > { %v1897_v58 = vpop.f32.mrf.mxu0  ;;  %1973 = vmatmul.mubr.f32.gmra.mxu1 %v971_v57 }
 0x19f   : > { %v883_v59 = vadd.f32 %v1897_v58, %v2589_v9 }
 0x1a0   : > { %v877_v60 = vpop.f32.mrf.mxu0 }
 0x1a1   : > { %v878_v61 = vadd.f32 %v2589_v9, %v877_v60  ;;  %v973_v63 = vmax.f32 %v883_v59, 0.0 }
 0x1a3   : > { %v972_v62 = vmax.f32 %v878_v61, 0.0 }
 0x1a5   : > { %1975 = vmatprep.mubr.f32.mxu1 %v972_v62 }
 0x1a6   : > { %v1900_v0 = vpop.f32.mrf.mxu0  ;;  %1976 = vmatmul.mubr.f32.gmra.mxu1 %v973_v63 }
 0x1a7   : > { %v893_v1 = vadd.f32 %v1900_v0, %v2589_v9 }
 0x1a8   : > { %v887_v2 = vpop.f32.mrf.mxu0 }
 0x1a9   : > { %v888_v3 = vadd.f32 %v2589_v9, %v887_v2  ;;  %v975_v5 = vmax.f32 %v893_v1, 0.0 }
 0x1ab   : > { %v974_v4 = vmax.f32 %v888_v3, 0.0 }
 0x1ad   : > { %1978 = vmatprep.mubr.f32.mxu1 %v974_v4 }
 0x1ae   : > { %v1903_v6 = vpop.f32.mrf.mxu0  ;;  %1979 = vmatmul.mubr.f32.gmra.mxu1 %v975_v5 }
 0x1af   : > { %v903_v7 = vadd.f32 %v1903_v6, %v2589_v9 }
 0x1b0   : > { %v897_v8 = vpop.f32.mrf.mxu0 }
 0x1b1   : > { %v898_v10 = vadd.f32 %v2589_v9, %v897_v8  ;;  %v977_v12 = vmax.f32 %v903_v7, 0.0 }
 0x1b3   : > { %v976_v11 = vmax.f32 %v898_v10, 0.0 }
 0x1b5   : > { %1981 = vmatprep.mubr.f32.mxu1 %v976_v11 }
 0x1b6   : > { %v1906_v13 = vpop.f32.mrf.mxu0  ;;  %1982 = vmatmul.mubr.f32.gmra.mxu1 %v977_v12 }
 0x1b7   : > { %v913_v14 = vadd.f32 %v1906_v13, %v2589_v9 }
 0x1b8   : > { %v907_v15 = vpop.f32.mrf.mxu0 }
 0x1b9   : > { %v908_v16 = vadd.f32 %v2589_v9, %v907_v15  ;;  %v979_v17 = vmax.f32 %v913_v14, 0.0 }
 0x1bb   : > { %v978_v19 = vmax.f32 %v908_v16, 0.0 }
 0x1bd   : > { %1984 = vmatprep.mubr.f32.mxu1 %v978_v19 }
 0x1be   : > { %v1909_v27 = vpop.f32.mrf.mxu0  ;;  %1985 = vmatmul.mubr.f32.gmra.mxu1 %v979_v17 }
 0x1bf   : > { %v923_v18 = vadd.f32 %v1909_v27, %v2589_v9 }
 0x1c0   : > { %v917_v20 = vpop.f32.mrf.mxu0 }
 0x1c1   : > { %v918_v21 = vadd.f32 %v2589_v9, %v917_v20  ;;  %v981_v23 = vmax.f32 %v923_v18, 0.0 }
 0x1c3   : > { %v980_v22 = vmax.f32 %v918_v21, 0.0 }
 0x1c5   : > { %1987 = vmatprep.mubr.f32.mxu1 %v980_v22 }
 0x1c6   : > { %v1912_v24 = vpop.f32.mrf.mxu0  ;;  %1988 = vmatmul.mubr.f32.gmra.mxu1 %v981_v23 }
 0x1c7   : > { %v933_v25 = vadd.f32 %v1912_v24, %v2589_v9 }
 0x1c8   : > { %v927_v26 = vpop.f32.mrf.mxu0 }
 0x1c9   : > { %v928_v28 = vadd.f32 %v2589_v9, %v927_v26  ;;  %v983_v30 = vmax.f32 %v933_v25, 0.0 }
 0x1cb   : > { %v982_v29 = vmax.f32 %v928_v28, 0.0 }
 0x1cd   : > { %1990 = vmatprep.mubr.f32.mxu1 %v982_v29 }
 0x1ce   : > { %v1915_v31 = vpop.f32.mrf.mxu0  ;;  %1991 = vmatmul.mubr.f32.gmra.mxu1 %v983_v30 }
 0x1cf   : > { %v943_v32 = vadd.f32 %v1915_v31, %v2589_v9 }
 0x1d0   : > { %v937_v33 = vpop.f32.mrf.mxu0 }
 0x1d1   : > { %v938_v34 = vadd.f32 %v2589_v9, %v937_v33  ;;  %v985_v36 = vmax.f32 %v943_v32, 0.0 }
 0x1d3   : > { %v984_v35 = vmax.f32 %v938_v34, 0.0 }
 0x1d5   : > { %1993 = vmatprep.mubr.f32.mxu1 %v984_v35 }
 0x1d6   : > { %v1918_v37 = vpop.f32.mrf.mxu0  ;;  %1994 = vmatmul.mubr.f32.gmra.mxu1 %v985_v36 }
 0x1d7   : > { %v953_v38 = vadd.f32 %v1918_v37, %v2589_v9 }
 0x1d8   : > { %v947_v39 = vpop.f32.mrf.mxu0 }
 0x1d9   : > { %v948_v40 = vadd.f32 %v2589_v9, %v947_v39  ;;  %v987_v42 = vmax.f32 %v953_v38, 0.0 }
 0x1db   : > { %v986_v41 = vmax.f32 %v948_v40, 0.0 }
 0x1dd   : > { %1996 = vmatprep.mubr.f32.mxu1 %v986_v41 }
 0x1de   : > { %1997 = vmatmul.mubr.f32.gmra.mxu1 %v987_v42 }
 0x228   : > { %v1953_v44 = vpop.f32.mrf.mxu1 }
 0x229   : > { %v2629_v45 = vadd.f32 %v1953_v44, %v2626_v43 }
 0x22a   : > { %v1077_v46 = vpop.f32.mrf.mxu1 }
 0x22b   : > { %v2632_v47 = vadd.f32 %v2626_v43, %v1077_v46  ;;  %1238 = vmax.xlane.f32.xlu0 %v2629_v45 }
 0x22d   : > { %1236 = vmax.xlane.f32.xlu1 %v2632_v47  ;;  %v1956_v9 = vpop.f32.mrf.mxu1 }
 0x22e   : > { %v2637_v48 = vadd.f32 %v1956_v9, %v2626_v43 }
 0x22f   : > { %v1087_v49 = vpop.f32.mrf.mxu1 }
 0x230   : > { %v2640_v50 = vadd.f32 %v2626_v43, %v1087_v49 }
 0x231   : > { %1242 = vmax.xlane.f32.xlu1 %v2637_v48 }
 0x232   : > { %1240 = vmax.xlane.f32.xlu0 %v2640_v50 }
 0x236   : > { %v1959_v51 = vpop.f32.mrf.mxu1 }
 0x237   : > { %v2645_v52 = vadd.f32 %v1959_v51, %v2626_v43 }
 0x238   : > { %v1097_v53 = vpop.f32.mrf.mxu1 }
 0x239   : > { %v2648_v54 = vadd.f32 %v2626_v43, %v1097_v53  ;;  %1246 = vmax.xlane.f32.xlu1 %v2645_v52 }
 0x23b   : > { %1244 = vmax.xlane.f32.xlu0 %v2648_v54 }
 0x23e   : > { %v1962_v55 = vpop.f32.mrf.mxu1 }
 0x23f   : > { %v2653_v56 = vadd.f32 %v1962_v55, %v2626_v43 }
 0x240   : > { %v1107_v57 = vpop.f32.mrf.mxu1 }
 0x241   : > { %v2656_v58 = vadd.f32 %v2626_v43, %v1107_v57  ;;  %1250 = vmax.xlane.f32.xlu1 %v2653_v56 }
 0x243   : > { %1248 = vmax.xlane.f32.xlu0 %v2656_v58 }
 0x246   : > { %v1965_v59 = vpop.f32.mrf.mxu1 }
 0x247   : > { %v2661_v60 = vadd.f32 %v1965_v59, %v2626_v43 }
 0x248   : > { %v1117_v61 = vpop.f32.mrf.mxu1 }
 0x249   : > { %v2664_v62 = vadd.f32 %v2626_v43, %v1117_v61  ;;  %1254 = vmax.xlane.f32.xlu1 %v2661_v60 }
 0x24b   : > { %1252 = vmax.xlane.f32.xlu0 %v2664_v62 }
 0x24e   : > { %v1968_v63 = vpop.f32.mrf.mxu1 }
 0x24f   : > { %v2669_v0 = vadd.f32 %v1968_v63, %v2626_v43 }
 0x250   : > { %v1127_v1 = vpop.f32.mrf.mxu1 }
 0x251   : > { %v2672_v2 = vadd.f32 %v2626_v43, %v1127_v1  ;;  %1258 = vmax.xlane.f32.xlu1 %v2669_v0 }
 0x253   : > { %1256 = vmax.xlane.f32.xlu0 %v2672_v2 }
 0x256   : > { %v1971_v3 = vpop.f32.mrf.mxu1 }
 0x257   : > { %v2677_v4 = vadd.f32 %v1971_v3, %v2626_v43 }
 0x258   : > { %v1137_v5 = vpop.f32.mrf.mxu1 }
 0x259   : > { %v2680_v6 = vadd.f32 %v2626_v43, %v1137_v5  ;;  %1262 = vmax.xlane.f32.xlu1 %v2677_v4 }
 0x25b   : > { %1260 = vmax.xlane.f32.xlu0 %v2680_v6 }
 0x25e   : > { %v1974_v7 = vpop.f32.mrf.mxu1 }
 0x25f   : > { %v2685_v8 = vadd.f32 %v1974_v7, %v2626_v43 }
 0x260   : > { %v1147_v10 = vpop.f32.mrf.mxu1 }
 0x261   : > { %v2688_v11 = vadd.f32 %v2626_v43, %v1147_v10  ;;  %1266 = vmax.xlane.f32.xlu1 %v2685_v8 }
 0x263   : > { %1264 = vmax.xlane.f32.xlu0 %v2688_v11 }
 0x266   : > { %v1977_v12 = vpop.f32.mrf.mxu1 }
 0x267   : > { %v2693_v13 = vadd.f32 %v1977_v12, %v2626_v43 }
 0x268   : > { %v1157_v14 = vpop.f32.mrf.mxu1 }
 0x269   : > { %v2696_v15 = vadd.f32 %v2626_v43, %v1157_v14  ;;  %1270 = vmax.xlane.f32.xlu1 %v2693_v13 }
 0x26b   : > { %1268 = vmax.xlane.f32.xlu0 %v2696_v15 }
 0x26e   : > { %v1980_v16 = vpop.f32.mrf.mxu1 }
 0x26f   : > { %v2701_v19 = vadd.f32 %v1980_v16, %v2626_v43 }
 0x270   : > { %v1167_v17 = vpop.f32.mrf.mxu1 }
 0x271   : > { %v2704_v27 = vadd.f32 %v2626_v43, %v1167_v17  ;;  %1274 = vmax.xlane.f32.xlu1 %v2701_v19 }
 0x273   : > { %1272 = vmax.xlane.f32.xlu0 %v2704_v27 }
 0x276   : > { %v1983_v18 = vpop.f32.mrf.mxu1 }
 0x277   : > { %v2709_v20 = vadd.f32 %v1983_v18, %v2626_v43 }
 0x278   : > { %v1177_v21 = vpop.f32.mrf.mxu1 }
 0x279   : > { %v2712_v22 = vadd.f32 %v2626_v43, %v1177_v21  ;;  %1278 = vmax.xlane.f32.xlu1 %v2709_v20 }
 0x27b   : > { %1276 = vmax.xlane.f32.xlu0 %v2712_v22 }
 0x27e   : > { %v1986_v23 = vpop.f32.mrf.mxu1 }
 0x27f   : > { %v2717_v24 = vadd.f32 %v1986_v23, %v2626_v43 }
 0x280   : > { %v1187_v25 = vpop.f32.mrf.mxu1 }
 0x281   : > { %v2720_v26 = vadd.f32 %v2626_v43, %v1187_v25  ;;  %1282 = vmax.xlane.f32.xlu1 %v2717_v24 }
 0x283   : > { %1280 = vmax.xlane.f32.xlu0 %v2720_v26 }
 0x286   : > { %v1989_v28 = vpop.f32.mrf.mxu1 }
 0x287   : > { %v2725_v29 = vadd.f32 %v1989_v28, %v2626_v43 }
 0x288   : > { %v1197_v30 = vpop.f32.mrf.mxu1 }
 0x289   : > { %v2728_v31 = vadd.f32 %v2626_v43, %v1197_v30  ;;  %1286 = vmax.xlane.f32.xlu1 %v2725_v29 }
 0x28b   : > { %1284 = vmax.xlane.f32.xlu0 %v2728_v31 }
 0x28e   : > { %v1992_v32 = vpop.f32.mrf.mxu1 }
 0x28f   : > { %v2733_v33 = vadd.f32 %v1992_v32, %v2626_v43 }
 0x290   : > { %v1207_v34 = vpop.f32.mrf.mxu1 }
 0x291   : > { %v2736_v35 = vadd.f32 %v2626_v43, %v1207_v34  ;;  %1290 = vmax.xlane.f32.xlu1 %v2733_v33 }
 0x293   : > { %1288 = vmax.xlane.f32.xlu0 %v2736_v35 }
 0x296   : > { %v1995_v36 = vpop.f32.mrf.mxu1 }
 0x297   : > { %v2741_v37 = vadd.f32 %v1995_v36, %v2626_v43 }
 0x298   : > { %v1217_v38 = vpop.f32.mrf.mxu1 }
 0x299   : > { %v2744_v39 = vadd.f32 %v2626_v43, %v1217_v38  ;;  %1294 = vmax.xlane.f32.xlu1 %v2741_v37 }
 0x29b   : > { %1292 = vmax.xlane.f32.xlu0 %v2744_v39 }
 0x29e   : > { %v1998_v40 = vpop.f32.mrf.mxu1 }
 0x29f   : > { %v2749_v41 = vadd.f32 %v1998_v40, %v2626_v43 }
 0x2a0   : > { %v1227_v42 = vpop.f32.mrf.mxu1 }
 0x2a1   : > { %v2752_v44 = vadd.f32 %v2626_v43, %v1227_v42  ;;  %1298 = vmax.xlane.f32.xlu1 %v2749_v41 }
 0x2a3   : > { %1296 = vmax.xlane.f32.xlu0 %v2752_v44 }
 0x2b4   : > { %v1239_v46 = vpop.xlane.xlu0 %1238 }
 0x2b5   : > { %v2757_v9 = vsub.f32 %v2629_v45, %v1239_v46 }
 0x2b6   : > { %v1237_v49 = vpop.xlane.xlu1 %1236 }
 0x2b7   : > { %v1334_v51 = vmul.f32 1.442695, %v2757_v9  ;;  %v2761_v53 = vsub.f32 %v2632_v47, %v1237_v49 }
 0x2b9   : > { %2048 = vpow2.f32 %v1334_v51  ;;  %v1332_v55 = vmul.f32 1.442695, %v2761_v53 }
 0x2ba   : > { %v1243_v57 = vpop.xlane.xlu1 %1242 }
 0x2bb   : > { %2050 = vpow2.f32 %v1332_v55  ;;  %v2765_v43 = vsub.f32 %v2637_v48, %v1243_v57  ;;  %v1241_v59 = vpop.xlane.xlu0 %1240 }
 0x2bc   : > { %v2768_v61 = vsub.f32 %v2640_v50, %v1241_v59 }
 0x2bd   : > { %v1338_v45 = vmul.f32 1.442695, %v2765_v43 }
 0x2be   : > { %v1336_v63 = vmul.f32 1.442695, %v2768_v61 }
 0x2bf   : > { %2052 = vpow2.f32 %v1338_v45 }
 0x2c0   : > { %2054 = vpow2.f32 %v1336_v63 }
 0x2c2   : > { %v1247_v47 = vpop.xlane.xlu1 %1246 }
 0x2c3   : > { %v2773_v1 = vsub.f32 %v2645_v52, %v1247_v47 }
 0x2c4   : > { %v1245_v3 = vpop.xlane.xlu0 %1244 }
 0x2c5   : > { %v1342_v5 = vmul.f32 1.442695, %v2773_v1  ;;  %v2777_v48 = vsub.f32 %v2648_v54, %v1245_v3 }
 0x2c6   : > { %v2049_v7 = vpop.eup %2048 }
 0x2c7   : > { %2056 = vpow2.f32 %v1342_v5  ;;  %v1340_v50 = vmul.f32 1.442695, %v2777_v48  ;;  %1398 = vadd.xlane.f32.xlu1 %v2049_v7 }
 0x2c8   : > { %v2051_v10 = vpop.eup %2050 }
 0x2c9   : > { %2058 = vpow2.f32 %v1340_v50  ;;  %1396 = vadd.xlane.f32.xlu0 %v2051_v10 }
 0x2ca   : > { %v1251_v12 = vpop.xlane.xlu1 %1250 }
 0x2cb   : > { %v2781_v14 = vsub.f32 %v2653_v56, %v1251_v12 }
 0x2cc   : > { %v1249_v52 = vpop.xlane.xlu0 %1248  ;;  %v2053_v16 = vpop.eup %2052 }
 0x2cd   : > { %v1346_v17 = vmul.f32 1.442695, %v2781_v14  ;;  %v2785_v18 = vsub.f32 %v2656_v58, %v1249_v52  ;;  %v2055_v54 = vpop.eup %2054  ;;  %1402 = vadd.xlane.f32.xlu1 %v2053_v16 }
 0x2ce   : > { %1400 = vadd.xlane.f32.xlu0 %v2055_v54 }
 0x2cf   : > { %2060 = vpow2.f32 %v1346_v17  ;;  %v1344_v21 = vmul.f32 1.442695, %v2785_v18 }
 0x2d1   : > { %2062 = vpow2.f32 %v1344_v21 }
 0x2d2   : > { %v1255_v23 = vpop.xlane.xlu1 %1254 }
 0x2d3   : > { %v2789_v25 = vsub.f32 %v2661_v60, %v1255_v23 }
 0x2d4   : > { %v2057_v56 = vpop.eup %2056  ;;  %v1253_v28 = vpop.xlane.xlu0 %1252 }
 0x2d5   : > { %v1350_v30 = vmul.f32 1.442695, %v2789_v25  ;;  %v2793_v32 = vsub.f32 %v2664_v62, %v1253_v28  ;;  %1406 = vadd.xlane.f32.xlu1 %v2057_v56 }
 0x2d6   : > { %v2059_v58 = vpop.eup %2058 }
 0x2d7   : > { %2064 = vpow2.f32 %v1350_v30  ;;  %v1348_v34 = vmul.f32 1.442695, %v2793_v32  ;;  %1404 = vadd.xlane.f32.xlu0 %v2059_v58 }
 0x2d9   : > { %2066 = vpow2.f32 %v1348_v34 }
 0x2da   : > { %v1259_v36 = vpop.xlane.xlu1 %1258 }
 0x2db   : > { %v2797_v38 = vsub.f32 %v2669_v0, %v1259_v36 }
 0x2dc   : > { %v2061_v60 = vpop.eup %2060  ;;  %v1257_v40 = vpop.xlane.xlu0 %1256 }
 0x2dd   : > { %v1354_v42 = vmul.f32 1.442695, %v2797_v38  ;;  %v2801_v46 = vsub.f32 %v2672_v2, %v1257_v40  ;;  %1410 = vadd.xlane.f32.xlu1 %v2061_v60 }
 0x2de   : > { %v2063_v62 = vpop.eup %2062 }
 0x2df   : > { %2068 = vpow2.f32 %v1354_v42  ;;  %v1352_v49 = vmul.f32 1.442695, %v2801_v46  ;;  %1408 = vadd.xlane.f32.xlu0 %v2063_v62 }
 0x2e1   : > { %2070 = vpow2.f32 %v1352_v49 }
 0x2e2   : > { %v1263_v51 = vpop.xlane.xlu1 %1262 }
 0x2e3   : > { %v2805_v55 = vsub.f32 %v2677_v4, %v1263_v51 }
 0x2e4   : > { %v2065_v0 = vpop.eup %2064  ;;  %v1261_v57 = vpop.xlane.xlu0 %1260 }
 0x2e5   : > { %v1358_v59 = vmul.f32 1.442695, %v2805_v55  ;;  %v2809_v45 = vsub.f32 %v2680_v6, %v1261_v57  ;;  %1414 = vadd.xlane.f32.xlu1 %v2065_v0 }
 0x2e6   : > { %v2067_v2 = vpop.eup %2066 }
 0x2e7   : > { %2072 = vpow2.f32 %v1358_v59  ;;  %v1356_v63 = vmul.f32 1.442695, %v2809_v45  ;;  %1412 = vadd.xlane.f32.xlu0 %v2067_v2 }
 0x2e9   : > { %2074 = vpow2.f32 %v1356_v63 }
 0x2ea   : > { %v1267_v47 = vpop.xlane.xlu1 %1266 }
 0x2eb   : > { %v2813_v3 = vsub.f32 %v2685_v8, %v1267_v47 }
 0x2ec   : > { %v2069_v4 = vpop.eup %2068  ;;  %v1265_v5 = vpop.xlane.xlu0 %1264 }
 0x2ed   : > { %v1362_v7 = vmul.f32 1.442695, %v2813_v3  ;;  %v2817_v50 = vsub.f32 %v2688_v11, %v1265_v5  ;;  %1418 = vadd.xlane.f32.xlu1 %v2069_v4 }
 0x2ee   : > { %v2071_v6 = vpop.eup %2070 }
 0x2ef   : > { %2076 = vpow2.f32 %v1362_v7  ;;  %v1360_v10 = vmul.f32 1.442695, %v2817_v50  ;;  %1416 = vadd.xlane.f32.xlu0 %v2071_v6 }
 0x2f1   : > { %2078 = vpow2.f32 %v1360_v10 }
 0x2f2   : > { %v1271_v12 = vpop.xlane.xlu1 %1270 }
 0x2f3   : > { %v2821_v52 = vsub.f32 %v2693_v13, %v1271_v12 }
 0x2f4   : > { %v2073_v8 = vpop.eup %2072  ;;  %v1269_v16 = vpop.xlane.xlu0 %1268 }
 0x2f5   : > { %v1366_v17 = vmul.f32 1.442695, %v2821_v52  ;;  %v2825_v54 = vsub.f32 %v2696_v15, %v1269_v16  ;;  %1422 = vadd.xlane.f32.xlu1 %v2073_v8 }
 0x2f6   : > { %v2075_v11 = vpop.eup %2074 }
 0x2f7   : > { %2080 = vpow2.f32 %v1366_v17  ;;  %v1364_v21 = vmul.f32 1.442695, %v2825_v54  ;;  %1420 = vadd.xlane.f32.xlu0 %v2075_v11 }
 0x2f9   : > { %2082 = vpow2.f32 %v1364_v21 }
 0x2fa   : > { %v1275_v23 = vpop.xlane.xlu1 %1274 }
 0x2fb   : > { %v2829_v56 = vsub.f32 %v2701_v19, %v1275_v23 }
 0x2fc   : > { %v2077_v13 = vpop.eup %2076  ;;  %v1273_v28 = vpop.xlane.xlu0 %1272 }
 0x2fd   : > { %v1370_v30 = vmul.f32 1.442695, %v2829_v56  ;;  %v2833_v58 = vsub.f32 %v2704_v27, %v1273_v28  ;;  %1426 = vadd.xlane.f32.xlu1 %v2077_v13 }
 0x2fe   : > { %v2079_v15 = vpop.eup %2078 }
 0x2ff   : > { %2084 = vpow2.f32 %v1370_v30  ;;  %v1368_v34 = vmul.f32 1.442695, %v2833_v58  ;;  %1424 = vadd.xlane.f32.xlu0 %v2079_v15 }
 0x301   : > { %2086 = vpow2.f32 %v1368_v34 }
 0x302   : > { %v1279_v36 = vpop.xlane.xlu1 %1278 }
 0x303   : > { %v2837_v60 = vsub.f32 %v2709_v20, %v1279_v36 }
 0x304   : > { %v2081_v19 = vpop.eup %2080  ;;  %v1277_v40 = vpop.xlane.xlu0 %1276 }
 0x305   : > { %v1374_v42 = vmul.f32 1.442695, %v2837_v60  ;;  %v2841_v62 = vsub.f32 %v2712_v22, %v1277_v40  ;;  %1430 = vadd.xlane.f32.xlu1 %v2081_v19 }
 0x306   : > { %v2083_v27 = vpop.eup %2082 }
 0x307   : > { %2088 = vpow2.f32 %v1374_v42  ;;  %v1372_v49 = vmul.f32 1.442695, %v2841_v62  ;;  %1428 = vadd.xlane.f32.xlu0 %v2083_v27 }
 0x309   : > { %2090 = vpow2.f32 %v1372_v49 }
 0x30a   : > { %v1283_v51 = vpop.xlane.xlu1 %1282 }
 0x30b   : > { %v2845_v0 = vsub.f32 %v2717_v24, %v1283_v51 }
 0x30c   : > { %v2085_v20 = vpop.eup %2084  ;;  %v1281_v57 = vpop.xlane.xlu0 %1280 }
 0x30d   : > { %v1378_v59 = vmul.f32 1.442695, %v2845_v0  ;;  %v2849_v2 = vsub.f32 %v2720_v26, %v1281_v57  ;;  %1434 = vadd.xlane.f32.xlu1 %v2085_v20 }
 0x30e   : > { %v2087_v22 = vpop.eup %2086 }
 0x30f   : > { %2092 = vpow2.f32 %v1378_v59  ;;  %v1376_v63 = vmul.f32 1.442695, %v2849_v2  ;;  %1432 = vadd.xlane.f32.xlu0 %v2087_v22 }
 0x311   : > { %2094 = vpow2.f32 %v1376_v63 }
 0x312   : > { %v1287_v47 = vpop.xlane.xlu1 %1286 }
 0x313   : > { %v2853_v4 = vsub.f32 %v2725_v29, %v1287_v47 }
 0x314   : > { %v2089_v24 = vpop.eup %2088  ;;  %v1285_v5 = vpop.xlane.xlu0 %1284 }
 0x315   : > { %v1382_v7 = vmul.f32 1.442695, %v2853_v4  ;;  %v2857_v6 = vsub.f32 %v2728_v31, %v1285_v5  ;;  %1438 = vadd.xlane.f32.xlu1 %v2089_v24 }
 0x316   : > { %v2091_v26 = vpop.eup %2090 }
 0x317   : > { %2096 = vpow2.f32 %v1382_v7  ;;  %v1380_v10 = vmul.f32 1.442695, %v2857_v6  ;;  %1436 = vadd.xlane.f32.xlu0 %v2091_v26 }
 0x319   : > { %2098 = vpow2.f32 %v1380_v10 }
 0x31a   : > { %v1291_v12 = vpop.xlane.xlu1 %1290 }
 0x31b   : > { %v2861_v8 = vsub.f32 %v2733_v33, %v1291_v12 }
 0x31c   : > { %v2093_v29 = vpop.eup %2092  ;;  %v1289_v16 = vpop.xlane.xlu0 %1288 }
 0x31d   : > { %v1386_v17 = vmul.f32 1.442695, %v2861_v8  ;;  %v2865_v11 = vsub.f32 %v2736_v35, %v1289_v16  ;;  %1442 = vadd.xlane.f32.xlu1 %v2093_v29 }
 0x31e   : > { %v2095_v31 = vpop.eup %2094 }
 0x31f   : > { %2100 = vpow2.f32 %v1386_v17  ;;  %v1384_v21 = vmul.f32 1.442695, %v2865_v11  ;;  %1440 = vadd.xlane.f32.xlu0 %v2095_v31 }
 0x321   : > { %2102 = vpow2.f32 %v1384_v21 }
 0x322   : > { %v1295_v23 = vpop.xlane.xlu1 %1294 }
 0x323   : > { %v2869_v13 = vsub.f32 %v2741_v37, %v1295_v23 }
 0x324   : > { %v2097_v33 = vpop.eup %2096  ;;  %v1293_v28 = vpop.xlane.xlu0 %1292 }
 0x325   : > { %v1390_v30 = vmul.f32 1.442695, %v2869_v13  ;;  %v2873_v15 = vsub.f32 %v2744_v39, %v1293_v28  ;;  %1446 = vadd.xlane.f32.xlu1 %v2097_v33 }
 0x326   : > { %v2099_v35 = vpop.eup %2098 }
 0x327   : > { %2104 = vpow2.f32 %v1390_v30  ;;  %v1388_v34 = vmul.f32 1.442695, %v2873_v15  ;;  %1444 = vadd.xlane.f32.xlu0 %v2099_v35 }
 0x329   : > { %2106 = vpow2.f32 %v1388_v34 }
 0x32a   : > { %v1299_v36 = vpop.xlane.xlu1 %1298 }
 0x32b   : > { %v2877_v19 = vsub.f32 %v2749_v41, %v1299_v36 }
 0x32c   : > { %v2101_v37 = vpop.eup %2100  ;;  %v1297_v40 = vpop.xlane.xlu0 %1296 }
 0x32d   : > { %v1394_v42 = vmul.f32 1.442695, %v2877_v19  ;;  %v2881_v27 = vsub.f32 %v2752_v44, %v1297_v40  ;;  %1450 = vadd.xlane.f32.xlu1 %v2101_v37 }
 0x32e   : > { %v2103_v39 = vpop.eup %2102 }
 0x32f   : > { %2108 = vpow2.f32 %v1394_v42  ;;  %v1392_v49 = vmul.f32 1.442695, %v2881_v27  ;;  %1448 = vadd.xlane.f32.xlu0 %v2103_v39 }
 0x331   : > { %2110 = vpow2.f32 %v1392_v49 }
 0x334   : > { %v2105_v51 = vpop.eup %2104 }
 0x335   : > { %1454 = vadd.xlane.f32.xlu1 %v2105_v51 }
 0x336   : > { %v2107_v41 = vpop.eup %2106 }
 0x337   : > { %1452 = vadd.xlane.f32.xlu0 %v2107_v41 }
 0x33c   : > { %v2109_v20 = vpop.eup %2108 }
 0x33d   : > { %1458 = vadd.xlane.f32.xlu1 %v2109_v20 }
 0x33e   : > { %v2111_v57 = vpop.eup %2110 }
 0x33f   : > { %1456 = vadd.xlane.f32.xlu0 %v2111_v57 }
 0x350   : > { %v1399_v59 = vpop.xlane.xlu1 %1398 }
 0x351   : > { %2112 = vlog2.f32 %v1399_v59 }
 0x352   : > { %v1397_v44 = vpop.xlane.xlu0 %1396 }
 0x353   : > { %2114 = vlog2.f32 %v1397_v44 }
 0x356   : > { %v1403_v22 = vpop.xlane.xlu1 %1402 }
 0x357   : > { %2116 = vlog2.f32 %v1403_v22  ;;  %v1401_v63 = vpop.xlane.xlu0 %1400 }
 0x358   : > { %2118 = vlog2.f32 %v1401_v63 }
 0x35e   : > { %v1407_v47 = vpop.xlane.xlu1 %1406  ;;  %v2113_v24 = vpop.eup %2112 }
 0x35f   : > { %2120 = vlog2.f32 %v1407_v47  ;;  %v1463_v5 = vmul.f32 0.6931472, %v2113_v24 }
 0x360   : > { %v1405_v7 = vpop.xlane.xlu0 %1404  ;;  %v2115_v26 = vpop.eup %2114 }
 0x361   : > { %2122 = vlog2.f32 %v1405_v7  ;;  %v1525_v10 = vsub.f32 %v2757_v9, %v1463_v5  ;;  %v1461_v12 = vmul.f32 0.6931472, %v2115_v26 }
 0x363   : > { %1557 = vst [vmem:[%s2888_s17 + $0x8] sm:$0xff] %v1525_v10  ;;  %v1524_v29 = vsub.f32 %v2761_v53, %v1461_v12 }
 0x364   : > { %v2117_v16 = vpop.eup %2116 }
 0x365   : > { %v2119_v17 = vpop.eup %2118  ;;  %1556 = vst [vmem:[%s2888_s17] sm:$0xff] %v1524_v29  ;;  %v1467_v31 = vmul.f32 0.6931472, %v2117_v16 }
 0x366   : > { %v1411_v21 = vpop.xlane.xlu1 %1410  ;;  %v1465_v23 = vmul.f32 0.6931472, %v2119_v17 }
 0x367   : > { %2124 = vlog2.f32 %v1411_v21  ;;  %v1527_v9 = vsub.f32 %v2765_v43, %v1467_v31 }
 0x368   : > { %v1409_v33 = vpop.xlane.xlu0 %1408  ;;  %v1526_v28 = vsub.f32 %v2768_v61, %v1465_v23 }
 0x369   : > { %2126 = vlog2.f32 %v1409_v33  ;;  %1559 = vst [vmem:[%s2888_s17 + $0x18] sm:$0xff] %v1527_v9 }
 0x36a   : > { %1558 = vst [vmem:[%s2888_s17 + $0x10] sm:$0xff] %v1526_v28 }
 0x36c   : > { %v2121_v30 = vpop.eup %2120 }
 0x36d   : > { %v1471_v35 = vmul.f32 0.6931472, %v2121_v30 }
 0x36e   : > { %v2123_v53 = vpop.eup %2122  ;;  %v1415_v34 = vpop.xlane.xlu1 %1414 }
 0x36f   : > { %v1529_v36 = vsub.f32 %v2773_v1, %v1471_v35  ;;  %v1469_v37 = vmul.f32 0.6931472, %v2123_v53  ;;  %2128 = vlog2.f32 %v1415_v34 }
 0x370   : > { %v1413_v40 = vpop.xlane.xlu0 %1412 }
 0x371   : > { %1561 = vst [vmem:[%s2888_s17 + $0x28] sm:$0xff] %v1529_v36  ;;  %v1528_v43 = vsub.f32 %v2777_v48, %v1469_v37  ;;  %2130 = vlog2.f32 %v1413_v40 }
 0x373   : > { %1560 = vst [vmem:[%s2888_s17 + $0x20] sm:$0xff] %v1528_v43 }
 0x374   : > { %v2125_v61 = vpop.eup %2124 }
 0x375   : > { %v1475_v42 = vmul.f32 0.6931472, %v2125_v61 }
 0x376   : > { %v2127_v39 = vpop.eup %2126  ;;  %v1419_v49 = vpop.xlane.xlu1 %1418 }
 0x377   : > { %v1531_v51 = vsub.f32 %v2781_v14, %v1475_v42  ;;  %v1473_v41 = vmul.f32 0.6931472, %v2127_v39  ;;  %2132 = vlog2.f32 %v1419_v49 }
 0x378   : > { %v1417_v1 = vpop.xlane.xlu0 %1416 }
 0x379   : > { %1563 = vst [vmem:[%s2888_s17 + $0x38] sm:$0xff] %v1531_v51  ;;  %v1530_v20 = vsub.f32 %v2785_v18, %v1473_v41  ;;  %2134 = vlog2.f32 %v1417_v1 }
 0x37b   : > { %1562 = vst [vmem:[%s2888_s17 + $0x30] sm:$0xff] %v1530_v20 }
 0x37c   : > { %v2129_v57 = vpop.eup %2128 }
 0x37d   : > { %v1479_v48 = vmul.f32 0.6931472, %v2129_v57 }
 0x37e   : > { %v2131_v59 = vpop.eup %2130  ;;  %v1423_v44 = vpop.xlane.xlu1 %1422 }
 0x37f   : > { %v1533_v22 = vsub.f32 %v2789_v25, %v1479_v48  ;;  %v1477_v63 = vmul.f32 0.6931472, %v2131_v59  ;;  %2136 = vlog2.f32 %v1423_v44 }
 0x380   : > { %v1421_v14 = vpop.xlane.xlu0 %1420 }
 0x381   : > { %1565 = vst [vmem:[%s2888_s17 + $0x48] sm:$0xff] %v1533_v22  ;;  %v1532_v47 = vsub.f32 %v2793_v32, %v1477_v63  ;;  %2138 = vlog2.f32 %v1421_v14 }
 0x383   : > { %1564 = vst [vmem:[%s2888_s17 + $0x40] sm:$0xff] %v1532_v47 }
 0x384   : > { %v2133_v24 = vpop.eup %2132 }
 0x385   : > { %v1483_v18 = vmul.f32 0.6931472, %v2133_v24 }
 0x386   : > { %v2135_v5 = vpop.eup %2134  ;;  %v1427_v7 = vpop.xlane.xlu1 %1426 }
 0x387   : > { %v1535_v26 = vsub.f32 %v2797_v38, %v1483_v18  ;;  %v1481_v10 = vmul.f32 0.6931472, %v2135_v5  ;;  %2140 = vlog2.f32 %v1427_v7 }
 0x388   : > { %v1425_v25 = vpop.xlane.xlu0 %1424 }
 0x389   : > { %1567 = vst [vmem:[%s2888_s17 + $0x58] sm:$0xff] %v1535_v26  ;;  %v1534_v12 = vsub.f32 %v2801_v46, %v1481_v10  ;;  %2142 = vlog2.f32 %v1425_v25 }
 0x38b   : > { %1566 = vst [vmem:[%s2888_s17 + $0x50] sm:$0xff] %v1534_v12 }
 0x38c   : > { %v2137_v29 = vpop.eup %2136 }
 0x38d   : > { %v1487_v32 = vmul.f32 0.6931472, %v2137_v29 }
 0x38e   : > { %v2139_v16 = vpop.eup %2138  ;;  %v1431_v17 = vpop.xlane.xlu1 %1430 }
 0x38f   : > { %v1537_v31 = vsub.f32 %v2805_v55, %v1487_v32  ;;  %v1485_v21 = vmul.f32 0.6931472, %v2139_v16  ;;  %2144 = vlog2.f32 %v1431_v17 }
 0x390   : > { %v1429_v38 = vpop.xlane.xlu0 %1428 }
 0x391   : > { %1569 = vst [vmem:[%s2888_s17 + $0x68] sm:$0xff] %v1537_v31  ;;  %v1536_v23 = vsub.f32 %v2809_v45, %v1485_v21  ;;  %2146 = vlog2.f32 %v1429_v38 }
 0x393   : > { %1568 = vst [vmem:[%s2888_s17 + $0x60] sm:$0xff] %v1536_v23 }
 0x394   : > { %v2141_v9 = vpop.eup %2140 }
 0x395   : > { %v1491_v46 = vmul.f32 0.6931472, %v2141_v9 }
 0x396   : > { %v2143_v33 = vpop.eup %2142  ;;  %v1435_v28 = vpop.xlane.xlu1 %1434 }
 0x397   : > { %v1539_v30 = vsub.f32 %v2813_v3, %v1491_v46  ;;  %v1489_v35 = vmul.f32 0.6931472, %v2143_v33  ;;  %2148 = vlog2.f32 %v1435_v28 }
 0x398   : > { %v1433_v55 = vpop.xlane.xlu0 %1432 }
 0x399   : > { %1571 = vst [vmem:[%s2888_s17 + $0x78] sm:$0xff] %v1539_v30  ;;  %v1538_v53 = vsub.f32 %v2817_v50, %v1489_v35  ;;  %2150 = vlog2.f32 %v1433_v55 }
 0x39b   : > { %1570 = vst [vmem:[%s2888_s17 + $0x70] sm:$0xff] %v1538_v53 }
 0x39c   : > { %v2145_v34 = vpop.eup %2144 }
 0x39d   : > { %v1495_v45 = vmul.f32 0.6931472, %v2145_v34 }
 0x39e   : > { %v2147_v36 = vpop.eup %2146  ;;  %v1439_v37 = vpop.xlane.xlu1 %1438 }
 0x39f   : > { %v1541_v40 = vsub.f32 %v2821_v52, %v1495_v45  ;;  %v1493_v43 = vmul.f32 0.6931472, %v2147_v36  ;;  %2152 = vlog2.f32 %v1439_v37 }
 0x3a0   : > { %v1437_v3 = vpop.xlane.xlu0 %1436 }
 0x3a1   : > { %1573 = vst [vmem:[%s2888_s17 + $0x88] sm:$0xff] %v1541_v40  ;;  %v1540_v61 = vsub.f32 %v2825_v54, %v1493_v43  ;;  %2154 = vlog2.f32 %v1437_v3 }
 0x3a3   : > { %1572 = vst [vmem:[%s2888_s17 + $0x80] sm:$0xff] %v1540_v61 }
 0x3a4   : > { %v2149_v42 = vpop.eup %2148 }
 0x3a5   : > { %v1499_v50 = vmul.f32 0.6931472, %v2149_v42 }
 0x3a6   : > { %v2151_v39 = vpop.eup %2150  ;;  %v1443_v49 = vpop.xlane.xlu1 %1442 }
 0x3a7   : > { %v1543_v51 = vsub.f32 %v2829_v56, %v1499_v50  ;;  %v1497_v41 = vmul.f32 0.6931472, %v2151_v39  ;;  %2156 = vlog2.f32 %v1443_v49 }
 0x3a8   : > { %v1441_v52 = vpop.xlane.xlu0 %1440 }
 0x3a9   : > { %1575 = vst [vmem:[%s2888_s17 + $0x98] sm:$0xff] %v1543_v51  ;;  %v1542_v1 = vsub.f32 %v2833_v58, %v1497_v41  ;;  %2158 = vlog2.f32 %v1441_v52 }
 0x3ab   : > { %1574 = vst [vmem:[%s2888_s17 + $0x90] sm:$0xff] %v1542_v1 }
 0x3ac   : > { %v2153_v20 = vpop.eup %2152 }
 0x3ad   : > { %v1503_v54 = vmul.f32 0.6931472, %v2153_v20 }
 0x3ae   : > { %v2155_v57 = vpop.eup %2154  ;;  %v1447_v48 = vpop.xlane.xlu1 %1446 }
 0x3af   : > { %v1545_v59 = vsub.f32 %v2837_v60, %v1503_v54  ;;  %v1501_v44 = vmul.f32 0.6931472, %v2155_v57  ;;  %2160 = vlog2.f32 %v1447_v48 }
 0x3b0   : > { %v1445_v56 = vpop.xlane.xlu0 %1444 }
 0x3b1   : > { %1577 = vst [vmem:[%s2888_s17 + $0xa8] sm:$0xff] %v1545_v59  ;;  %v1544_v22 = vsub.f32 %v2841_v62, %v1501_v44  ;;  %2162 = vlog2.f32 %v1445_v56 }
 0x3b3   : > { %1576 = vst [vmem:[%s2888_s17 + $0xa0] sm:$0xff] %v1544_v22 }
 0x3b4   : > { %v2157_v63 = vpop.eup %2156 }
 0x3b5   : > { %v1507_v58 = vmul.f32 0.6931472, %v2157_v63 }
 0x3b6   : > { %v2159_v14 = vpop.eup %2158  ;;  %v1451_v47 = vpop.xlane.xlu1 %1450 }
 0x3b7   : > { %v1547_v24 = vsub.f32 %v2845_v0, %v1507_v58  ;;  %v1505_v18 = vmul.f32 0.6931472, %v2159_v14  ;;  %2164 = vlog2.f32 %v1451_v47 }
 0x3b8   : > { %v1449_v60 = vpop.xlane.xlu0 %1448 }
 0x3b9   : > { %1579 = vst [vmem:[%s2888_s17 + $0xb8] sm:$0xff] %v1547_v24  ;;  %v1546_v5 = vsub.f32 %v2849_v2, %v1505_v18  ;;  %2166 = vlog2.f32 %v1449_v60 }
 0x3bb   : > { %1578 = vst [vmem:[%s2888_s17 + $0xb0] sm:$0xff] %v1546_v5 }
 0x3bc   : > { %v2161_v7 = vpop.eup %2160 }
 0x3bd   : > { %v1511_v62 = vmul.f32 0.6931472, %v2161_v7 }
 0x3be   : > { %v2163_v26 = vpop.eup %2162  ;;  %v1455_v10 = vpop.xlane.xlu1 %1454 }
 0x3bf   : > { %v1549_v25 = vsub.f32 %v2853_v4, %v1511_v62  ;;  %v1509_v12 = vmul.f32 0.6931472, %v2163_v26  ;;  %2168 = vlog2.f32 %v1455_v10 }
 0x3c0   : > { %v1453_v0 = vpop.xlane.xlu0 %1452 }
 0x3c1   : > { %1581 = vst [vmem:[%s2888_s17 + $0xc8] sm:$0xff] %v1549_v25  ;;  %v1548_v29 = vsub.f32 %v2857_v6, %v1509_v12  ;;  %2170 = vlog2.f32 %v1453_v0 }
 0x3c3   : > { %1580 = vst [vmem:[%s2888_s17 + $0xc0] sm:$0xff] %v1548_v29 }
 0x3c4   : > { %v2165_v32 = vpop.eup %2164 }
 0x3c5   : > { %v1515_v2 = vmul.f32 0.6931472, %v2165_v32 }
 0x3c6   : > { %v2167_v16 = vpop.eup %2166  ;;  %v1459_v17 = vpop.xlane.xlu1 %1458 }
 0x3c7   : > { %v1551_v31 = vsub.f32 %v2861_v8, %v1515_v2  ;;  %v1513_v21 = vmul.f32 0.6931472, %v2167_v16  ;;  %2172 = vlog2.f32 %v1459_v17 }
 0x3c8   : > { %v1457_v4 = vpop.xlane.xlu0 %1456 }
 0x3c9   : > { %1583 = vst [vmem:[%s2888_s17 + $0xd8] sm:$0xff] %v1551_v31  ;;  %v1550_v38 = vsub.f32 %v2865_v11, %v1513_v21  ;;  %2174 = vlog2.f32 %v1457_v4 }
 0x3cb   : > { %1582 = vst [vmem:[%s2888_s17 + $0xd0] sm:$0xff] %v1550_v38 }
 0x3cc   : > { %v2169_v6 = vpop.eup %2168 }
 0x3cd   : > { %v1519_v23 = vmul.f32 0.6931472, %v2169_v6 }
 0x3ce   : > { %v2171_v9 = vpop.eup %2170 }
 0x3cf   : > { %v1553_v46 = vsub.f32 %v2869_v13, %v1519_v23  ;;  %v1517_v33 = vmul.f32 0.6931472, %v2171_v9 }
 0x3d1   : > { %1585 = vst [vmem:[%s2888_s17 + $0xe8] sm:$0xff] %v1553_v46  ;;  %v1552_v8 = vsub.f32 %v2873_v15, %v1517_v33 }
 0x3d3   : > { %1584 = vst [vmem:[%s2888_s17 + $0xe0] sm:$0xff] %v1552_v8 }
 0x3d4   : > { %v2173_v28 = vpop.eup %2172 }
 0x3d5   : > { %v1523_v30 = vmul.f32 0.6931472, %v2173_v28 }
 0x3d6   : > { %v2175_v11 = vpop.eup %2174 }
 0x3d7   : > { %v1555_v35 = vsub.f32 %v2877_v19, %v1523_v30  ;;  %v1521_v55 = vmul.f32 0.6931472, %v2175_v11 }
 0x3d9   : > { %1587 = vst [vmem:[%s2888_s17 + $0xf8] sm:$0xff] %v1555_v35  ;;  %v1554_v13 = vsub.f32 %v2881_v27, %v1521_v55 }
 0x3db   : > { %1586 = vst [vmem:[%s2888_s17 + $0xf0] sm:$0xff] %v1554_v13 }
 0x3dc   : > { %2189 = shalt.err (!%p2186_p3)
}
 0x3dd   : > { %s2190_s11 = scalar_lea.hbm %s2955_s6, 4096  ;;  %s2194_s14 = scalar_lea.hbm %s3009_s5, 8192 }
 0x3de   : > { %p2191_p4 = scmp.ne.s32.totalorder %s2955_s6, %s2190_s11  ;;  %p2195_p9 = scmp.lt.s32.totalorder %s2955_s6, %s3009_s5 }
 0x3df   : > { %p2196_p10 = scmp.lt.s32.totalorder %s2194_s14, %s2190_s11 }
 0x3e0   : > { %p2192_p7 = pnand %p2191_p4, %p2312_p5 }
 0x3e1   : > { %p2197_p11 = por %p2196_p10, %p2195_p9 }
 0x3e2   : > { %p2193_p8 = pneg %p2192_p7 }
 0x3e4   : > { %p2198_p12 = pnand %p2197_p11, %p2193_p8 }
 0x3e6   : > { %2201 = shalt.err (!%p2198_p12)
}
 0x3e7   : > { %s2242_s17 = smov 128   ;;  %s2243_s23 = smov 8  }
 0x3e8   : > { %1999 = dma.vmem_to_hbm [thread:$0]  (%p2312_p5), %s2957_s25, 4096, %s2955_s6, %s2964_s22, %s2242_s17, %s2242_s17, %s2243_s23  }
 0x3e9 PF: > { %p2005_p13 = scmp.ge.s32.totalorder %s2236_s21, 2  ;;  %s1617_s26 = sand.u32 1, %s2224_s18  }
 0x3ea   : > { %s1618_s30 = scalar_lea.sflag [#allocation3], %s1617_s26 }
 0x3eb   : > { %p2002_p0 = pnand %p2005_p13, %p2316_p6 }
 0x3ed   : > { %p2003_p1 = pneg %p2002_p0 }
 0x3ef   : > { %2219 = dma.done.wait (%p2003_p1), %s1618_s30, 4096  }
 0x3f0   : > { %2221 = vsyncadd (%p2003_p1), %s1618_s30, 4294963200  ;;  %p15_p2 = scmp.ge.s32.totalorder %s2299_s24, 4   ;;  %s3012_s18 = smov %s2228_s19 }
 0x3f1   : > { %s3013_s19 = smov %s2232_s20  ;;  %s3014_s20 = smov %s2310_s27 }
 0x3f2   : > { %s3015_s21 = smov %s2299_s24  ;;  %17 = sbr.rel (!%p15_p2) target bundleno = 3 (0x3), region = 75 }
 0x3f7   :  { %1623 = vsyncpa [#allocation3], 1 }
 0x3f8   :  { %1625 = vsyncpa [#allocation3 + $0x1], 1 }

</bundles_post_ra>
